<compile_context>
chip_gen: v7x
topology: tpu7x:2x2x1
jax: 0.10.0
libtpu: 0.0.40
codegen_flags: <defaults>
</compile_context>

<pallas_src>
import functools
import math

import jax
import jax.numpy as jnp
from jax import lax
from jax.experimental import pallas as pl
from jax.experimental.pallas import tpu as pltpu

BATCH_PAD = 16  # sublane-dense for bf16 activations (also a multiple of 8 for f32)


# ------------------------------------------------------------------
# Fused bidirectional LSTM layer (one pallas_call per layer)
# ------------------------------------------------------------------
def _bilstm_layer_kernel(x_ref, wih_ref, whh_f_ref, whh_b_ref, b_ref, out_ref,
                         gx, hf, cf, hb, cb, *, T, Bp, H):
    """One bidirectional LSTM layer over the full (time-major) sequence.

    x_ref:   (T*Bp, I)      bf16 time-major flattened input (Bp sublane-padded)
    wih_ref: (I, 8H)        bf16 fused fwd|bwd input->gate weights
    whh_*:   (H, 4H)        bf16 recurrent weights per direction
    b_ref:   (1, 8H)        f32  fused fwd|bwd (b_ih + b_hh)
    out_ref: (2, T, Bp, H)  bf16 direction-major hidden states
    gx:      (T*Bp, 8H)     f32  hoisted input projections (both directions)
    hf/cf/hb/cb: (Bp, H)    f32  carries
    """
    # ---- hoisted input projection: ONE wide MXU matmul for both directions ----
    gx[...] = (jnp.dot(x_ref[...], wih_ref[...],
                       preferred_element_type=jnp.float32) + b_ref[...])

    hf[...] = jnp.zeros_like(hf)
    cf[...] = jnp.zeros_like(cf)
    hb[...] = jnp.zeros_like(hb)
    cb[...] = jnp.zeros_like(cb)

    # Recurrent weights resident in vregs (small H here).
    # TODO(synk): for H>=256 pass the refs straight into jnp.dot (avoid spill)
    # or drive the MXU weight-stationary.
    whh_f = whh_f_ref[...]
    whh_b = whh_b_ref[...]

    def cell(gates, c_prev):
        # PyTorch gate order (i, f, g, o); for H>=32 these are lane-group slices.
        i = jax.nn.sigmoid(gates[:, 0 * H:1 * H])
        f = jax.nn.sigmoid(gates[:, 1 * H:2 * H])
        g = jnp.tanh(gates[:, 2 * H:3 * H])
        o = jax.nn.sigmoid(gates[:, 3 * H:4 * H])
        c_new = f * c_prev + i * g
        h_new = o * jnp.tanh(c_new)
        return h_new, c_new

    def step(t, carry):
        tr = T - 1 - t
        rf = pl.multiple_of(t * Bp, Bp)     # forward time slot (8-aligned rows)
        rb = pl.multiple_of(tr * Bp, Bp)    # reverse time slot

        # ---- forward direction: only h @ W_hh remains in the recurrence ----
        gates_f = gx[pl.ds(rf, Bp), pl.ds(0, 4 * H)] + jnp.dot(
            hf[...].astype(whh_f.dtype), whh_f,
            preferred_element_type=jnp.float32)
        h_f, c_f = cell(gates_f, cf[...])
        hf[...] = h_f
        cf[...] = c_f
        out_ref[0, t, :, :] = h_f.astype(out_ref.dtype)     # dense (Bp,H) slab

        # ---- backward direction (in-kernel reverse indexing, no flips) ----
        gates_b = gx[pl.ds(rb, Bp), pl.ds(4 * H, 4 * H)] + jnp.dot(
            hb[...].astype(whh_b.dtype), whh_b,
            preferred_element_type=jnp.float32)
        h_b, c_b = cell(gates_b, cb[...])
        hb[...] = h_b
        cb[...] = c_b
        out_ref[1, tr, :, :] = h_b.astype(out_ref.dtype)
        return carry

    # T is small & static -> full unroll for LLO scheduling visibility.
    lax.fori_loop(0, T, step, 0, unroll=True)


def bilstm_layer(x_2d, T, Bp, layer):
    """One fused bidirectional layer: (T*Bp, I) -> (T*Bp, 2H), time-major."""
    wih, whh_f, whh_b, b = layer
    H = whh_f.shape[0]
    out = pl.pallas_call(
        functools.partial(_bilstm_layer_kernel, T=T, Bp=Bp, H=H),
        out_shape=jax.ShapeDtypeStruct((2, T, Bp, H), jnp.bfloat16),
        in_specs=[pl.BlockSpec(memory_space=pltpu.MemorySpace.VMEM)] * 5,
        out_specs=pl.BlockSpec(memory_space=pltpu.MemorySpace.VMEM),
        scratch_shapes=[
            pltpu.VMEM((T * Bp, 8 * H), jnp.float32),  # fused fwd|bwd projections
            pltpu.VMEM((Bp, H), jnp.float32),          # h forward
            pltpu.VMEM((Bp, H), jnp.float32),          # c forward
            pltpu.VMEM((Bp, H), jnp.float32),          # h backward
            pltpu.VMEM((Bp, H), jnp.float32),          # c backward
        ],
    )(x_2d, wih, whh_f, whh_b, b)
    # Direction-major halves -> feature concat once per layer (glue).
    return jnp.concatenate([out[0], out[1]], axis=-1).reshape(T * Bp, 2 * H)


def bilstm_stack(x_2d, T, Bp, layers):
    out = x_2d
    for layer in layers:
        out = bilstm_layer(out, T, Bp, layer)
        # Inter-layer dropout is identity at inference time.
    return out


# ------------------------------------------------------------------
# Row-tiled dense (optional fused ReLU)
# ------------------------------------------------------------------
def _dense_kernel(x_ref, w_ref, b_ref, o_ref, *, relu):
    y = jnp.dot(x_ref[...], w_ref[...],
                preferred_element_type=jnp.float32) + b_ref[...]
    if relu:
        y = jnp.maximum(y, 0.0)
    o_ref[...] = y.astype(o_ref.dtype)


def dense(x, w, b, relu=False, out_dtype=jnp.bfloat16):
    """y = x @ w + b (optionally ReLU). x: (M,K) bf16, w: (K,N) bf16, b: (1,N) f32."""
    M, K = x.shape
    N = w.shape[1]
    tm = M if M <= 1024 else 512
    Mp = pl.cdiv(M, tm) * tm
    if Mp != M:
        x = jnp.pad(x, ((0, Mp - M), (0, 0)))
    out = pl.pallas_call(
        functools.partial(_dense_kernel, relu=relu),
        out_shape=jax.ShapeDtypeStruct((Mp, N), out_dtype),
        grid=(Mp // tm,),
        in_specs=[pl.BlockSpec((tm, K), lambda i: (i, 0)),
                  pl.BlockSpec((K, N), lambda i: (0, 0)),
                  pl.BlockSpec((1, N), lambda i: (0, 0))],
        out_specs=pl.BlockSpec((tm, N), lambda i: (i, 0)),
        compiler_params=pltpu.CompilerParams(
            dimension_semantics=("parallel",)),
    )(x, w, b)
    return out if Mp == M else out[:M]


# ------------------------------------------------------------------
# Fused tail: linear_out_1 -> flatten(1) -> linear_out_2 -> softmax
# ------------------------------------------------------------------
def _tail_kernel(x_ref, w1_ref, b1_ref, w2_ref, b2_ref, logits_ref, probs_ref,
                 *, T, Bp):
    # linear_out_1 on the whole time-major activation slab (one MXU pass).
    o1 = (jnp.dot(x_ref[...], w1_ref[...],
                  preferred_element_type=jnp.float32) + b1_ref[...])   # (T*Bp, 2)
    w2 = w2_ref[...]                                                   # (2T, C)
    C = w2.shape[1]
    # flatten(1) + linear_out_2 absorbed into a contraction over (t, j):
    # logits[b, c] = sum_{t,j} o1[t*Bp+b, j] * w2[2t+j, c] + b2[c]
    logits = jnp.zeros((Bp, C), jnp.float32) + b2_ref[...]
    for t in range(T):                       # static, tiny trip count
        o1_t = o1[t * Bp:(t + 1) * Bp, :]    # (Bp, 2)
        for j in range(2):
            logits = logits + o1_t[:, j:j + 1] * w2[2 * t + j:2 * t + j + 1, :]
    logits_ref[...] = logits
    m = jnp.max(logits, axis=1, keepdims=True)
    e = jnp.exp(logits - m)
    probs_ref[...] = e / jnp.sum(e, axis=1, keepdims=True)


def tail(x_2d, lin1, lin2, T, Bp, B):
    w1, b1 = lin1
    w2, b2 = lin2
    C = w2.shape[1]
    logits, probs = pl.pallas_call(
        functools.partial(_tail_kernel, T=T, Bp=Bp),
        out_shape=(jax.ShapeDtypeStruct((Bp, C), jnp.float32),
                   jax.ShapeDtypeStruct((Bp, C), jnp.float32)),
        in_specs=[pl.BlockSpec(memory_space=pltpu.MemorySpace.VMEM)] * 5,
        out_specs=(pl.BlockSpec(memory_space=pltpu.MemorySpace.VMEM),
                   pl.BlockSpec(memory_space=pltpu.MemorySpace.VMEM)),
    )(x_2d, w1, b1, w2, b2)
    return logits[:B], probs[:B]


# ------------------------------------------------------------------
# Model glue (plain JAX): embedding gather, layout plumbing, layer stacking.
# ------------------------------------------------------------------
def model_forward(params, kmer_ids, signals):
    B, T = kmer_ids.shape
    Bp = max(BATCH_PAD, ((B + BATCH_PAD - 1) // BATCH_PAD) * BATCH_PAD)

    # nn.Embedding lookup (gather kept in plain-JAX glue).
    kmer_embed = jnp.take(params["embed"], kmer_ids, axis=0)            # (B,T,4)
    seq_in = jnp.concatenate([kmer_embed, signals[:, :, :4]], axis=2)   # (B,T,8)
    sig_in = signals[:, :, 4:]                                          # (B,T,15)

    def prep(x_btf):
        # One transpose into time-major per stream; pad batch to sublane-dense
        # Bp; the whole stack then stays time-major (T*Bp, F) end-to-end.
        x = jnp.transpose(x_btf, (1, 0, 2))
        x = jnp.pad(x, ((0, 0), (0, Bp - B), (0, 0)))
        return x.astype(jnp.bfloat16).reshape(T * Bp, -1)

    seq_tm = prep(seq_in)                                               # (T*Bp, 8)
    sig_tm = prep(sig_in)                                               # (T*Bp, 15)

    out_seq = bilstm_stack(seq_tm, T, Bp, params["lstm_seq"])           # (T*Bp, H)
    out_seq = dense(out_seq, *params["linear_seq"], relu=True)          # (T*Bp, H/2)

    out_sig = bilstm_stack(sig_tm, T, Bp, params["lstm_signal"])        # (T*Bp, H)
    out_sig = dense(out_sig, *params["linear_signal"], relu=True)       # (T*Bp, H/2)

    comb_in = jnp.concatenate([out_seq, out_sig], axis=1)               # (T*Bp, H)
    out = bilstm_stack(comb_in, T, Bp, params["lstm_comb"])             # (T*Bp, 2H)

    # TODO(synk): nn.Dropout layers are identity at inference; no RNG applied.
    logits, probs = tail(out, params["linear_out_1"], params["linear_out_2"],
                         T, Bp, B)
    return logits, probs


# ------------------------------------------------------------------
# Deterministic parameter construction (shapes follow the torch __init__).
# Weights are stored bf16 (f32 accumulation on the MXU); biases stay f32.
# ------------------------------------------------------------------
def _init_lstm(key, input_size, hidden, num_layers):
    layers = []
    scale = 1.0 / math.sqrt(hidden)
    for l in range(num_layers):
        in_sz = input_size if l == 0 else 2 * hidden
        mats = {}
        for d in ("fwd", "bwd"):
            key, k1, k2, k3, k4 = jax.random.split(key, 5)
            wih = jax.random.uniform(k1, (in_sz, 4 * hidden), minval=-scale,
                                     maxval=scale, dtype=jnp.float32)
            whh = jax.random.uniform(k2, (hidden, 4 * hidden), minval=-scale,
                                     maxval=scale, dtype=jnp.float32)
            b_ih = jax.random.uniform(k3, (1, 4 * hidden), minval=-scale,
                                      maxval=scale, dtype=jnp.float32)
            b_hh = jax.random.uniform(k4, (1, 4 * hidden), minval=-scale,
                                      maxval=scale, dtype=jnp.float32)
            mats[d] = (wih, whh, b_ih + b_hh)       # proper b_ih + b_hh fold
        wih_cat = jnp.concatenate([mats["fwd"][0], mats["bwd"][0]],
                                  axis=1).astype(jnp.bfloat16)          # (I, 8H)
        b_cat = jnp.concatenate([mats["fwd"][2], mats["bwd"][2]], axis=1)  # (1, 8H)
        layers.append((wih_cat,
                       mats["fwd"][1].astype(jnp.bfloat16),
                       mats["bwd"][1].astype(jnp.bfloat16),
                       b_cat))
    return layers, key


def _init_linear(key, n_in, n_out, w_dtype=jnp.bfloat16):
    key, k1, k2 = jax.random.split(key, 3)
    s = 1.0 / math.sqrt(n_in)
    w = jax.random.uniform(k1, (n_in, n_out), minval=-s, maxval=s,
                           dtype=jnp.float32).astype(w_dtype)
    b = jax.random.uniform(k2, (1, n_out), minval=-s, maxval=s,
                           dtype=jnp.float32)
    return (w, b), key


def build_params(key, kmer, hidden, embed_size, num_layer1, num_layer2,
                 num_classes):
    h2 = hidden // 2
    p = {}
    key, k = jax.random.split(key)
    p["embed"] = jax.random.normal(k, (embed_size[0], embed_size[1]),
                                   dtype=jnp.float32)
    p["lstm_seq"], key = _init_lstm(key, 8, h2, num_layer1)
    p["lstm_signal"], key = _init_lstm(key, 15, h2, num_layer1)
    p["lstm_comb"], key = _init_lstm(key, hidden, hidden, num_layer2)
    p["linear_seq"], key = _init_linear(key, hidden, h2)
    p["linear_signal"], key = _init_linear(key, hidden, h2)
    p["linear_out_1"], key = _init_linear(key, hidden * 2, 2)
    p["linear_out_2"], key = _init_linear(key, 2 * kmer, num_classes,
                                          w_dtype=jnp.float32)
    return p, key


# ------------------------------------------------------------------
if __name__ == "__main__":
    KMER = 8          # sequence length (torch default 21, kept small)
    HIDDEN = 32       # torch default 256, kept small
    EMBED = [16, 4]
    NUM_LAYER1 = 2
    NUM_LAYER2 = 3
    NUM_CLASSES = 2
    B = 2

    key = jax.random.PRNGKey(0)
    params, key = build_params(key, KMER, HIDDEN, EMBED,
                               NUM_LAYER1, NUM_LAYER2, NUM_CLASSES)

    key, kk, ks = jax.random.split(key, 3)
    kmer_ids = jax.random.randint(kk, (B, KMER), 0, EMBED[0], dtype=jnp.int32)
    signals = jax.random.normal(ks, (B, KMER, 19), dtype=jnp.float32)

    logits, probs = model_forward(params, kmer_ids, signals)
    jax.block_until_ready((logits, probs))

    assert logits.shape == (B, NUM_CLASSES)
    assert probs.shape == (B, NUM_CLASSES)
    print("KERNEL_OK")
</pallas_src>

<mosaic_0001>
module attributes {stable_mosaic.version = 11 : i64} {
  func.func @_bilstm_layer_kernel(%arg0: memref<128x8xbf16, #tpu.memory_space<vmem>>, %arg1: memref<8x128xbf16, #tpu.memory_space<vmem>>, %arg2: memref<16x64xbf16, #tpu.memory_space<vmem>>, %arg3: memref<16x64xbf16, #tpu.memory_space<vmem>>, %arg4: memref<1x128xf32, #tpu.memory_space<vmem>>, %arg5: memref<2x8x16x16xbf16, #tpu.memory_space<vmem>>, %arg6: memref<128x128xf32, #tpu.memory_space<vmem>>, %arg7: memref<16x16xf32, #tpu.memory_space<vmem>>, %arg8: memref<16x16xf32, #tpu.memory_space<vmem>>, %arg9: memref<16x16xf32, #tpu.memory_space<vmem>>, %arg10: memref<16x16xf32, #tpu.memory_space<vmem>>) attributes {dimension_semantics = [], scalar_prefetch = 0 : i64, scratch_operands = 5 : i64, tpu.core_type = #tpu.core_type<tc>} {
    %c0 = arith.constant 0 : index
    %c0_0 = arith.constant 0 : index
    %0 = vector.load %arg0[%c0, %c0_0] : memref<128x8xbf16, #tpu.memory_space<vmem>>, vector<128x8xbf16>
    %c0_1 = arith.constant 0 : index
    %c0_2 = arith.constant 0 : index
    %1 = vector.load %arg1[%c0_1, %c0_2] : memref<8x128xbf16, #tpu.memory_space<vmem>>, vector<8x128xbf16>
    %cst = arith.constant dense<0.000000e+00> : vector<128x128xf32>
    %2 = tpu.matmul %0, %1, %cst {dimension_numbers = #tpu.dot_dimension_numbers<[1], [0], [0], [1], [0, 0, 1, 1], [], []>} : vector<128x8xbf16>, vector<8x128xbf16>, vector<128x128xf32> -> vector<128x128xf32>
    %c0_3 = arith.constant 0 : index
    %c0_4 = arith.constant 0 : index
    %3 = vector.load %arg4[%c0_3, %c0_4] : memref<1x128xf32, #tpu.memory_space<vmem>>, vector<1x128xf32>
    %4 = vector.broadcast %3 : vector<1x128xf32> to vector<128x128xf32>
    %5 = arith.addf %2, %4 : vector<128x128xf32>
    %c0_5 = arith.constant 0 : index
    %c0_6 = arith.constant 0 : index
    %6 = vector.load %arg6[%c0_5, %c0_6] : memref<128x128xf32, #tpu.memory_space<vmem>>, vector<128x128xf32>
    tpu.vector_store %arg6[%c0_5, %c0_6], %5 {strides = array<i32>} : memref<128x128xf32, #tpu.memory_space<vmem>>, vector<128x128xf32>,
    %cst_7 = arith.constant 0.000000e+00 : f32
    %7 = vector.broadcast %cst_7 : f32 to vector<16x16xf32>
    %c0_8 = arith.constant 0 : index
    %c0_9 = arith.constant 0 : index
    %8 = vector.load %arg7[%c0_8, %c0_9] : memref<16x16xf32, #tpu.memory_space<vmem>>, vector<16x16xf32>
    tpu.vector_store %arg7[%c0_8, %c0_9], %7 {strides = array<i32>} : memref<16x16xf32, #tpu.memory_space<vmem>>, vector<16x16xf32>,
    %cst_10 = arith.constant 0.000000e+00 : f32
    %9 = vector.broadcast %cst_10 : f32 to vector<16x16xf32>
    %c0_11 = arith.constant 0 : index
    %c0_12 = arith.constant 0 : index
    %10 = vector.load %arg8[%c0_11, %c0_12] : memref<16x16xf32, #tpu.memory_space<vmem>>, vector<16x16xf32>
    tpu.vector_store %arg8[%c0_11, %c0_12], %9 {strides = array<i32>} : memref<16x16xf32, #tpu.memory_space<vmem>>, vector<16x16xf32>,
    %cst_13 = arith.constant 0.000000e+00 : f32
    %11 = vector.broadcast %cst_13 : f32 to vector<16x16xf32>
    %c0_14 = arith.constant 0 : index
    %c0_15 = arith.constant 0 : index
    %12 = vector.load %arg9[%c0_14, %c0_15] : memref<16x16xf32, #tpu.memory_space<vmem>>, vector<16x16xf32>
    tpu.vector_store %arg9[%c0_14, %c0_15], %11 {strides = array<i32>} : memref<16x16xf32, #tpu.memory_space<vmem>>, vector<16x16xf32>,
    %cst_16 = arith.constant 0.000000e+00 : f32
    %13 = vector.broadcast %cst_16 : f32 to vector<16x16xf32>
    %c0_17 = arith.constant 0 : index
    %c0_18 = arith.constant 0 : index
    %14 = vector.load %arg10[%c0_17, %c0_18] : memref<16x16xf32, #tpu.memory_space<vmem>>, vector<16x16xf32>
    tpu.vector_store %arg10[%c0_17, %c0_18], %13 {strides = array<i32>} : memref<16x16xf32, #tpu.memory_space<vmem>>, vector<16x16xf32>,
    %c0_19 = arith.constant 0 : index
    %c0_20 = arith.constant 0 : index
    %15 = vector.load %arg2[%c0_19, %c0_20] : memref<16x64xbf16, #tpu.memory_space<vmem>>, vector<16x64xbf16>
    %c0_21 = arith.constant 0 : index
    %c0_22 = arith.constant 0 : index
    %16 = vector.load %arg3[%c0_21, %c0_22] : memref<16x64xbf16, #tpu.memory_space<vmem>>, vector<16x64xbf16>
    %c0_i32 = arith.constant 0 : i32
    %c7_i32 = arith.constant 7 : i32
    %17 = arith.subi %c7_i32, %c0_i32 : i32
    %c16_i32 = arith.constant 16 : i32
    %18 = arith.muli %c0_i32, %c16_i32 : i32
    %19 = tpu.assume_multiple %18, 16 : i32
    %c16_i32_23 = arith.constant 16 : i32
    %20 = arith.muli %17, %c16_i32_23 : i32
    %21 = tpu.assume_multiple %20, 16 : i32
    %22 = arith.index_cast %19 : i32 to index
    %c0_24 = arith.constant 0 : index
    %23 = vector.load %arg6[%22, %c0_24] : memref<128x128xf32, #tpu.memory_space<vmem>>, vector<16x64xf32>
    %c0_25 = arith.constant 0 : index
    %c0_26 = arith.constant 0 : index
    %24 = vector.load %arg7[%c0_25, %c0_26] : memref<16x16xf32, #tpu.memory_space<vmem>>, vector<16x16xf32>
    %25 = arith.truncf %24 : vector<16x16xf32> to vector<16x16xbf16>
    %cst_27 = arith.constant dense<0.000000e+00> : vector<16x64xf32>
    %26 = tpu.matmul %25, %15, %cst_27 {dimension_numbers = #tpu.dot_dimension_numbers<[1], [0], [0], [1], [0, 0, 1, 1], [], []>} : vector<16x16xbf16>, vector<16x64xbf16>, vector<16x64xf32> -> vector<16x64xf32>
    %27 = arith.addf %23, %26 : vector<16x64xf32>
    %c0_28 = arith.constant 0 : index
    %c0_29 = arith.constant 0 : index
    %28 = vector.load %arg8[%c0_28, %c0_29] : memref<16x16xf32, #tpu.memory_space<vmem>>, vector<16x16xf32>
    %29 = vector.extract_strided_slice %27 {offsets = [0, 0], sizes = [16, 16], strides = [1, 1]} : vector<16x64xf32> to vector<16x16xf32>
    %30 = arith.negf %29 : vector<16x16xf32>
    %31 = math.exp %30 : vector<16x16xf32>
    %cst_30 = arith.constant 1.000000e+00 : f32
    %32 = vector.broadcast %cst_30 : f32 to vector<16x16xf32>
    %33 = arith.addf %32, %31 : vector<16x16xf32>
    %34 = arith.divf %32, %33 : vector<16x16xf32>
    %35 = vector.extract_strided_slice %27 {offsets = [0, 16], sizes = [16, 16], strides = [1, 1]} : vector<16x64xf32> to vector<16x16xf32>
    %36 = arith.negf %35 : vector<16x16xf32>
    %37 = math.exp %36 : vector<16x16xf32>
    %cst_31 = arith.constant 1.000000e+00 : f32
    %38 = vector.broadcast %cst_31 : f32 to vector<16x16xf32>
    %39 = arith.addf %38, %37 : vector<16x16xf32>
    %40 = arith.divf %38, %39 : vector<16x16xf32>
    %41 = vector.extract_strided_slice %27 {offsets = [0, 32], sizes = [16, 16], strides = [1, 1]} : vector<16x64xf32> to vector<16x16xf32>
    %42 = math.tanh %41 : vector<16x16xf32>
    %43 = vector.extract_strided_slice %27 {offsets = [0, 48], sizes = [16, 16], strides = [1, 1]} : vector<16x64xf32> to vector<16x16xf32>
    %44 = arith.negf %43 : vector<16x16xf32>
    %45 = math.exp %44 : vector<16x16xf32>
    %cst_32 = arith.constant 1.000000e+00 : f32
    %46 = vector.broadcast %cst_32 : f32 to vector<16x16xf32>
    %47 = arith.addf %46, %45 : vector<16x16xf32>
    %48 = arith.divf %46, %47 : vector<16x16xf32>
    %49 = arith.mulf %40, %28 : vector<16x16xf32>
    %50 = arith.mulf %34, %42 : vector<16x16xf32>
    %51 = arith.addf %49, %50 : vector<16x16xf32>
    %52 = math.tanh %51 : vector<16x16xf32>
    %53 = arith.mulf %48, %52 : vector<16x16xf32>
    %c0_33 = arith.constant 0 : index
    %c0_34 = arith.constant 0 : index
    %54 = vector.load %arg7[%c0_33, %c0_34] : memref<16x16xf32, #tpu.memory_space<vmem>>, vector<16x16xf32>
    tpu.vector_store %arg7[%c0_33, %c0_34], %53 {strides = array<i32>} : memref<16x16xf32, #tpu.memory_space<vmem>>, vector<16x16xf32>,
    %c0_35 = arith.constant 0 : index
    %c0_36 = arith.constant 0 : index
    %55 = vector.load %arg8[%c0_35, %c0_36] : memref<16x16xf32, #tpu.memory_space<vmem>>, vector<16x16xf32>
    tpu.vector_store %arg8[%c0_35, %c0_36], %51 {strides = array<i32>} : memref<16x16xf32, #tpu.memory_space<vmem>>, vector<16x16xf32>,
    %56 = arith.truncf %53 : vector<16x16xf32> to vector<16x16xbf16>
    %c0_37 = arith.constant 0 : index
    %57 = arith.index_cast %c0_i32 : i32 to index
    %c0_38 = arith.constant 0 : index
    %c0_39 = arith.constant 0 : index
    %58 = vector.load %arg5[%c0_37, %57, %c0_38, %c0_39] : memref<2x8x16x16xbf16, #tpu.memory_space<vmem>>, vector<1x1x16x16xbf16>
    %59 = vector.shape_cast %58 : vector<1x1x16x16xbf16> to vector<16x16xbf16>
    %60 = vector.shape_cast %56 : vector<16x16xbf16> to vector<1x1x16x16xbf16>
    tpu.vector_store %arg5[%c0_37, %57, %c0_38, %c0_39], %60 {strides = array<i32>} : memref<2x8x16x16xbf16, #tpu.memory_space<vmem>>, vector<1x1x16x16xbf16>,
    %61 = arith.index_cast %21 : i32 to index
    %c64 = arith.constant 64 : index
    %62 = vector.load %arg6[%61, %c64] : memref<128x128xf32, #tpu.memory_space<vmem>>, vector<16x64xf32>
    %c0_40 = arith.constant 0 : index
    %c0_41 = arith.constant 0 : index
    %63 = vector.load %arg9[%c0_40, %c0_41] : memref<16x16xf32, #tpu.memory_space<vmem>>, vector<16x16xf32>
    %64 = arith.truncf %63 : vector<16x16xf32> to vector<16x16xbf16>
    %cst_42 = arith.constant dense<0.000000e+00> : vector<16x64xf32>
    %65 = tpu.matmul %64, %16, %cst_42 {dimension_numbers = #tpu.dot_dimension_numbers<[1], [0], [0], [1], [0, 0, 1, 1], [], []>} : vector<16x16xbf16>, vector<16x64xbf16>, vector<16x64xf32> -> vector<16x64xf32>
    %66 = arith.addf %62, %65 : vector<16x64xf32>
    %c0_43 = arith.constant 0 : index
    %c0_44 = arith.constant 0 : index
    %67 = vector.load %arg10[%c0_43, %c0_44] : memref<16x16xf32, #tpu.memory_space<vmem>>, vector<16x16xf32>
    %68 = vector.extract_strided_slice %66 {offsets = [0, 0], sizes = [16, 16], strides = [1, 1]} : vector<16x64xf32> to vector<16x16xf32>
    %69 = arith.negf %68 : vector<16x16xf32>
    %70 = math.exp %69 : vector<16x16xf32>
    %cst_45 = arith.constant 1.000000e+00 : f32
    %71 = vector.broadcast %cst_45 : f32 to vector<16x16xf32>
    %72 = arith.addf %71, %70 : vector<16x16xf32>
    %73 = arith.divf %71, %72 : vector<16x16xf32>
    %74 = vector.extract_strided_slice %66 {offsets = [0, 16], sizes = [16, 16], strides = [1, 1]} : vector<16x64xf32> to vector<16x16xf32>
    %75 = arith.negf %74 : vector<16x16xf32>
    %76 = math.exp %75 : vector<16x16xf32>
    %cst_46 = arith.constant 1.000000e+00 : f32
    %77 = vector.broadcast %cst_46 : f32 to vector<16x16xf32>
    %78 = arith.addf %77, %76 : vector<16x16xf32>
    %79 = arith.divf %77, %78 : vector<16x16xf32>
    %80 = vector.extract_strided_slice %66 {offsets = [0, 32], sizes = [16, 16], strides = [1, 1]} : vector<16x64xf32> to vector<16x16xf32>
    %81 = math.tanh %80 : vector<16x16xf32>
    %82 = vector.extract_strided_slice %66 {offsets = [0, 48], sizes = [16, 16], strides = [1, 1]} : vector<16x64xf32> to vector<16x16xf32>
    %83 = arith.negf %82 : vector<16x16xf32>
    %84 = math.exp %83 : vector<16x16xf32>
    %cst_47 = arith.constant 1.000000e+00 : f32
    %85 = vector.broadcast %cst_47 : f32 to vector<16x16xf32>
    %86 = arith.addf %85, %84 : vector<16x16xf32>
    %87 = arith.divf %85, %86 : vector<16x16xf32>
    %88 = arith.mulf %79, %67 : vector<16x16xf32>
    %89 = arith.mulf %73, %81 : vector<16x16xf32>
    %90 = arith.addf %88, %89 : vector<16x16xf32>
    %91 = math.tanh %90 : vector<16x16xf32>
    %92 = arith.mulf %87, %91 : vector<16x16xf32>
    %c0_48 = arith.constant 0 : index
    %c0_49 = arith.constant 0 : index
    %93 = vector.load %arg9[%c0_48, %c0_49] : memref<16x16xf32, #tpu.memory_space<vmem>>, vector<16x16xf32>
    tpu.vector_store %arg9[%c0_48, %c0_49], %92 {strides = array<i32>} : memref<16x16xf32, #tpu.memory_space<vmem>>, vector<16x16xf32>,
    %c0_50 = arith.constant 0 : index
    %c0_51 = arith.constant 0 : index
    %94 = vector.load %arg10[%c0_50, %c0_51] : memref<16x16xf32, #tpu.memory_space<vmem>>, vector<16x16xf32>
    tpu.vector_store %arg10[%c0_50, %c0_51], %90 {strides = array<i32>} : memref<16x16xf32, #tpu.memory_space<vmem>>, vector<16x16xf32>,
    %95 = arith.truncf %92 : vector<16x16xf32> to vector<16x16xbf16>
    %c1 = arith.constant 1 : index
    %96 = arith.index_cast %17 : i32 to index
    %c0_52 = arith.constant 0 : index
    %c0_53 = arith.constant 0 : index
    %97 = vector.load %arg5[%c1, %96, %c0_52, %c0_53] : memref<2x8x16x16xbf16, #tpu.memory_space<vmem>>, vector<1x1x16x16xbf16>
    %98 = vector.shape_cast %97 : vector<1x1x16x16xbf16> to vector<16x16xbf16>
    %99 = vector.shape_cast %95 : vector<16x16xbf16> to vector<1x1x16x16xbf16>
    tpu.vector_store %arg5[%c1, %96, %c0_52, %c0_53], %99 {strides = array<i32>} : memref<2x8x16x16xbf16, #tpu.memory_space<vmem>>, vector<1x1x16x16xbf16>,
    %c1_i32 = arith.constant 1 : i32
    %c7_i32_54 = arith.constant 7 : i32
    %100 = arith.subi %c7_i32_54, %c1_i32 : i32
    %c16_i32_55 = arith.constant 16 : i32
    %101 = arith.muli %c1_i32, %c16_i32_55 : i32
    %102 = tpu.assume_multiple %101, 16 : i32
    %c16_i32_56 = arith.constant 16 : i32
    %103 = arith.muli %100, %c16_i32_56 : i32
    %104 = tpu.assume_multiple %103, 16 : i32
    %105 = arith.index_cast %102 : i32 to index
    %c0_57 = arith.constant 0 : index
    %106 = vector.load %arg6[%105, %c0_57] : memref<128x128xf32, #tpu.memory_space<vmem>>, vector<16x64xf32>
    %c0_58 = arith.constant 0 : index
    %c0_59 = arith.constant 0 : index
    %107 = vector.load %arg7[%c0_58, %c0_59] : memref<16x16xf32, #tpu.memory_space<vmem>>, vector<16x16xf32>
    %108 = arith.truncf %107 : vector<16x16xf32> to vector<16x16xbf16>
    %cst_60 = arith.constant dense<0.000000e+00> : vector<16x64xf32>
    %109 = tpu.matmul %108, %15, %cst_60 {dimension_numbers = #tpu.dot_dimension_numbers<[1], [0], [0], [1], [0, 0, 1, 1], [], []>} : vector<16x16xbf16>, vector<16x64xbf16>, vector<16x64xf32> -> vector<16x64xf32>
    %110 = arith.addf %106, %109 : vector<16x64xf32>
    %c0_61 = arith.constant 0 : index
    %c0_62 = arith.constant 0 : index
    %111 = vector.load %arg8[%c0_61, %c0_62] : memref<16x16xf32, #tpu.memory_space<vmem>>, vector<16x16xf32>
    %112 = vector.extract_strided_slice %110 {offsets = [0, 0], sizes = [16, 16], strides = [1, 1]} : vector<16x64xf32> to vector<16x16xf32>
    %113 = arith.negf %112 : vector<16x16xf32>
    %114 = math.exp %113 : vector<16x16xf32>
    %cst_63 = arith.constant 1.000000e+00 : f32
    %115 = vector.broadcast %cst_63 : f32 to vector<16x16xf32>
    %116 = arith.addf %115, %114 : vector<16x16xf32>
    %117 = arith.divf %115, %116 : vector<16x16xf32>
    %118 = vector.extract_strided_slice %110 {offsets = [0, 16], sizes = [16, 16], strides = [1, 1]} : vector<16x64xf32> to vector<16x16xf32>
    %119 = arith.negf %118 : vector<16x16xf32>
    %120 = math.exp %119 : vector<16x16xf32>
    %cst_64 = arith.constant 1.000000e+00 : f32
    %121 = vector.broadcast %cst_64 : f32 to vector<16x16xf32>
    %122 = arith.addf %121, %120 : vector<16x16xf32>
    %123 = arith.divf %121, %122 : vector<16x16xf32>
    %124 = vector.extract_strided_slice %110 {offsets = [0, 32], sizes = [16, 16], strides = [1, 1]} : vector<16x64xf32> to vector<16x16xf32>
    %125 = math.tanh %124 : vector<16x16xf32>
    %126 = vector.extract_strided_slice %110 {offsets = [0, 48], sizes = [16, 16], strides = [1, 1]} : vector<16x64xf32> to vector<16x16xf32>
    %127 = arith.negf %126 : vector<16x16xf32>
    %128 = math.exp %127 : vector<16x16xf32>
    %cst_65 = arith.constant 1.000000e+00 : f32
    %129 = vector.broadcast %cst_65 : f32 to vector<16x16xf32>
    %130 = arith.addf %129, %128 : vector<16x16xf32>
    %131 = arith.divf %129, %130 : vector<16x16xf32>
    %132 = arith.mulf %123, %111 : vector<16x16xf32>
    %133 = arith.mulf %117, %125 : vector<16x16xf32>
    %134 = arith.addf %132, %133 : vector<16x16xf32>
    %135 = math.tanh %134 : vector<16x16xf32>
    %136 = arith.mulf %131, %135 : vector<16x16xf32>
    %c0_66 = arith.constant 0 : index
    %c0_67 = arith.constant 0 : index
    %137 = vector.load %arg7[%c0_66, %c0_67] : memref<16x16xf32, #tpu.memory_space<vmem>>, vector<16x16xf32>
    tpu.vector_store %arg7[%c0_66, %c0_67], %136 {strides = array<i32>} : memref<16x16xf32, #tpu.memory_space<vmem>>, vector<16x16xf32>,
    %c0_68 = arith.constant 0 : index
    %c0_69 = arith.constant 0 : index
    %138 = vector.load %arg8[%c0_68, %c0_69] : memref<16x16xf32, #tpu.memory_space<vmem>>, vector<16x16xf32>
    tpu.vector_store %arg8[%c0_68, %c0_69], %134 {strides = array<i32>} : memref<16x16xf32, #tpu.memory_space<vmem>>, vector<16x16xf32>,
    %139 = arith.truncf %136 : vector<16x16xf32> to vector<16x16xbf16>
    %c0_70 = arith.constant 0 : index
    %140 = arith.index_cast %c1_i32 : i32 to index
    %c0_71 = arith.constant 0 : index
    %c0_72 = arith.constant 0 : index
    %141 = vector.load %arg5[%c0_70, %140, %c0_71, %c0_72] : memref<2x8x16x16xbf16, #tpu.memory_space<vmem>>, vector<1x1x16x16xbf16>
    %142 = vector.shape_cast %141 : vector<1x1x16x16xbf16> to vector<16x16xbf16>
    %143 = vector.shape_cast %139 : vector<16x16xbf16> to vector<1x1x16x16xbf16>
    tpu.vector_store %arg5[%c0_70, %140, %c0_71, %c0_72], %143 {strides = array<i32>} : memref<2x8x16x16xbf16, #tpu.memory_space<vmem>>, vector<1x1x16x16xbf16>,
    %144 = arith.index_cast %104 : i32 to index
    %c64_73 = arith.constant 64 : index
    %145 = vector.load %arg6[%144, %c64_73] : memref<128x128xf32, #tpu.memory_space<vmem>>, vector<16x64xf32>
    %c0_74 = arith.constant 0 : index
    %c0_75 = arith.constant 0 : index
    %146 = vector.load %arg9[%c0_74, %c0_75] : memref<16x16xf32, #tpu.memory_space<vmem>>, vector<16x16xf32>
    %147 = arith.truncf %146 : vector<16x16xf32> to vector<16x16xbf16>
    %cst_76 = arith.constant dense<0.000000e+00> : vector<16x64xf32>
    %148 = tpu.matmul %147, %16, %cst_76 {dimension_numbers = #tpu.dot_dimension_numbers<[1], [0], [0], [1], [0, 0, 1, 1], [], []>} : vector<16x16xbf16>, vector<16x64xbf16>, vector<16x64xf32> -> vector<16x64xf32>
    %149 = arith.addf %145, %148 : vector<16x64xf32>
    %c0_77 = arith.constant 0 : index
    %c0_78 = arith.constant 0 : index
    %150 = vector.load %arg10[%c0_77, %c0_78] : memref<16x16xf32, #tpu.memory_space<vmem>>, vector<16x16xf32>
    %151 = vector.extract_strided_slice %149 {offsets = [0, 0], sizes = [16, 16], strides = [1, 1]} : vector<16x64xf32> to vector<16x16xf32>
    %152 = arith.negf %151 : vector<16x16xf32>
    %153 = math.exp %152 : vector<16x16xf32>
    %cst_79 = arith.constant 1.000000e+00 : f32
    %154 = vector.broadcast %cst_79 : f32 to vector<16x16xf32>
    %155 = arith.addf %154, %153 : vector<16x16xf32>
    %156 = arith.divf %154, %155 : vector<16x16xf32>
    %157 = vector.extract_strided_slice %149 {offsets = [0, 16], sizes = [16, 16], strides = [1, 1]} : vector<16x64xf32> to vector<16x16xf32>
    %158 = arith.negf %157 : vector<16x16xf32>
    %159 = math.exp %158 : vector<16x16xf32>
    %cst_80 = arith.constant 1.000000e+00 : f32
    %160 = vector.broadcast %cst_80 : f32 to vector<16x16xf32>
    %161 = arith.addf %160, %159 : vector<16x16xf32>
    %162 = arith.divf %160, %161 : vector<16x16xf32>
    %163 = vector.extract_strided_slice %149 {offsets = [0, 32], sizes = [16, 16], strides = [1, 1]} : vector<16x64xf32> to vector<16x16xf32>
    %164 = math.tanh %163 : vector<16x16xf32>
    %165 = vector.extract_strided_slice %149 {offsets = [0, 48], sizes = [16, 16], strides = [1, 1]} : vector<16x64xf32> to vector<16x16xf32>
    %166 = arith.negf %165 : vector<16x16xf32>
    %167 = math.exp %166 : vector<16x16xf32>
    %cst_81 = arith.constant 1.000000e+00 : f32
    %168 = vector.broadcast %cst_81 : f32 to vector<16x16xf32>
    %169 = arith.addf %168, %167 : vector<16x16xf32>
    %170 = arith.divf %168, %169 : vector<16x16xf32>
    %171 = arith.mulf %162, %150 : vector<16x16xf32>
    %172 = arith.mulf %156, %164 : vector<16x16xf32>
    %173 = arith.addf %171, %172 : vector<16x16xf32>
    %174 = math.tanh %173 : vector<16x16xf32>
    %175 = arith.mulf %170, %174 : vector<16x16xf32>
    %c0_82 = arith.constant 0 : index
    %c0_83 = arith.constant 0 : index
    %176 = vector.load %arg9[%c0_82, %c0_83] : memref<16x16xf32, #tpu.memory_space<vmem>>, vector<16x16xf32>
    tpu.vector_store %arg9[%c0_82, %c0_83], %175 {strides = array<i32>} : memref<16x16xf32, #tpu.memory_space<vmem>>, vector<16x16xf32>,
    %c0_84 = arith.constant 0 : index
    %c0_85 = arith.constant 0 : index
    %177 = vector.load %arg10[%c0_84, %c0_85] : memref<16x16xf32, #tpu.memory_space<vmem>>, vector<16x16xf32>
    tpu.vector_store %arg10[%c0_84, %c0_85], %173 {strides = array<i32>} : memref<16x16xf32, #tpu.memory_space<vmem>>, vector<16x16xf32>,
    %178 = arith.truncf %175 : vector<16x16xf32> to vector<16x16xbf16>
    %c1_86 = arith.constant 1 : index
    %179 = arith.index_cast %100 : i32 to index
    %c0_87 = arith.constant 0 : index
    %c0_88 = arith.constant 0 : index
    %180 = vector.load %arg5[%c1_86, %179, %c0_87, %c0_88] : memref<2x8x16x16xbf16, #tpu.memory_space<vmem>>, vector<1x1x16x16xbf16>
    %181 = vector.shape_cast %180 : vector<1x1x16x16xbf16> to vector<16x16xbf16>
    %182 = vector.shape_cast %178 : vector<16x16xbf16> to vector<1x1x16x16xbf16>
    tpu.vector_store %arg5[%c1_86, %179, %c0_87, %c0_88], %182 {strides = array<i32>} : memref<2x8x16x16xbf16, #tpu.memory_space<vmem>>, vector<1x1x16x16xbf16>,
    %c2_i32 = arith.constant 2 : i32
    %c7_i32_89 = arith.constant 7 : i32
    %183 = arith.subi %c7_i32_89, %c2_i32 : i32
    %c16_i32_90 = arith.constant 16 : i32
    %184 = arith.muli %c2_i32, %c16_i32_90 : i32
    %185 = tpu.assume_multiple %184, 16 : i32
    %c16_i32_91 = arith.constant 16 : i32
    %186 = arith.muli %183, %c16_i32_91 : i32
    %187 = tpu.assume_multiple %186, 16 : i32
    %188 = arith.index_cast %185 : i32 to index
    %c0_92 = arith.constant 0 : index
    %189 = vector.load %arg6[%188, %c0_92] : memref<128x128xf32, #tpu.memory_space<vmem>>, vector<16x64xf32>
    %c0_93 = arith.constant 0 : index
    %c0_94 = arith.constant 0 : index
    %190 = vector.load %arg7[%c0_93, %c0_94] : memref<16x16xf32, #tpu.memory_space<vmem>>, vector<16x16xf32>
    %191 = arith.truncf %190 : vector<16x16xf32> to vector<16x16xbf16>
    %cst_95 = arith.constant dense<0.000000e+00> : vector<16x64xf32>
    %192 = tpu.matmul %191, %15, %cst_95 {dimension_numbers = #tpu.dot_dimension_numbers<[1], [0], [0], [1], [0, 0, 1, 1], [], []>} : vector<16x16xbf16>, vector<16x64xbf16>, vector<16x64xf32> -> vector<16x64xf32>
    %193 = arith.addf %189, %192 : vector<16x64xf32>
    %c0_96 = arith.constant 0 : index
    %c0_97 = arith.constant 0 : index
    %194 = vector.load %arg8[%c0_96, %c0_97] : memref<16x16xf32, #tpu.memory_space<vmem>>, vector<16x16xf32>
    %195 = vector.extract_strided_slice %193 {offsets = [0, 0], sizes = [16, 16], strides = [1, 1]} : vector<16x64xf32> to vector<16x16xf32>
    %196 = arith.negf %195 : vector<16x16xf32>
    %197 = math.exp %196 : vector<16x16xf32>
    %cst_98 = arith.constant 1.000000e+00 : f32
    %198 = vector.broadcast %cst_98 : f32 to vector<16x16xf32>
    %199 = arith.addf %198, %197 : vector<16x16xf32>
    %200 = arith.divf %198, %199 : vector<16x16xf32>
    %201 = vector.extract_strided_slice %193 {offsets = [0, 16], sizes = [16, 16], strides = [1, 1]} : vector<16x64xf32> to vector<16x16xf32>
    %202 = arith.negf %201 : vector<16x16xf32>
    %203 = math.exp %202 : vector<16x16xf32>
    %cst_99 = arith.constant 1.000000e+00 : f32
    %204 = vector.broadcast %cst_99 : f32 to vector<16x16xf32>
    %205 = arith.addf %204, %203 : vector<16x16xf32>
    %206 = arith.divf %204, %205 : vector<16x16xf32>
    %207 = vector.extract_strided_slice %193 {offsets = [0, 32], sizes = [16, 16], strides = [1, 1]} : vector<16x64xf32> to vector<16x16xf32>
    %208 = math.tanh %207 : vector<16x16xf32>
    %209 = vector.extract_strided_slice %193 {offsets = [0, 48], sizes = [16, 16], strides = [1, 1]} : vector<16x64xf32> to vector<16x16xf32>
    %210 = arith.negf %209 : vector<16x16xf32>
    %211 = math.exp %210 : vector<16x16xf32>
    %cst_100 = arith.constant 1.000000e+00 : f32
    %212 = vector.broadcast %cst_100 : f32 to vector<16x16xf32>
    %213 = arith.addf %212, %211 : vector<16x16xf32>
    %214 = arith.divf %212, %213 : vector<16x16xf32>
    %215 = arith.mulf %206, %194 : vector<16x16xf32>
    %216 = arith.mulf %200, %208 : vector<16x16xf32>
    %217 = arith.addf %215, %216 : vector<16x16xf32>
    %218 = math.tanh %217 : vector<16x16xf32>
    %219 = arith.mulf %214, %218 : vector<16x16xf32>
    %c0_101 = arith.constant 0 : index
    %c0_102 = arith.constant 0 : index
    %220 = vector.load %arg7[%c0_101, %c0_102] : memref<16x16xf32, #tpu.memory_space<vmem>>, vector<16x16xf32>
    tpu.vector_store %arg7[%c0_101, %c0_102], %219 {strides = array<i32>} : memref<16x16xf32, #tpu.memory_space<vmem>>, vector<16x16xf32>,
    %c0_103 = arith.constant 0 : index
    %c0_104 = arith.constant 0 : index
    %221 = vector.load %arg8[%c0_103, %c0_104] : memref<16x16xf32, #tpu.memory_space<vmem>>, vector<16x16xf32>
    tpu.vector_store %arg8[%c0_103, %c0_104], %217 {strides = array<i32>} : memref<16x16xf32, #tpu.memory_space<vmem>>, vector<16x16xf32>,
    %222 = arith.truncf %219 : vector<16x16xf32> to vector<16x16xbf16>
    %c0_105 = arith.constant 0 : index
    %223 = arith.index_cast %c2_i32 : i32 to index
    %c0_106 = arith.constant 0 : index
    %c0_107 = arith.constant 0 : index
    %224 = vector.load %arg5[%c0_105, %223, %c0_106, %c0_107] : memref<2x8x16x16xbf16, #tpu.memory_space<vmem>>, vector<1x1x16x16xbf16>
    %225 = vector.shape_cast %224 : vector<1x1x16x16xbf16> to vector<16x16xbf16>
    %226 = vector.shape_cast %222 : vector<16x16xbf16> to vector<1x1x16x16xbf16>
    tpu.vector_store %arg5[%c0_105, %223, %c0_106, %c0_107], %226 {strides = array<i32>} : memref<2x8x16x16xbf16, #tpu.memory_space<vmem>>, vector<1x1x16x16xbf16>,
    %227 = arith.index_cast %187 : i32 to index
    %c64_108 = arith.constant 64 : index
    %228 = vector.load %arg6[%227, %c64_108] : memref<128x128xf32, #tpu.memory_space<vmem>>, vector<16x64xf32>
    %c0_109 = arith.constant 0 : index
    %c0_110 = arith.constant 0 : index
    %229 = vector.load %arg9[%c0_109, %c0_110] : memref<16x16xf32, #tpu.memory_space<vmem>>, vector<16x16xf32>
    %230 = arith.truncf %229 : vector<16x16xf32> to vector<16x16xbf16>
    %cst_111 = arith.constant dense<0.000000e+00> : vector<16x64xf32>
    %231 = tpu.matmul %230, %16, %cst_111 {dimension_numbers = #tpu.dot_dimension_numbers<[1], [0], [0], [1], [0, 0, 1, 1], [], []>} : vector<16x16xbf16>, vector<16x64xbf16>, vector<16x64xf32> -> vector<16x64xf32>
    %232 = arith.addf %228, %231 : vector<16x64xf32>
    %c0_112 = arith.constant 0 : index
    %c0_113 = arith.constant 0 : index
    %233 = vector.load %arg10[%c0_112, %c0_113] : memref<16x16xf32, #tpu.memory_space<vmem>>, vector<16x16xf32>
    %234 = vector.extract_strided_slice %232 {offsets = [0, 0], sizes = [16, 16], strides = [1, 1]} : vector<16x64xf32> to vector<16x16xf32>
    %235 = arith.negf %234 : vector<16x16xf32>
    %236 = math.exp %235 : vector<16x16xf32>
    %cst_114 = arith.constant 1.000000e+00 : f32
    %237 = vector.broadcast %cst_114 : f32 to vector<16x16xf32>
    %238 = arith.addf %237, %236 : vector<16x16xf32>
    %239 = arith.divf %237, %238 : vector<16x16xf32>
    %240 = vector.extract_strided_slice %232 {offsets = [0, 16], sizes = [16, 16], strides = [1, 1]} : vector<16x64xf32> to vector<16x16xf32>
    %241 = arith.negf %240 : vector<16x16xf32>
    %242 = math.exp %241 : vector<16x16xf32>
    %cst_115 = arith.constant 1.000000e+00 : f32
    %243 = vector.broadcast %cst_115 : f32 to vector<16x16xf32>
    %244 = arith.addf %243, %242 : vector<16x16xf32>
    %245 = arith.divf %243, %244 : vector<16x16xf32>
    %246 = vector.extract_strided_slice %232 {offsets = [0, 32], sizes = [16, 16], strides = [1, 1]} : vector<16x64xf32> to vector<16x16xf32>
    %247 = math.tanh %246 : vector<16x16xf32>
    %248 = vector.extract_strided_slice %232 {offsets = [0, 48], sizes = [16, 16], strides = [1, 1]} : vector<16x64xf32> to vector<16x16xf32>
    %249 = arith.negf %248 : vector<16x16xf32>
    %250 = math.exp %249 : vector<16x16xf32>
    %cst_116 = arith.constant 1.000000e+00 : f32
    %251 = vector.broadcast %cst_116 : f32 to vector<16x16xf32>
    %252 = arith.addf %251, %250 : vector<16x16xf32>
    %253 = arith.divf %251, %252 : vector<16x16xf32>
    %254 = arith.mulf %245, %233 : vector<16x16xf32>
    %255 = arith.mulf %239, %247 : vector<16x16xf32>
    %256 = arith.addf %254, %255 : vector<16x16xf32>
    %257 = math.tanh %256 : vector<16x16xf32>
    %258 = arith.mulf %253, %257 : vector<16x16xf32>
    %c0_117 = arith.constant 0 : index
    %c0_118 = arith.constant 0 : index
    %259 = vector.load %arg9[%c0_117, %c0_118] : memref<16x16xf32, #tpu.memory_space<vmem>>, vector<16x16xf32>
    tpu.vector_store %arg9[%c0_117, %c0_118], %258 {strides = array<i32>} : memref<16x16xf32, #tpu.memory_space<vmem>>, vector<16x16xf32>,
    %c0_119 = arith.constant 0 : index
    %c0_120 = arith.constant 0 : index
    %260 = vector.load %arg10[%c0_119, %c0_120] : memref<16x16xf32, #tpu.memory_space<vmem>>, vector<16x16xf32>
    tpu.vector_store %arg10[%c0_119, %c0_120], %256 {strides = array<i32>} : memref<16x16xf32, #tpu.memory_space<vmem>>, vector<16x16xf32>,
    %261 = arith.truncf %258 : vector<16x16xf32> to vector<16x16xbf16>
    %c1_121 = arith.constant 1 : index
    %262 = arith.index_cast %183 : i32 to index
    %c0_122 = arith.constant 0 : index
    %c0_123 = arith.constant 0 : index
    %263 = vector.load %arg5[%c1_121, %262, %c0_122, %c0_123] : memref<2x8x16x16xbf16, #tpu.memory_space<vmem>>, vector<1x1x16x16xbf16>
    %264 = vector.shape_cast %263 : vector<1x1x16x16xbf16> to vector<16x16xbf16>
    %265 = vector.shape_cast %261 : vector<16x16xbf16> to vector<1x1x16x16xbf16>
    tpu.vector_store %arg5[%c1_121, %262, %c0_122, %c0_123], %265 {strides = array<i32>} : memref<2x8x16x16xbf16, #tpu.memory_space<vmem>>, vector<1x1x16x16xbf16>,
    %c3_i32 = arith.constant 3 : i32
    %c7_i32_124 = arith.constant 7 : i32
    %266 = arith.subi %c7_i32_124, %c3_i32 : i32
    %c16_i32_125 = arith.constant 16 : i32
    %267 = arith.muli %c3_i32, %c16_i32_125 : i32
    %268 = tpu.assume_multiple %267, 16 : i32
    %c16_i32_126 = arith.constant 16 : i32
    %269 = arith.muli %266, %c16_i32_126 : i32
    %270 = tpu.assume_multiple %269, 16 : i32
    %271 = arith.index_cast %268 : i32 to index
    %c0_127 = arith.constant 0 : index
    %272 = vector.load %arg6[%271, %c0_127] : memref<128x128xf32, #tpu.memory_space<vmem>>, vector<16x64xf32>
    %c0_128 = arith.constant 0 : index
    %c0_129 = arith.constant 0 : index
    %273 = vector.load %arg7[%c0_128, %c0_129] : memref<16x16xf32, #tpu.memory_space<vmem>>, vector<16x16xf32>
    %274 = arith.truncf %273 : vector<16x16xf32> to vector<16x16xbf16>
    %cst_130 = arith.constant dense<0.000000e+00> : vector<16x64xf32>
    %275 = tpu.matmul %274, %15, %cst_130 {dimension_numbers = #tpu.dot_dimension_numbers<[1], [0], [0], [1], [0, 0, 1, 1], [], []>} : vector<16x16xbf16>, vector<16x64xbf16>, vector<16x64xf32> -> vector<16x64xf32>
    %276 = arith.addf %272, %275 : vector<16x64xf32>
    %c0_131 = arith.constant 0 : index
    %c0_132 = arith.constant 0 : index
    %277 = vector.load %arg8[%c0_131, %c0_132] : memref<16x16xf32, #tpu.memory_space<vmem>>, vector<16x16xf32>
    %278 = vector.extract_strided_slice %276 {offsets = [0, 0], sizes = [16, 16], strides = [1, 1]} : vector<16x64xf32> to vector<16x16xf32>
    %279 = arith.negf %278 : vector<16x16xf32>
    %280 = math.exp %279 : vector<16x16xf32>
    %cst_133 = arith.constant 1.000000e+00 : f32
    %281 = vector.broadcast %cst_133 : f32 to vector<16x16xf32>
    %282 = arith.addf %281, %280 : vector<16x16xf32>
    %283 = arith.divf %281, %282 : vector<16x16xf32>
    %284 = vector.extract_strided_slice %276 {offsets = [0, 16], sizes = [16, 16], strides = [1, 1]} : vector<16x64xf32> to vector<16x16xf32>
    %285 = arith.negf %284 : vector<16x16xf32>
    %286 = math.exp %285 : vector<16x16xf32>
    %cst_134 = arith.constant 1.000000e+00 : f32
    %287 = vector.broadcast %cst_134 : f32 to vector<16x16xf32>
    %288 = arith.addf %287, %286 : vector<16x16xf32>
    %289 = arith.divf %287, %288 : vector<16x16xf32>
    %290 = vector.extract_strided_slice %276 {offsets = [0, 32], sizes = [16, 16], strides = [1, 1]} : vector<16x64xf32> to vector<16x16xf32>
    %291 = math.tanh %290 : vector<16x16xf32>
    %292 = vector.extract_strided_slice %276 {offsets = [0, 48], sizes = [16, 16], strides = [1, 1]} : vector<16x64xf32> to vector<16x16xf32>
    %293 = arith.negf %292 : vector<16x16xf32>
    %294 = math.exp %293 : vector<16x16xf32>
    %cst_135 = arith.constant 1.000000e+00 : f32
    %295 = vector.broadcast %cst_135 : f32 to vector<16x16xf32>
    %296 = arith.addf %295, %294 : vector<16x16xf32>
    %297 = arith.divf %295, %296 : vector<16x16xf32>
    %298 = arith.mulf %289, %277 : vector<16x16xf32>
    %299 = arith.mulf %283, %291 : vector<16x16xf32>
    %300 = arith.addf %298, %299 : vector<16x16xf32>
    %301 = math.tanh %300 : vector<16x16xf32>
    %302 = arith.mulf %297, %301 : vector<16x16xf32>
    %c0_136 = arith.constant 0 : index
    %c0_137 = arith.constant 0 : index
    %303 = vector.load %arg7[%c0_136, %c0_137] : memref<16x16xf32, #tpu.memory_space<vmem>>, vector<16x16xf32>
    tpu.vector_store %arg7[%c0_136, %c0_137], %302 {strides = array<i32>} : memref<16x16xf32, #tpu.memory_space<vmem>>, vector<16x16xf32>,
    %c0_138 = arith.constant 0 : index
    %c0_139 = arith.constant 0 : index
    %304 = vector.load %arg8[%c0_138, %c0_139] : memref<16x16xf32, #tpu.memory_space<vmem>>, vector<16x16xf32>
    tpu.vector_store %arg8[%c0_138, %c0_139], %300 {strides = array<i32>} : memref<16x16xf32, #tpu.memory_space<vmem>>, vector<16x16xf32>,
    %305 = arith.truncf %302 : vector<16x16xf32> to vector<16x16xbf16>
    %c0_140 = arith.constant 0 : index
    %306 = arith.index_cast %c3_i32 : i32 to index
    %c0_141 = arith.constant 0 : index
    %c0_142 = arith.constant 0 : index
    %307 = vector.load %arg5[%c0_140, %306, %c0_141, %c0_142] : memref<2x8x16x16xbf16, #tpu.memory_space<vmem>>, vector<1x1x16x16xbf16>
    %308 = vector.shape_cast %307 : vector<1x1x16x16xbf16> to vector<16x16xbf16>
    %309 = vector.shape_cast %305 : vector<16x16xbf16> to vector<1x1x16x16xbf16>
    tpu.vector_store %arg5[%c0_140, %306, %c0_141, %c0_142], %309 {strides = array<i32>} : memref<2x8x16x16xbf16, #tpu.memory_space<vmem>>, vector<1x1x16x16xbf16>,
    %310 = arith.index_cast %270 : i32 to index
    %c64_143 = arith.constant 64 : index
    %311 = vector.load %arg6[%310, %c64_143] : memref<128x128xf32, #tpu.memory_space<vmem>>, vector<16x64xf32>
    %c0_144 = arith.constant 0 : index
    %c0_145 = arith.constant 0 : index
    %312 = vector.load %arg9[%c0_144, %c0_145] : memref<16x16xf32, #tpu.memory_space<vmem>>, vector<16x16xf32>
    %313 = arith.truncf %312 : vector<16x16xf32> to vector<16x16xbf16>
    %cst_146 = arith.constant dense<0.000000e+00> : vector<16x64xf32>
    %314 = tpu.matmul %313, %16, %cst_146 {dimension_numbers = #tpu.dot_dimension_numbers<[1], [0], [0], [1], [0, 0, 1, 1], [], []>} : vector<16x16xbf16>, vector<16x64xbf16>, vector<16x64xf32> -> vector<16x64xf32>
    %315 = arith.addf %311, %314 : vector<16x64xf32>
    %c0_147 = arith.constant 0 : index
    %c0_148 = arith.constant 0 : index
    %316 = vector.load %arg10[%c0_147, %c0_148] : memref<16x16xf32, #tpu.memory_space<vmem>>, vector<16x16xf32>
    %317 = vector.extract_strided_slice %315 {offsets = [0, 0], sizes = [16, 16], strides = [1, 1]} : vector<16x64xf32> to vector<16x16xf32>
    %318 = arith.negf %317 : vector<16x16xf32>
    %319 = math.exp %318 : vector<16x16xf32>
    %cst_149 = arith.constant 1.000000e+00 : f32
    %320 = vector.broadcast %cst_149 : f32 to vector<16x16xf32>
    %321 = arith.addf %320, %319 : vector<16x16xf32>
    %322 = arith.divf %320, %321 : vector<16x16xf32>
    %323 = vector.extract_strided_slice %315 {offsets = [0, 16], sizes = [16, 16], strides = [1, 1]} : vector<16x64xf32> to vector<16x16xf32>
    %324 = arith.negf %323 : vector<16x16xf32>
    %325 = math.exp %324 : vector<16x16xf32>
    %cst_150 = arith.constant 1.000000e+00 : f32
    %326 = vector.broadcast %cst_150 : f32 to vector<16x16xf32>
    %327 = arith.addf %326, %325 : vector<16x16xf32>
    %328 = arith.divf %326, %327 : vector<16x16xf32>
    %329 = vector.extract_strided_slice %315 {offsets = [0, 32], sizes = [16, 16], strides = [1, 1]} : vector<16x64xf32> to vector<16x16xf32>
    %330 = math.tanh %329 : vector<16x16xf32>
    %331 = vector.extract_strided_slice %315 {offsets = [0, 48], sizes = [16, 16], strides = [1, 1]} : vector<16x64xf32> to vector<16x16xf32>
    %332 = arith.negf %331 : vector<16x16xf32>
    %333 = math.exp %332 : vector<16x16xf32>
    %cst_151 = arith.constant 1.000000e+00 : f32
    %334 = vector.broadcast %cst_151 : f32 to vector<16x16xf32>
    %335 = arith.addf %334, %333 : vector<16x16xf32>
    %336 = arith.divf %334, %335 : vector<16x16xf32>
    %337 = arith.mulf %328, %316 : vector<16x16xf32>
    %338 = arith.mulf %322, %330 : vector<16x16xf32>
    %339 = arith.addf %337, %338 : vector<16x16xf32>
    %340 = math.tanh %339 : vector<16x16xf32>
    %341 = arith.mulf %336, %340 : vector<16x16xf32>
    %c0_152 = arith.constant 0 : index
    %c0_153 = arith.constant 0 : index
    %342 = vector.load %arg9[%c0_152, %c0_153] : memref<16x16xf32, #tpu.memory_space<vmem>>, vector<16x16xf32>
    tpu.vector_store %arg9[%c0_152, %c0_153], %341 {strides = array<i32>} : memref<16x16xf32, #tpu.memory_space<vmem>>, vector<16x16xf32>,
    %c0_154 = arith.constant 0 : index
    %c0_155 = arith.constant 0 : index
    %343 = vector.load %arg10[%c0_154, %c0_155] : memref<16x16xf32, #tpu.memory_space<vmem>>, vector<16x16xf32>
    tpu.vector_store %arg10[%c0_154, %c0_155], %339 {strides = array<i32>} : memref<16x16xf32, #tpu.memory_space<vmem>>, vector<16x16xf32>,
    %344 = arith.truncf %341 : vector<16x16xf32> to vector<16x16xbf16>
    %c1_156 = arith.constant 1 : index
    %345 = arith.index_cast %266 : i32 to index
    %c0_157 = arith.constant 0 : index
    %c0_158 = arith.constant 0 : index
    %346 = vector.load %arg5[%c1_156, %345, %c0_157, %c0_158] : memref<2x8x16x16xbf16, #tpu.memory_space<vmem>>, vector<1x1x16x16xbf16>
    %347 = vector.shape_cast %346 : vector<1x1x16x16xbf16> to vector<16x16xbf16>
    %348 = vector.shape_cast %344 : vector<16x16xbf16> to vector<1x1x16x16xbf16>
    tpu.vector_store %arg5[%c1_156, %345, %c0_157, %c0_158], %348 {strides = array<i32>} : memref<2x8x16x16xbf16, #tpu.memory_space<vmem>>, vector<1x1x16x16xbf16>,
    %c4_i32 = arith.constant 4 : i32
    %c7_i32_159 = arith.constant 7 : i32
    %349 = arith.subi %c7_i32_159, %c4_i32 : i32
    %c16_i32_160 = arith.constant 16 : i32
    %350 = arith.muli %c4_i32, %c16_i32_160 : i32
    %351 = tpu.assume_multiple %350, 16 : i32
    %c16_i32_161 = arith.constant 16 : i32
    %352 = arith.muli %349, %c16_i32_161 : i32
    %353 = tpu.assume_multiple %352, 16 : i32
    %354 = arith.index_cast %351 : i32 to index
    %c0_162 = arith.constant 0 : index
    %355 = vector.load %arg6[%354, %c0_162] : memref<128x128xf32, #tpu.memory_space<vmem>>, vector<16x64xf32>
    %c0_163 = arith.constant 0 : index
    %c0_164 = arith.constant 0 : index
    %356 = vector.load %arg7[%c0_163, %c0_164] : memref<16x16xf32, #tpu.memory_space<vmem>>, vector<16x16xf32>
    %357 = arith.truncf %356 : vector<16x16xf32> to vector<16x16xbf16>
    %cst_165 = arith.constant dense<0.000000e+00> : vector<16x64xf32>
    %358 = tpu.matmul %357, %15, %cst_165 {dimension_numbers = #tpu.dot_dimension_numbers<[1], [0], [0], [1], [0, 0, 1, 1], [], []>} : vector<16x16xbf16>, vector<16x64xbf16>, vector<16x64xf32> -> vector<16x64xf32>
    %359 = arith.addf %355, %358 : vector<16x64xf32>
    %c0_166 = arith.constant 0 : index
    %c0_167 = arith.constant 0 : index
    %360 = vector.load %arg8[%c0_166, %c0_167] : memref<16x16xf32, #tpu.memory_space<vmem>>, vector<16x16xf32>
    %361 = vector.extract_strided_slice %359 {offsets = [0, 0], sizes = [16, 16], strides = [1, 1]} : vector<16x64xf32> to vector<16x16xf32>
    %362 = arith.negf %361 : vector<16x16xf32>
    %363 = math.exp %362 : vector<16x16xf32>
    %cst_168 = arith.constant 1.000000e+00 : f32
    %364 = vector.broadcast %cst_168 : f32 to vector<16x16xf32>
    %365 = arith.addf %364, %363 : vector<16x16xf32>
    %366 = arith.divf %364, %365 : vector<16x16xf32>
    %367 = vector.extract_strided_slice %359 {offsets = [0, 16], sizes = [16, 16], strides = [1, 1]} : vector<16x64xf32> to vector<16x16xf32>
    %368 = arith.negf %367 : vector<16x16xf32>
    %369 = math.exp %368 : vector<16x16xf32>
    %cst_169 = arith.constant 1.000000e+00 : f32
    %370 = vector.broadcast %cst_169 : f32 to vector<16x16xf32>
    %371 = arith.addf %370, %369 : vector<16x16xf32>
    %372 = arith.divf %370, %371 : vector<16x16xf32>
    %373 = vector.extract_strided_slice %359 {offsets = [0, 32], sizes = [16, 16], strides = [1, 1]} : vector<16x64xf32> to vector<16x16xf32>
    %374 = math.tanh %373 : vector<16x16xf32>
    %375 = vector.extract_strided_slice %359 {offsets = [0, 48], sizes = [16, 16], strides = [1, 1]} : vector<16x64xf32> to vector<16x16xf32>
    %376 = arith.negf %375 : vector<16x16xf32>
    %377 = math.exp %376 : vector<16x16xf32>
    %cst_170 = arith.constant 1.000000e+00 : f32
    %378 = vector.broadcast %cst_170 : f32 to vector<16x16xf32>
    %379 = arith.addf %378, %377 : vector<16x16xf32>
    %380 = arith.divf %378, %379 : vector<16x16xf32>
    %381 = arith.mulf %372, %360 : vector<16x16xf32>
    %382 = arith.mulf %366, %374 : vector<16x16xf32>
    %383 = arith.addf %381, %382 : vector<16x16xf32>
    %384 = math.tanh %383 : vector<16x16xf32>
    %385 = arith.mulf %380, %384 : vector<16x16xf32>
    %c0_171 = arith.constant 0 : index
    %c0_172 = arith.constant 0 : index
    %386 = vector.load %arg7[%c0_171, %c0_172] : memref<16x16xf32, #tpu.memory_space<vmem>>, vector<16x16xf32>
    tpu.vector_store %arg7[%c0_171, %c0_172], %385 {strides = array<i32>} : memref<16x16xf32, #tpu.memory_space<vmem>>, vector<16x16xf32>,
    %c0_173 = arith.constant 0 : index
    %c0_174 = arith.constant 0 : index
    %387 = vector.load %arg8[%c0_173, %c0_174] : memref<16x16xf32, #tpu.memory_space<vmem>>, vector<16x16xf32>
    tpu.vector_store %arg8[%c0_173, %c0_174], %383 {strides = array<i32>} : memref<16x16xf32, #tpu.memory_space<vmem>>, vector<16x16xf32>,
    %388 = arith.truncf %385 : vector<16x16xf32> to vector<16x16xbf16>
    %c0_175 = arith.constant 0 : index
    %389 = arith.index_cast %c4_i32 : i32 to index
    %c0_176 = arith.constant 0 : index
    %c0_177 = arith.constant 0 : index
    %390 = vector.load %arg5[%c0_175, %389, %c0_176, %c0_177] : memref<2x8x16x16xbf16, #tpu.memory_space<vmem>>, vector<1x1x16x16xbf16>
    %391 = vector.shape_cast %390 : vector<1x1x16x16xbf16> to vector<16x16xbf16>
    %392 = vector.shape_cast %388 : vector<16x16xbf16> to vector<1x1x16x16xbf16>
    tpu.vector_store %arg5[%c0_175, %389, %c0_176, %c0_177], %392 {strides = array<i32>} : memref<2x8x16x16xbf16, #tpu.memory_space<vmem>>, vector<1x1x16x16xbf16>,
    %393 = arith.index_cast %353 : i32 to index
    %c64_178 = arith.constant 64 : index
    %394 = vector.load %arg6[%393, %c64_178] : memref<128x128xf32, #tpu.memory_space<vmem>>, vector<16x64xf32>
    %c0_179 = arith.constant 0 : index
    %c0_180 = arith.constant 0 : index
    %395 = vector.load %arg9[%c0_179, %c0_180] : memref<16x16xf32, #tpu.memory_space<vmem>>, vector<16x16xf32>
    %396 = arith.truncf %395 : vector<16x16xf32> to vector<16x16xbf16>
    %cst_181 = arith.constant dense<0.000000e+00> : vector<16x64xf32>
    %397 = tpu.matmul %396, %16, %cst_181 {dimension_numbers = #tpu.dot_dimension_numbers<[1], [0], [0], [1], [0, 0, 1, 1], [], []>} : vector<16x16xbf16>, vector<16x64xbf16>, vector<16x64xf32> -> vector<16x64xf32>
    %398 = arith.addf %394, %397 : vector<16x64xf32>
    %c0_182 = arith.constant 0 : index
    %c0_183 = arith.constant 0 : index
    %399 = vector.load %arg10[%c0_182, %c0_183] : memref<16x16xf32, #tpu.memory_space<vmem>>, vector<16x16xf32>
    %400 = vector.extract_strided_slice %398 {offsets = [0, 0], sizes = [16, 16], strides = [1, 1]} : vector<16x64xf32> to vector<16x16xf32>
    %401 = arith.negf %400 : vector<16x16xf32>
    %402 = math.exp %401 : vector<16x16xf32>
    %cst_184 = arith.constant 1.000000e+00 : f32
    %403 = vector.broadcast %cst_184 : f32 to vector<16x16xf32>
    %404 = arith.addf %403, %402 : vector<16x16xf32>
    %405 = arith.divf %403, %404 : vector<16x16xf32>
    %406 = vector.extract_strided_slice %398 {offsets = [0, 16], sizes = [16, 16], strides = [1, 1]} : vector<16x64xf32> to vector<16x16xf32>
    %407 = arith.negf %406 : vector<16x16xf32>
    %408 = math.exp %407 : vector<16x16xf32>
    %cst_185 = arith.constant 1.000000e+00 : f32
    %409 = vector.broadcast %cst_185 : f32 to vector<16x16xf32>
    %410 = arith.addf %409, %408 : vector<16x16xf32>
    %411 = arith.divf %409, %410 : vector<16x16xf32>
    %412 = vector.extract_strided_slice %398 {offsets = [0, 32], sizes = [16, 16], strides = [1, 1]} : vector<16x64xf32> to vector<16x16xf32>
    %413 = math.tanh %412 : vector<16x16xf32>
    %414 = vector.extract_strided_slice %398 {offsets = [0, 48], sizes = [16, 16], strides = [1, 1]} : vector<16x64xf32> to vector<16x16xf32>
    %415 = arith.negf %414 : vector<16x16xf32>
    %416 = math.exp %415 : vector<16x16xf32>
    %cst_186 = arith.constant 1.000000e+00 : f32
    %417 = vector.broadcast %cst_186 : f32 to vector<16x16xf32>
    %418 = arith.addf %417, %416 : vector<16x16xf32>
    %419 = arith.divf %417, %418 : vector<16x16xf32>
    %420 = arith.mulf %411, %399 : vector<16x16xf32>
    %421 = arith.mulf %405, %413 : vector<16x16xf32>
    %422 = arith.addf %420, %421 : vector<16x16xf32>
    %423 = math.tanh %422 : vector<16x16xf32>
    %424 = arith.mulf %419, %423 : vector<16x16xf32>
    %c0_187 = arith.constant 0 : index
    %c0_188 = arith.constant 0 : index
    %425 = vector.load %arg9[%c0_187, %c0_188] : memref<16x16xf32, #tpu.memory_space<vmem>>, vector<16x16xf32>
    tpu.vector_store %arg9[%c0_187, %c0_188], %424 {strides = array<i32>} : memref<16x16xf32, #tpu.memory_space<vmem>>, vector<16x16xf32>,
    %c0_189 = arith.constant 0 : index
    %c0_190 = arith.constant 0 : index
    %426 = vector.load %arg10[%c0_189, %c0_190] : memref<16x16xf32, #tpu.memory_space<vmem>>, vector<16x16xf32>
    tpu.vector_store %arg10[%c0_189, %c0_190], %422 {strides = array<i32>} : memref<16x16xf32, #tpu.memory_space<vmem>>, vector<16x16xf32>,
    %427 = arith.truncf %424 : vector<16x16xf32> to vector<16x16xbf16>
    %c1_191 = arith.constant 1 : index
    %428 = arith.index_cast %349 : i32 to index
    %c0_192 = arith.constant 0 : index
    %c0_193 = arith.constant 0 : index
    %429 = vector.load %arg5[%c1_191, %428, %c0_192, %c0_193] : memref<2x8x16x16xbf16, #tpu.memory_space<vmem>>, vector<1x1x16x16xbf16>
    %430 = vector.shape_cast %429 : vector<1x1x16x16xbf16> to vector<16x16xbf16>
    %431 = vector.shape_cast %427 : vector<16x16xbf16> to vector<1x1x16x16xbf16>
    tpu.vector_store %arg5[%c1_191, %428, %c0_192, %c0_193], %431 {strides = array<i32>} : memref<2x8x16x16xbf16, #tpu.memory_space<vmem>>, vector<1x1x16x16xbf16>,
    %c5_i32 = arith.constant 5 : i32
    %c7_i32_194 = arith.constant 7 : i32
    %432 = arith.subi %c7_i32_194, %c5_i32 : i32
    %c16_i32_195 = arith.constant 16 : i32
    %433 = arith.muli %c5_i32, %c16_i32_195 : i32
    %434 = tpu.assume_multiple %433, 16 : i32
    %c16_i32_196 = arith.constant 16 : i32
    %435 = arith.muli %432, %c16_i32_196 : i32
    %436 = tpu.assume_multiple %435, 16 : i32
    %437 = arith.index_cast %434 : i32 to index
    %c0_197 = arith.constant 0 : index
    %438 = vector.load %arg6[%437, %c0_197] : memref<128x128xf32, #tpu.memory_space<vmem>>, vector<16x64xf32>
    %c0_198 = arith.constant 0 : index
    %c0_199 = arith.constant 0 : index
    %439 = vector.load %arg7[%c0_198, %c0_199] : memref<16x16xf32, #tpu.memory_space<vmem>>, vector<16x16xf32>
    %440 = arith.truncf %439 : vector<16x16xf32> to vector<16x16xbf16>
    %cst_200 = arith.constant dense<0.000000e+00> : vector<16x64xf32>
    %441 = tpu.matmul %440, %15, %cst_200 {dimension_numbers = #tpu.dot_dimension_numbers<[1], [0], [0], [1], [0, 0, 1, 1], [], []>} : vector<16x16xbf16>, vector<16x64xbf16>, vector<16x64xf32> -> vector<16x64xf32>
    %442 = arith.addf %438, %441 : vector<16x64xf32>
    %c0_201 = arith.constant 0 : index
    %c0_202 = arith.constant 0 : index
    %443 = vector.load %arg8[%c0_201, %c0_202] : memref<16x16xf32, #tpu.memory_space<vmem>>, vector<16x16xf32>
    %444 = vector.extract_strided_slice %442 {offsets = [0, 0], sizes = [16, 16], strides = [1, 1]} : vector<16x64xf32> to vector<16x16xf32>
    %445 = arith.negf %444 : vector<16x16xf32>
    %446 = math.exp %445 : vector<16x16xf32>
    %cst_203 = arith.constant 1.000000e+00 : f32
    %447 = vector.broadcast %cst_203 : f32 to vector<16x16xf32>
    %448 = arith.addf %447, %446 : vector<16x16xf32>
    %449 = arith.divf %447, %448 : vector<16x16xf32>
    %450 = vector.extract_strided_slice %442 {offsets = [0, 16], sizes = [16, 16], strides = [1, 1]} : vector<16x64xf32> to vector<16x16xf32>
    %451 = arith.negf %450 : vector<16x16xf32>
    %452 = math.exp %451 : vector<16x16xf32>
    %cst_204 = arith.constant 1.000000e+00 : f32
    %453 = vector.broadcast %cst_204 : f32 to vector<16x16xf32>
    %454 = arith.addf %453, %452 : vector<16x16xf32>
    %455 = arith.divf %453, %454 : vector<16x16xf32>
    %456 = vector.extract_strided_slice %442 {offsets = [0, 32], sizes = [16, 16], strides = [1, 1]} : vector<16x64xf32> to vector<16x16xf32>
    %457 = math.tanh %456 : vector<16x16xf32>
    %458 = vector.extract_strided_slice %442 {offsets = [0, 48], sizes = [16, 16], strides = [1, 1]} : vector<16x64xf32> to vector<16x16xf32>
    %459 = arith.negf %458 : vector<16x16xf32>
    %460 = math.exp %459 : vector<16x16xf32>
    %cst_205 = arith.constant 1.000000e+00 : f32
    %461 = vector.broadcast %cst_205 : f32 to vector<16x16xf32>
    %462 = arith.addf %461, %460 : vector<16x16xf32>
    %463 = arith.divf %461, %462 : vector<16x16xf32>
    %464 = arith.mulf %455, %443 : vector<16x16xf32>
    %465 = arith.mulf %449, %457 : vector<16x16xf32>
    %466 = arith.addf %464, %465 : vector<16x16xf32>
    %467 = math.tanh %466 : vector<16x16xf32>
    %468 = arith.mulf %463, %467 : vector<16x16xf32>
    %c0_206 = arith.constant 0 : index
    %c0_207 = arith.constant 0 : index
    %469 = vector.load %arg7[%c0_206, %c0_207] : memref<16x16xf32, #tpu.memory_space<vmem>>, vector<16x16xf32>
    tpu.vector_store %arg7[%c0_206, %c0_207], %468 {strides = array<i32>} : memref<16x16xf32, #tpu.memory_space<vmem>>, vector<16x16xf32>,
    %c0_208 = arith.constant 0 : index
    %c0_209 = arith.constant 0 : index
    %470 = vector.load %arg8[%c0_208, %c0_209] : memref<16x16xf32, #tpu.memory_space<vmem>>, vector<16x16xf32>
    tpu.vector_store %arg8[%c0_208, %c0_209], %466 {strides = array<i32>} : memref<16x16xf32, #tpu.memory_space<vmem>>, vector<16x16xf32>,
    %471 = arith.truncf %468 : vector<16x16xf32> to vector<16x16xbf16>
    %c0_210 = arith.constant 0 : index
    %472 = arith.index_cast %c5_i32 : i32 to index
    %c0_211 = arith.constant 0 : index
    %c0_212 = arith.constant 0 : index
    %473 = vector.load %arg5[%c0_210, %472, %c0_211, %c0_212] : memref<2x8x16x16xbf16, #tpu.memory_space<vmem>>, vector<1x1x16x16xbf16>
    %474 = vector.shape_cast %473 : vector<1x1x16x16xbf16> to vector<16x16xbf16>
    %475 = vector.shape_cast %471 : vector<16x16xbf16> to vector<1x1x16x16xbf16>
    tpu.vector_store %arg5[%c0_210, %472, %c0_211, %c0_212], %475 {strides = array<i32>} : memref<2x8x16x16xbf16, #tpu.memory_space<vmem>>, vector<1x1x16x16xbf16>,
    %476 = arith.index_cast %436 : i32 to index
    %c64_213 = arith.constant 64 : index
    %477 = vector.load %arg6[%476, %c64_213] : memref<128x128xf32, #tpu.memory_space<vmem>>, vector<16x64xf32>
    %c0_214 = arith.constant 0 : index
    %c0_215 = arith.constant 0 : index
    %478 = vector.load %arg9[%c0_214, %c0_215] : memref<16x16xf32, #tpu.memory_space<vmem>>, vector<16x16xf32>
    %479 = arith.truncf %478 : vector<16x16xf32> to vector<16x16xbf16>
    %cst_216 = arith.constant dense<0.000000e+00> : vector<16x64xf32>
    %480 = tpu.matmul %479, %16, %cst_216 {dimension_numbers = #tpu.dot_dimension_numbers<[1], [0], [0], [1], [0, 0, 1, 1], [], []>} : vector<16x16xbf16>, vector<16x64xbf16>, vector<16x64xf32> -> vector<16x64xf32>
    %481 = arith.addf %477, %480 : vector<16x64xf32>
    %c0_217 = arith.constant 0 : index
    %c0_218 = arith.constant 0 : index
    %482 = vector.load %arg10[%c0_217, %c0_218] : memref<16x16xf32, #tpu.memory_space<vmem>>, vector<16x16xf32>
    %483 = vector.extract_strided_slice %481 {offsets = [0, 0], sizes = [16, 16], strides = [1, 1]} : vector<16x64xf32> to vector<16x16xf32>
    %484 = arith.negf %483 : vector<16x16xf32>
    %485 = math.exp %484 : vector<16x16xf32>
    %cst_219 = arith.constant 1.000000e+00 : f32
    %486 = vector.broadcast %cst_219 : f32 to vector<16x16xf32>
    %487 = arith.addf %486, %485 : vector<16x16xf32>
    %488 = arith.divf %486, %487 : vector<16x16xf32>
    %489 = vector.extract_strided_slice %481 {offsets = [0, 16], sizes = [16, 16], strides = [1, 1]} : vector<16x64xf32> to vector<16x16xf32>
    %490 = arith.negf %489 : vector<16x16xf32>
    %491 = math.exp %490 : vector<16x16xf32>
    %cst_220 = arith.constant 1.000000e+00 : f32
    %492 = vector.broadcast %cst_220 : f32 to vector<16x16xf32>
    %493 = arith.addf %492, %491 : vector<16x16xf32>
    %494 = arith.divf %492, %493 : vector<16x16xf32>
    %495 = vector.extract_strided_slice %481 {offsets = [0, 32], sizes = [16, 16], strides = [1, 1]} : vector<16x64xf32> to vector<16x16xf32>
    %496 = math.tanh %495 : vector<16x16xf32>
    %497 = vector.extract_strided_slice %481 {offsets = [0, 48], sizes = [16, 16], strides = [1, 1]} : vector<16x64xf32> to vector<16x16xf32>
    %498 = arith.negf %497 : vector<16x16xf32>
    %499 = math.exp %498 : vector<16x16xf32>
    %cst_221 = arith.constant 1.000000e+00 : f32
    %500 = vector.broadcast %cst_221 : f32 to vector<16x16xf32>
    %501 = arith.addf %500, %499 : vector<16x16xf32>
    %502 = arith.divf %500, %501 : vector<16x16xf32>
    %503 = arith.mulf %494, %482 : vector<16x16xf32>
    %504 = arith.mulf %488, %496 : vector<16x16xf32>
    %505 = arith.addf %503, %504 : vector<16x16xf32>
    %506 = math.tanh %505 : vector<16x16xf32>
    %507 = arith.mulf %502, %506 : vector<16x16xf32>
    %c0_222 = arith.constant 0 : index
    %c0_223 = arith.constant 0 : index
    %508 = vector.load %arg9[%c0_222, %c0_223] : memref<16x16xf32, #tpu.memory_space<vmem>>, vector<16x16xf32>
    tpu.vector_store %arg9[%c0_222, %c0_223], %507 {strides = array<i32>} : memref<16x16xf32, #tpu.memory_space<vmem>>, vector<16x16xf32>,
    %c0_224 = arith.constant 0 : index
    %c0_225 = arith.constant 0 : index
    %509 = vector.load %arg10[%c0_224, %c0_225] : memref<16x16xf32, #tpu.memory_space<vmem>>, vector<16x16xf32>
    tpu.vector_store %arg10[%c0_224, %c0_225], %505 {strides = array<i32>} : memref<16x16xf32, #tpu.memory_space<vmem>>, vector<16x16xf32>,
    %510 = arith.truncf %507 : vector<16x16xf32> to vector<16x16xbf16>
    %c1_226 = arith.constant 1 : index
    %511 = arith.index_cast %432 : i32 to index
    %c0_227 = arith.constant 0 : index
    %c0_228 = arith.constant 0 : index
    %512 = vector.load %arg5[%c1_226, %511, %c0_227, %c0_228] : memref<2x8x16x16xbf16, #tpu.memory_space<vmem>>, vector<1x1x16x16xbf16>
    %513 = vector.shape_cast %512 : vector<1x1x16x16xbf16> to vector<16x16xbf16>
    %514 = vector.shape_cast %510 : vector<16x16xbf16> to vector<1x1x16x16xbf16>
    tpu.vector_store %arg5[%c1_226, %511, %c0_227, %c0_228], %514 {strides = array<i32>} : memref<2x8x16x16xbf16, #tpu.memory_space<vmem>>, vector<1x1x16x16xbf16>,
    %c6_i32 = arith.constant 6 : i32
    %c7_i32_229 = arith.constant 7 : i32
    %515 = arith.subi %c7_i32_229, %c6_i32 : i32
    %c16_i32_230 = arith.constant 16 : i32
    %516 = arith.muli %c6_i32, %c16_i32_230 : i32
    %517 = tpu.assume_multiple %516, 16 : i32
    %c16_i32_231 = arith.constant 16 : i32
    %518 = arith.muli %515, %c16_i32_231 : i32
    %519 = tpu.assume_multiple %518, 16 : i32
    %520 = arith.index_cast %517 : i32 to index
    %c0_232 = arith.constant 0 : index
    %521 = vector.load %arg6[%520, %c0_232] : memref<128x128xf32, #tpu.memory_space<vmem>>, vector<16x64xf32>
    %c0_233 = arith.constant 0 : index
    %c0_234 = arith.constant 0 : index
    %522 = vector.load %arg7[%c0_233, %c0_234] : memref<16x16xf32, #tpu.memory_space<vmem>>, vector<16x16xf32>
    %523 = arith.truncf %522 : vector<16x16xf32> to vector<16x16xbf16>
    %cst_235 = arith.constant dense<0.000000e+00> : vector<16x64xf32>
    %524 = tpu.matmul %523, %15, %cst_235 {dimension_numbers = #tpu.dot_dimension_numbers<[1], [0], [0], [1], [0, 0, 1, 1], [], []>} : vector<16x16xbf16>, vector<16x64xbf16>, vector<16x64xf32> -> vector<16x64xf32>
    %525 = arith.addf %521, %524 : vector<16x64xf32>
    %c0_236 = arith.constant 0 : index
    %c0_237 = arith.constant 0 : index
    %526 = vector.load %arg8[%c0_236, %c0_237] : memref<16x16xf32, #tpu.memory_space<vmem>>, vector<16x16xf32>
    %527 = vector.extract_strided_slice %525 {offsets = [0, 0], sizes = [16, 16], strides = [1, 1]} : vector<16x64xf32> to vector<16x16xf32>
    %528 = arith.negf %527 : vector<16x16xf32>
    %529 = math.exp %528 : vector<16x16xf32>
    %cst_238 = arith.constant 1.000000e+00 : f32
    %530 = vector.broadcast %cst_238 : f32 to vector<16x16xf32>
    %531 = arith.addf %530, %529 : vector<16x16xf32>
    %532 = arith.divf %530, %531 : vector<16x16xf32>
    %533 = vector.extract_strided_slice %525 {offsets = [0, 16], sizes = [16, 16], strides = [1, 1]} : vector<16x64xf32> to vector<16x16xf32>
    %534 = arith.negf %533 : vector<16x16xf32>
    %535 = math.exp %534 : vector<16x16xf32>
    %cst_239 = arith.constant 1.000000e+00 : f32
    %536 = vector.broadcast %cst_239 : f32 to vector<16x16xf32>
    %537 = arith.addf %536, %535 : vector<16x16xf32>
    %538 = arith.divf %536, %537 : vector<16x16xf32>
    %539 = vector.extract_strided_slice %525 {offsets = [0, 32], sizes = [16, 16], strides = [1, 1]} : vector<16x64xf32> to vector<16x16xf32>
    %540 = math.tanh %539 : vector<16x16xf32>
    %541 = vector.extract_strided_slice %525 {offsets = [0, 48], sizes = [16, 16], strides = [1, 1]} : vector<16x64xf32> to vector<16x16xf32>
    %542 = arith.negf %541 : vector<16x16xf32>
    %543 = math.exp %542 : vector<16x16xf32>
    %cst_240 = arith.constant 1.000000e+00 : f32
    %544 = vector.broadcast %cst_240 : f32 to vector<16x16xf32>
    %545 = arith.addf %544, %543 : vector<16x16xf32>
    %546 = arith.divf %544, %545 : vector<16x16xf32>
    %547 = arith.mulf %538, %526 : vector<16x16xf32>
    %548 = arith.mulf %532, %540 : vector<16x16xf32>
    %549 = arith.addf %547, %548 : vector<16x16xf32>
    %550 = math.tanh %549 : vector<16x16xf32>
    %551 = arith.mulf %546, %550 : vector<16x16xf32>
    %c0_241 = arith.constant 0 : index
    %c0_242 = arith.constant 0 : index
    %552 = vector.load %arg7[%c0_241, %c0_242] : memref<16x16xf32, #tpu.memory_space<vmem>>, vector<16x16xf32>
    tpu.vector_store %arg7[%c0_241, %c0_242], %551 {strides = array<i32>} : memref<16x16xf32, #tpu.memory_space<vmem>>, vector<16x16xf32>,
    %c0_243 = arith.constant 0 : index
    %c0_244 = arith.constant 0 : index
    %553 = vector.load %arg8[%c0_243, %c0_244] : memref<16x16xf32, #tpu.memory_space<vmem>>, vector<16x16xf32>
    tpu.vector_store %arg8[%c0_243, %c0_244], %549 {strides = array<i32>} : memref<16x16xf32, #tpu.memory_space<vmem>>, vector<16x16xf32>,
    %554 = arith.truncf %551 : vector<16x16xf32> to vector<16x16xbf16>
    %c0_245 = arith.constant 0 : index
    %555 = arith.index_cast %c6_i32 : i32 to index
    %c0_246 = arith.constant 0 : index
    %c0_247 = arith.constant 0 : index
    %556 = vector.load %arg5[%c0_245, %555, %c0_246, %c0_247] : memref<2x8x16x16xbf16, #tpu.memory_space<vmem>>, vector<1x1x16x16xbf16>
    %557 = vector.shape_cast %556 : vector<1x1x16x16xbf16> to vector<16x16xbf16>
    %558 = vector.shape_cast %554 : vector<16x16xbf16> to vector<1x1x16x16xbf16>
    tpu.vector_store %arg5[%c0_245, %555, %c0_246, %c0_247], %558 {strides = array<i32>} : memref<2x8x16x16xbf16, #tpu.memory_space<vmem>>, vector<1x1x16x16xbf16>,
    %559 = arith.index_cast %519 : i32 to index
    %c64_248 = arith.constant 64 : index
    %560 = vector.load %arg6[%559, %c64_248] : memref<128x128xf32, #tpu.memory_space<vmem>>, vector<16x64xf32>
    %c0_249 = arith.constant 0 : index
    %c0_250 = arith.constant 0 : index
    %561 = vector.load %arg9[%c0_249, %c0_250] : memref<16x16xf32, #tpu.memory_space<vmem>>, vector<16x16xf32>
    %562 = arith.truncf %561 : vector<16x16xf32> to vector<16x16xbf16>
    %cst_251 = arith.constant dense<0.000000e+00> : vector<16x64xf32>
    %563 = tpu.matmul %562, %16, %cst_251 {dimension_numbers = #tpu.dot_dimension_numbers<[1], [0], [0], [1], [0, 0, 1, 1], [], []>} : vector<16x16xbf16>, vector<16x64xbf16>, vector<16x64xf32> -> vector<16x64xf32>
    %564 = arith.addf %560, %563 : vector<16x64xf32>
    %c0_252 = arith.constant 0 : index
    %c0_253 = arith.constant 0 : index
    %565 = vector.load %arg10[%c0_252, %c0_253] : memref<16x16xf32, #tpu.memory_space<vmem>>, vector<16x16xf32>
    %566 = vector.extract_strided_slice %564 {offsets = [0, 0], sizes = [16, 16], strides = [1, 1]} : vector<16x64xf32> to vector<16x16xf32>
    %567 = arith.negf %566 : vector<16x16xf32>
    %568 = math.exp %567 : vector<16x16xf32>
    %cst_254 = arith.constant 1.000000e+00 : f32
    %569 = vector.broadcast %cst_254 : f32 to vector<16x16xf32>
    %570 = arith.addf %569, %568 : vector<16x16xf32>
    %571 = arith.divf %569, %570 : vector<16x16xf32>
    %572 = vector.extract_strided_slice %564 {offsets = [0, 16], sizes = [16, 16], strides = [1, 1]} : vector<16x64xf32> to vector<16x16xf32>
    %573 = arith.negf %572 : vector<16x16xf32>
    %574 = math.exp %573 : vector<16x16xf32>
    %cst_255 = arith.constant 1.000000e+00 : f32
    %575 = vector.broadcast %cst_255 : f32 to vector<16x16xf32>
    %576 = arith.addf %575, %574 : vector<16x16xf32>
    %577 = arith.divf %575, %576 : vector<16x16xf32>
    %578 = vector.extract_strided_slice %564 {offsets = [0, 32], sizes = [16, 16], strides = [1, 1]} : vector<16x64xf32> to vector<16x16xf32>
    %579 = math.tanh %578 : vector<16x16xf32>
    %580 = vector.extract_strided_slice %564 {offsets = [0, 48], sizes = [16, 16], strides = [1, 1]} : vector<16x64xf32> to vector<16x16xf32>
    %581 = arith.negf %580 : vector<16x16xf32>
    %582 = math.exp %581 : vector<16x16xf32>
    %cst_256 = arith.constant 1.000000e+00 : f32
    %583 = vector.broadcast %cst_256 : f32 to vector<16x16xf32>
    %584 = arith.addf %583, %582 : vector<16x16xf32>
    %585 = arith.divf %583, %584 : vector<16x16xf32>
    %586 = arith.mulf %577, %565 : vector<16x16xf32>
    %587 = arith.mulf %571, %579 : vector<16x16xf32>
    %588 = arith.addf %586, %587 : vector<16x16xf32>
    %589 = math.tanh %588 : vector<16x16xf32>
    %590 = arith.mulf %585, %589 : vector<16x16xf32>
    %c0_257 = arith.constant 0 : index
    %c0_258 = arith.constant 0 : index
    %591 = vector.load %arg9[%c0_257, %c0_258] : memref<16x16xf32, #tpu.memory_space<vmem>>, vector<16x16xf32>
    tpu.vector_store %arg9[%c0_257, %c0_258], %590 {strides = array<i32>} : memref<16x16xf32, #tpu.memory_space<vmem>>, vector<16x16xf32>,
    %c0_259 = arith.constant 0 : index
    %c0_260 = arith.constant 0 : index
    %592 = vector.load %arg10[%c0_259, %c0_260] : memref<16x16xf32, #tpu.memory_space<vmem>>, vector<16x16xf32>
    tpu.vector_store %arg10[%c0_259, %c0_260], %588 {strides = array<i32>} : memref<16x16xf32, #tpu.memory_space<vmem>>, vector<16x16xf32>,
    %593 = arith.truncf %590 : vector<16x16xf32> to vector<16x16xbf16>
    %c1_261 = arith.constant 1 : index
    %594 = arith.index_cast %515 : i32 to index
    %c0_262 = arith.constant 0 : index
    %c0_263 = arith.constant 0 : index
    %595 = vector.load %arg5[%c1_261, %594, %c0_262, %c0_263] : memref<2x8x16x16xbf16, #tpu.memory_space<vmem>>, vector<1x1x16x16xbf16>
    %596 = vector.shape_cast %595 : vector<1x1x16x16xbf16> to vector<16x16xbf16>
    %597 = vector.shape_cast %593 : vector<16x16xbf16> to vector<1x1x16x16xbf16>
    tpu.vector_store %arg5[%c1_261, %594, %c0_262, %c0_263], %597 {strides = array<i32>} : memref<2x8x16x16xbf16, #tpu.memory_space<vmem>>, vector<1x1x16x16xbf16>,
    %c7_i32_264 = arith.constant 7 : i32
    %c7_i32_265 = arith.constant 7 : i32
    %598 = arith.subi %c7_i32_265, %c7_i32_264 : i32
    %c16_i32_266 = arith.constant 16 : i32
    %599 = arith.muli %c7_i32_264, %c16_i32_266 : i32
    %600 = tpu.assume_multiple %599, 16 : i32
    %c16_i32_267 = arith.constant 16 : i32
    %601 = arith.muli %598, %c16_i32_267 : i32
    %602 = tpu.assume_multiple %601, 16 : i32
    %603 = arith.index_cast %600 : i32 to index
    %c0_268 = arith.constant 0 : index
    %604 = vector.load %arg6[%603, %c0_268] : memref<128x128xf32, #tpu.memory_space<vmem>>, vector<16x64xf32>
    %c0_269 = arith.constant 0 : index
    %c0_270 = arith.constant 0 : index
    %605 = vector.load %arg7[%c0_269, %c0_270] : memref<16x16xf32, #tpu.memory_space<vmem>>, vector<16x16xf32>
    %606 = arith.truncf %605 : vector<16x16xf32> to vector<16x16xbf16>
    %cst_271 = arith.constant dense<0.000000e+00> : vector<16x64xf32>
    %607 = tpu.matmul %606, %15, %cst_271 {dimension_numbers = #tpu.dot_dimension_numbers<[1], [0], [0], [1], [0, 0, 1, 1], [], []>} : vector<16x16xbf16>, vector<16x64xbf16>, vector<16x64xf32> -> vector<16x64xf32>
    %608 = arith.addf %604, %607 : vector<16x64xf32>
    %c0_272 = arith.constant 0 : index
    %c0_273 = arith.constant 0 : index
    %609 = vector.load %arg8[%c0_272, %c0_273] : memref<16x16xf32, #tpu.memory_space<vmem>>, vector<16x16xf32>
    %610 = vector.extract_strided_slice %608 {offsets = [0, 0], sizes = [16, 16], strides = [1, 1]} : vector<16x64xf32> to vector<16x16xf32>
    %611 = arith.negf %610 : vector<16x16xf32>
    %612 = math.exp %611 : vector<16x16xf32>
    %cst_274 = arith.constant 1.000000e+00 : f32
    %613 = vector.broadcast %cst_274 : f32 to vector<16x16xf32>
    %614 = arith.addf %613, %612 : vector<16x16xf32>
    %615 = arith.divf %613, %614 : vector<16x16xf32>
    %616 = vector.extract_strided_slice %608 {offsets = [0, 16], sizes = [16, 16], strides = [1, 1]} : vector<16x64xf32> to vector<16x16xf32>
    %617 = arith.negf %616 : vector<16x16xf32>
    %618 = math.exp %617 : vector<16x16xf32>
    %cst_275 = arith.constant 1.000000e+00 : f32
    %619 = vector.broadcast %cst_275 : f32 to vector<16x16xf32>
    %620 = arith.addf %619, %618 : vector<16x16xf32>
    %621 = arith.divf %619, %620 : vector<16x16xf32>
    %622 = vector.extract_strided_slice %608 {offsets = [0, 32], sizes = [16, 16], strides = [1, 1]} : vector<16x64xf32> to vector<16x16xf32>
    %623 = math.tanh %622 : vector<16x16xf32>
    %624 = vector.extract_strided_slice %608 {offsets = [0, 48], sizes = [16, 16], strides = [1, 1]} : vector<16x64xf32> to vector<16x16xf32>
    %625 = arith.negf %624 : vector<16x16xf32>
    %626 = math.exp %625 : vector<16x16xf32>
    %cst_276 = arith.constant 1.000000e+00 : f32
    %627 = vector.broadcast %cst_276 : f32 to vector<16x16xf32>
    %628 = arith.addf %627, %626 : vector<16x16xf32>
    %629 = arith.divf %627, %628 : vector<16x16xf32>
    %630 = arith.mulf %621, %609 : vector<16x16xf32>
    %631 = arith.mulf %615, %623 : vector<16x16xf32>
    %632 = arith.addf %630, %631 : vector<16x16xf32>
    %633 = math.tanh %632 : vector<16x16xf32>
    %634 = arith.mulf %629, %633 : vector<16x16xf32>
    %c0_277 = arith.constant 0 : index
    %c0_278 = arith.constant 0 : index
    %635 = vector.load %arg7[%c0_277, %c0_278] : memref<16x16xf32, #tpu.memory_space<vmem>>, vector<16x16xf32>
    tpu.vector_store %arg7[%c0_277, %c0_278], %634 {strides = array<i32>} : memref<16x16xf32, #tpu.memory_space<vmem>>, vector<16x16xf32>,
    %c0_279 = arith.constant 0 : index
    %c0_280 = arith.constant 0 : index
    %636 = vector.load %arg8[%c0_279, %c0_280] : memref<16x16xf32, #tpu.memory_space<vmem>>, vector<16x16xf32>
    tpu.vector_store %arg8[%c0_279, %c0_280], %632 {strides = array<i32>} : memref<16x16xf32, #tpu.memory_space<vmem>>, vector<16x16xf32>,
    %637 = arith.truncf %634 : vector<16x16xf32> to vector<16x16xbf16>
    %c0_281 = arith.constant 0 : index
    %638 = arith.index_cast %c7_i32_264 : i32 to index
    %c0_282 = arith.constant 0 : index
    %c0_283 = arith.constant 0 : index
    %639 = vector.load %arg5[%c0_281, %638, %c0_282, %c0_283] : memref<2x8x16x16xbf16, #tpu.memory_space<vmem>>, vector<1x1x16x16xbf16>
    %640 = vector.shape_cast %639 : vector<1x1x16x16xbf16> to vector<16x16xbf16>
    %641 = vector.shape_cast %637 : vector<16x16xbf16> to vector<1x1x16x16xbf16>
    tpu.vector_store %arg5[%c0_281, %638, %c0_282, %c0_283], %641 {strides = array<i32>} : memref<2x8x16x16xbf16, #tpu.memory_space<vmem>>, vector<1x1x16x16xbf16>,
    %642 = arith.index_cast %602 : i32 to index
    %c64_284 = arith.constant 64 : index
    %643 = vector.load %arg6[%642, %c64_284] : memref<128x128xf32, #tpu.memory_space<vmem>>, vector<16x64xf32>
    %c0_285 = arith.constant 0 : index
    %c0_286 = arith.constant 0 : index
    %644 = vector.load %arg9[%c0_285, %c0_286] : memref<16x16xf32, #tpu.memory_space<vmem>>, vector<16x16xf32>
    %645 = arith.truncf %644 : vector<16x16xf32> to vector<16x16xbf16>
    %cst_287 = arith.constant dense<0.000000e+00> : vector<16x64xf32>
    %646 = tpu.matmul %645, %16, %cst_287 {dimension_numbers = #tpu.dot_dimension_numbers<[1], [0], [0], [1], [0, 0, 1, 1], [], []>} : vector<16x16xbf16>, vector<16x64xbf16>, vector<16x64xf32> -> vector<16x64xf32>
    %647 = arith.addf %643, %646 : vector<16x64xf32>
    %c0_288 = arith.constant 0 : index
    %c0_289 = arith.constant 0 : index
    %648 = vector.load %arg10[%c0_288, %c0_289] : memref<16x16xf32, #tpu.memory_space<vmem>>, vector<16x16xf32>
    %649 = vector.extract_strided_slice %647 {offsets = [0, 0], sizes = [16, 16], strides = [1, 1]} : vector<16x64xf32> to vector<16x16xf32>
    %650 = arith.negf %649 : vector<16x16xf32>
    %651 = math.exp %650 : vector<16x16xf32>
    %cst_290 = arith.constant 1.000000e+00 : f32
    %652 = vector.broadcast %cst_290 : f32 to vector<16x16xf32>
    %653 = arith.addf %652, %651 : vector<16x16xf32>
    %654 = arith.divf %652, %653 : vector<16x16xf32>
    %655 = vector.extract_strided_slice %647 {offsets = [0, 16], sizes = [16, 16], strides = [1, 1]} : vector<16x64xf32> to vector<16x16xf32>
    %656 = arith.negf %655 : vector<16x16xf32>
    %657 = math.exp %656 : vector<16x16xf32>
    %cst_291 = arith.constant 1.000000e+00 : f32
    %658 = vector.broadcast %cst_291 : f32 to vector<16x16xf32>
    %659 = arith.addf %658, %657 : vector<16x16xf32>
    %660 = arith.divf %658, %659 : vector<16x16xf32>
    %661 = vector.extract_strided_slice %647 {offsets = [0, 32], sizes = [16, 16], strides = [1, 1]} : vector<16x64xf32> to vector<16x16xf32>
    %662 = math.tanh %661 : vector<16x16xf32>
    %663 = vector.extract_strided_slice %647 {offsets = [0, 48], sizes = [16, 16], strides = [1, 1]} : vector<16x64xf32> to vector<16x16xf32>
    %664 = arith.negf %663 : vector<16x16xf32>
    %665 = math.exp %664 : vector<16x16xf32>
    %cst_292 = arith.constant 1.000000e+00 : f32
    %666 = vector.broadcast %cst_292 : f32 to vector<16x16xf32>
    %667 = arith.addf %666, %665 : vector<16x16xf32>
    %668 = arith.divf %666, %667 : vector<16x16xf32>
    %669 = arith.mulf %660, %648 : vector<16x16xf32>
    %670 = arith.mulf %654, %662 : vector<16x16xf32>
    %671 = arith.addf %669, %670 : vector<16x16xf32>
    %672 = math.tanh %671 : vector<16x16xf32>
    %673 = arith.mulf %668, %672 : vector<16x16xf32>
    %c0_293 = arith.constant 0 : index
    %c0_294 = arith.constant 0 : index
    %674 = vector.load %arg9[%c0_293, %c0_294] : memref<16x16xf32, #tpu.memory_space<vmem>>, vector<16x16xf32>
    tpu.vector_store %arg9[%c0_293, %c0_294], %673 {strides = array<i32>} : memref<16x16xf32, #tpu.memory_space<vmem>>, vector<16x16xf32>,
    %c0_295 = arith.constant 0 : index
    %c0_296 = arith.constant 0 : index
    %675 = vector.load %arg10[%c0_295, %c0_296] : memref<16x16xf32, #tpu.memory_space<vmem>>, vector<16x16xf32>
    tpu.vector_store %arg10[%c0_295, %c0_296], %671 {strides = array<i32>} : memref<16x16xf32, #tpu.memory_space<vmem>>, vector<16x16xf32>,
    %676 = arith.truncf %673 : vector<16x16xf32> to vector<16x16xbf16>
    %c1_297 = arith.constant 1 : index
    %677 = arith.index_cast %598 : i32 to index
    %c0_298 = arith.constant 0 : index
    %c0_299 = arith.constant 0 : index
    %678 = vector.load %arg5[%c1_297, %677, %c0_298, %c0_299] : memref<2x8x16x16xbf16, #tpu.memory_space<vmem>>, vector<1x1x16x16xbf16>
    %679 = vector.shape_cast %678 : vector<1x1x16x16xbf16> to vector<16x16xbf16>
    %680 = vector.shape_cast %676 : vector<16x16xbf16> to vector<1x1x16x16xbf16>
    tpu.vector_store %arg5[%c1_297, %677, %c0_298, %c0_299], %680 {strides = array<i32>} : memref<2x8x16x16xbf16, #tpu.memory_space<vmem>>, vector<1x1x16x16xbf16>,
    %c8_i32 = arith.constant 8 : i32
    return
  }
}

</mosaic_0001>

<bundles_post_ra>
// kernel: tpu_custom_call.1
= control target key start
LH: loop header
LB: loop body
LE: loop exit
PB: predicated region body
PF: predicated region fallthrough
CT: control target
= control target key end

     0   :  { %vm111_vm0 = vcmask 1043456   ;;  %v3234_v2 = vmov 0.0   ;;  %vm86_vm1 = vcmask 64512   ;;  %vm228_vm2 = vcmask 130048   ;;  %s4112_s0 = inlined_call_operand.vmem [shape: bf16[128,8], index: 0, kind: input, shape index: {}]   ;;  %s4113_s1 = inlined_call_operand.vmem [shape: bf16[8,128], index: 1, kind: input, shape index: {}]   ;;  %s4114_s2 = inlined_call_operand.vmem [shape: bf16[16,64], index: 2, kind: input, shape index: {}]   ;;  %s4115_s3 = inlined_call_operand.vmem [shape: bf16[16,64], index: 3, kind: input, shape index: {}]   ;;  %s4116_s4 = inlined_call_operand.vmem [shape: f32[1,128], index: 4, kind: input, shape index: {}]   ;;  %s4117_s5 = inlined_call_operand.hbm [shape: bf16[2,8,16,16], index: 5, kind: output, shape index: {}]  }
   0x1   :  { %v38_v0 = vld [vmem:[%s4113_s1] sm:$0xf]  ;;  %2834 = vmatprep.subr.bf16.mxu1 %v3234_v2  ;;  %v2944_v5 = vld [vmem:[%s4112_s0 + $0x8] sm:$0xff]   ;;  %vm3235_vm3 = vmmov 0   ;;  %229 = vst.msk [vmem:[#allocation3] sm:$0xff] %vm228_vm2, %v3234_v2  ;;  %230 = vst.msk [vmem:[#allocation3 + $0x8] sm:$0xff] %vm228_vm2, %v3234_v2 }
   0x2   :  { %2930 = vmatprep.subr.msk.bf16.mxu0 %vm111_vm0, %v38_v0  ;;  %v113_v1 = vsel %vm111_vm0, %v38_v0, 0  ;;  %v2942_v3 = vld [vmem:[%s4112_s0] sm:$0xff]   ;;  %2836 = vmatprep.mubr.msk.bf16.mxu1 %vm3235_vm3, %v3234_v2  ;;  %231 = vst.msk [vmem:[#allocation4] sm:$0xff] %vm228_vm2, %v3234_v2  ;;  %232 = vst.msk [vmem:[#allocation4 + $0x8] sm:$0xff] %vm228_vm2, %v3234_v2  ;;  %v2946_v6 = vld [vmem:[%s4112_s0 + $0x10] sm:$0xff]  }
   0x3   :  { %v3285_v4 = vld [vmem:[%s4114_s2] sm:$0xff]   ;;  %2817 = vmatpush3.bf16.msra.mxu0 %v113_v1  ;;  %2818 = vmatprep.mubr.msk.bf16.mxu0 %vm86_vm1, %v2942_v3  ;;  %233 = vst.msk [vmem:[#allocation5] sm:$0xff] %vm228_vm2, %v3234_v2  ;;  %234 = vst.msk [vmem:[#allocation5 + $0x8] sm:$0xff] %vm228_vm2, %v3234_v2  ;;  %v2947_v7 = vld [vmem:[%s4112_s0 + $0x18] sm:$0xff]  }
   0x4   :  { %2835 = vmatpush3.bf16.msra.mxu1 %v3285_v4  ;;  %235 = vst.msk [vmem:[#allocation6] sm:$0xff] %vm228_vm2, %v3234_v2  ;;  %236 = vst.msk [vmem:[#allocation6 + $0x8] sm:$0xff] %vm228_vm2, %v3234_v2  ;;  %2858 = vmatprep.subr.bf16.mxu0 %v3234_v2  ;;  %v2948_v8 = vld [vmem:[%s4112_s0 + $0x20] sm:$0xff]  }
   0x5   :  { %2840 = vmatprep.subr.bf16.mxu1 %v3234_v2 }
   0x6   :  { %2819 = vmatmul.mubr.msk.bf16.vlgmr.msra.gmra.mrb[0].mxu0 %vm86_vm1, %v2944_v5 }
   0x7   :  { %2859 = vmatpush3.bf16.msra.mxu0 %v3285_v4  ;;  %2822 = vmatprep.mubr.msk.bf16.mxu0 %vm86_vm1, %v2946_v6 }
   0x8   :  { %2870 = vmatprep.subr.bf16.mxu0 %v3234_v2 }
   0x9   :  { %10 = vsyncpa [#allocation8], 0  ;;  %v243_v9 = vld [vmem:[#allocation3] sm:$0xff]  ;;  %v244_v10 = vld [vmem:[#allocation3 + $0x8] sm:$0xff]  ;;  %s3238_s16 = smov 16   ;;  %s3239_s17 = smov 80  }
   0xa   :  { %v3328_v11 = vld [vmem:[%s4115_s3] sm:$0xff]   ;;  %v245_v12 = vpack.c.bf16 %v244_v10, %v243_v9  ;;  %v395_v14 = vld [vmem:[#allocation5 + $0x8] sm:$0xff]  ;;  %v2950_v17 = vld [vmem:[%s4112_s0 + $0x30] sm:$0xff]   ;;  %s3240_s18 = smov 32   ;;  %s3241_s19 = smov 48   ;;  %vm388_vm4 = vcmask 125952  }
   0xb   :  { %v394_v13 = vld [vmem:[#allocation5] sm:$0xff]  ;;  %v2949_v15 = vld [vmem:[%s4112_s0 + $0x28] sm:$0xff]   ;;  %v2951_v18 = vld [vmem:[%s4112_s0 + $0x38] sm:$0xff]   ;;  %s3236_s0 = smov 64   ;;  %s3242_s20 = smov 112  }
   0xc   :  { %2837 = vmatmul.mubr.msk.bf16.vlgmr.msra.gmra.mrb[0].mxu1 %vm228_vm2, %v245_v12  ;;  %v396_v16 = vpack.c.bf16 %v395_v14, %v394_v13  ;;  %v2644_v20 = vld [vmem:[%s4116_s4] ss:$0 sm:$0xff]  ;;  %s3237_s4 = smov 96  }
   0xd   :  { %2841 = vmatpush3.bf16.msra.mxu1 %v3328_v11  ;;  %2842 = vmatprep.mubr.msk.bf16.mxu1 %vm3235_vm3, %v3234_v2 }
   0xe   :  { %2823 = vmatmul.mubr.msk.bf16.gmra.mrb[4].mxu0 %vm86_vm1, %v2947_v7  ;;  %2846 = vmatprep.subr.bf16.mxu1 %v3234_v2 }
   0xf   :  { %2826 = vmatprep.mubr.msk.bf16.mxu0 %vm86_vm1, %v2948_v8 }
  0x14   :  { %2843 = vmatmul.mubr.msk.bf16.vlgmr.msra.gmra.mrb[4].mxu1 %vm228_vm2, %v396_v16 }
  0x15   :  { %2847 = vmatpush3.bf16.msra.mxu1 %v3285_v4  ;;  %2848 = vmatprep.mubr.msk.bf16.mxu1 %vm3235_vm3, %v3234_v2 }
  0x16   :  { %2827 = vmatmul.mubr.msk.bf16.gmra.mrb[8].mxu0 %vm86_vm1, %v2949_v15  ;;  %2852 = vmatprep.subr.bf16.mxu1 %v3234_v2  ;;  %v298_v15 = vld [vmem:[#allocation4] sm:$0xff] }
  0x17   :  { %2830 = vmatprep.mubr.msk.bf16.mxu0 %vm86_vm1, %v2950_v17 }
  0x1e   :  { %2831 = vmatmul.mubr.msk.bf16.gmra.mrb[12].mxu0 %vm86_vm1, %v2951_v18  ;;  %v299_v18 = vld [vmem:[#allocation4 + $0x8] sm:$0xff] }
  0x1f   :  { %2860 = vmatprep.mubr.msk.bf16.mxu0 %vm3235_vm3, %v3234_v2 }
  0xd9   :  { %v2820_v19 = vpop.f32.mrb[0].mxu0 }
  0xda   :  { %v3359_v21 = vadd.f32 %v2820_v19, %v2644_v20  ;;  %v149_v22 = vpop.f32.mrb[1].mxu0 }
  0xdb   :  { %v2821_v23 = vpop.f32.mrb[2].mxu0  ;;  %v3363_v26 = vadd.f32 %v2644_v20, %v149_v22 }
  0xdc   :  { %v3361_v24 = vadd.f32 %v2821_v23, %v2644_v20  ;;  %v152_v25 = vpop.f32.mrb[3].mxu0  ;;  %v457_v23 = vld [vmem:[#allocation6] sm:$0xff] }
  0xdd   :  { %v3365_v27 = vadd.f32 %v2644_v20, %v152_v25 }
  0xdf   :  { %v289_v29 = vpop.f32.mrb[0].mxu1 }
  0xe0   :  { %v296_v32 = vadd.f32 %v289_v29, %v3363_v26  ;;  %v2838_v33 = vpop.f32.mrb[1].mxu1 }
  0xe1   :  { %v2824_v28 = vpop.f32.mrb[4].mxu0  ;;  %v292_v36 = vpop.f32.mrb[2].mxu1 }
  0xe2   :  { %v3367_v30 = vadd.f32 %v2824_v28, %v2644_v20  ;;  %v165_v31 = vpop.f32.mrb[5].mxu0  ;;  %2952 = vtanh.f32 %v296_v32  ;;  %v297_v39 = vadd.f32 %v292_v36, %v3365_v27  ;;  %v2839_v40 = vpop.f32.mrb[3].mxu1  ;;  %v2663_v0 = vmul.f32 -1.442695, %v296_v32  ;;  %v458_v28 = vld [vmem:[#allocation6 + $0x8] sm:$0xff] }
  0xe3   :  { %v3370_v34 = vadd.f32 %v2644_v20, %v165_v31  ;;  %v2825_v35 = vpop.f32.mrb[6].mxu0 }
  0xe4   :  { %v3372_v37 = vadd.f32 %v2825_v35, %v2644_v20  ;;  %v168_v38 = vpop.f32.mrb[7].mxu0  ;;  %2954 = vtanh.f32 %v297_v39  ;;  %v2664_v1 = vmul.f32 -1.442695, %v297_v39 }
  0xe5   :  { %v3375_v41 = vadd.f32 %v2644_v20, %v168_v38  ;;  %2956 = vpow2.f32 %v2663_v0 }
  0xe6   :  { %2958 = vpow2.f32 %v2664_v1 }
  0xe7   :  { %v440_v43 = vpop.f32.mrb[4].mxu1 }
  0xe8   :  { %449 = vrot.lane.b32.xlu0 %v440_v43, %s3236_s0  ;;  %v2844_v46 = vpop.f32.mrb[5].mxu1 }
  0xe9   :  { %v2828_v42 = vpop.f32.mrb[8].mxu0  ;;  %v443_v49 = vpop.f32.mrb[6].mxu1 }
  0xea   :  { %v3377_v44 = vadd.f32 %v2828_v42, %v2644_v20  ;;  %v181_v45 = vpop.f32.mrb[9].mxu0  ;;  %v2845_v52 = vpop.f32.mrb[7].mxu1 }
  0xeb   :  { %v3380_v47 = vadd.f32 %v2644_v20, %v181_v45  ;;  %v2829_v48 = vpop.f32.mrb[10].mxu0 }
  0xec   :  { %v3382_v50 = vadd.f32 %v2829_v48, %v2644_v20  ;;  %v184_v51 = vpop.f32.mrb[11].mxu0  ;;  %v2953_v54 = vpop.eup %2952  ;;  %451 = vrot.lane.b32.xlu0 %v443_v49, %s3236_s0 }
  0xed   :  { %v3384_v53 = vadd.f32 %v2644_v20, %v184_v51  ;;  %326 = vrot.lane.b32.xlu1 %v2953_v54, %s3237_s4 }
  0xee   :  { %v2955_v58 = vpop.eup %2954 }
  0xef   :  { %v2957_v6 = vpop.eup %2956 }
  0xf0   :  { %v306_v8 = vadd.f32 1.0, %v2957_v6  ;;  %v2959_v10 = vpop.eup %2958 }
  0xf1   :  { %v2832_v55 = vpop.f32.mrb[12].mxu0  ;;  %328 = vrot.lane.b32.xlu1 %v2955_v58, %s3237_s4  ;;  %v307_v12 = vadd.f32 1.0, %v2959_v10 }
  0xf2   :  { %v3388_v56 = vadd.f32 %v2832_v55, %v2644_v20  ;;  %v197_v57 = vpop.f32.mrb[13].mxu0 }
  0xf3   :  { %v3390_v59 = vadd.f32 %v2644_v20, %v197_v57  ;;  %v2833_v60 = vpop.f32.mrb[14].mxu0 }
  0xf4   :  { %v3393_v61 = vadd.f32 %v2833_v60, %v2644_v20  ;;  %v200_v62 = vpop.f32.mrb[15].mxu0 }
  0xf5   :  { %v3395_v63 = vadd.f32 %v2644_v20, %v200_v62 }
 0x15a   :  { %v450_v3 = vpop.permute.xlu0 %449 }
 0x15b   :  { %v455_v5 = vadd.f32 %v450_v3, %v3388_v56 }
 0x15d   :  { %2960 = vtanh.f32 %v455_v5  ;;  %v2669_v29 = vmul.f32 -1.442695, %v455_v5 }
 0x15e   :  { %v452_v7 = vpop.permute.xlu0 %451 }
 0x15f   :  { %v456_v9 = vadd.f32 %v452_v7, %v3393_v61  ;;  %v327_v14 = vpop.permute.xlu1 %326 }
 0x161   :  { %2962 = vtanh.f32 %v456_v9  ;;  %v2670_v31 = vmul.f32 -1.442695, %v456_v9 }
 0x162   :  { %2964 = vrcp.f32 %v306_v8 }
 0x163   :  { %2966 = vrcp.f32 %v307_v12  ;;  %v329_v20 = vpop.permute.xlu1 %328 }
 0x164   :  { %2968 = vpow2.f32 %v2669_v29 }
 0x165   :  { %2970 = vpow2.f32 %v2670_v31 }
 0x167   :  { %v2961_v13 = vpop.eup %2960 }
 0x168   :  { %485 = vrot.lane.b32.xlu0 %v2961_v13, %s3237_s4 }
 0x16b   :  { %v2963_v16 = vpop.eup %2962 }
 0x16c   :  { %316 = vrot.lane.b32.xlu0 %v298_v15, %s3238_s16  ;;  %487 = vrot.lane.b32.xlu1 %v2963_v16, %s3237_s4  ;;  %v2965_v17 = vpop.eup %2964 }
 0x16d   :  { %v332_v19 = vmul.f32 %v2965_v17, %v327_v14  ;;  %v2967_v22 = vpop.eup %2966 }
 0x16e   :  { %v333_v25 = vmul.f32 %v2967_v22, %v329_v20  ;;  %v2969_v32 = vpop.eup %2968 }
 0x16f   :  { %v465_v33 = vadd.f32 1.0, %v2969_v32  ;;  %v2971_v35 = vpop.eup %2970 }
 0x170   :  { %318 = vrot.lane.b32.xlu1 %v299_v18, %s3238_s16  ;;  %336 = vrot.lane.b32.xlu0 %v332_v19, %s3238_s16  ;;  %v466_v36 = vadd.f32 1.0, %v2971_v35 }
 0x171   :  { %2972 = vrcp.f32 %v465_v33 }
 0x172   :  { %2974 = vrcp.f32 %v466_v36 }
 0x174   :  { %338 = vrot.lane.b32.xlu1 %v333_v25, %s3238_s16  ;;  %475 = vrot.lane.b32.xlu0 %v457_v23, %s3239_s17 }
 0x178   :  { %477 = vrot.lane.b32.xlu1 %v458_v28, %s3239_s17 }
 0x17b   :  { %v2973_v38 = vpop.eup %2972 }
 0x17c   :  { %v2975_v42 = vpop.eup %2974 }
 0x1da   :  { %v486_v39 = vpop.permute.xlu0 %485 }
 0x1db   :  { %v491_v40 = vmul.f32 %v2973_v38, %v486_v39 }
 0x1dd   :  { %495 = vrot.lane.b32.xlu0 %v491_v40, %s3238_s16 }
 0x1de   :  { %v317_v43 = vpop.permute.xlu0 %316  ;;  %v488_v45 = vpop.permute.xlu1 %487 }
 0x1df   :  { %v492_v46 = vmul.f32 %v2975_v42, %v488_v45  ;;  %v322_v48 = vmul.f32 %v2965_v17, %v317_v43 }
 0x1e1   :  { %497 = vrot.lane.b32.xlu1 %v492_v46, %s3238_s16 }
 0x1e2   :  { %v319_v49 = vpop.permute.xlu1 %318  ;;  %v337_v51 = vpop.permute.xlu0 %336 }
 0x1e3   :  { %v3409_v52 = vadd.f32 %v337_v51, %v322_v48  ;;  %v323_v54 = vmul.f32 %v2967_v22, %v319_v49 }
 0x1e5   :  { %2976 = vtanh.f32 %v3409_v52 }
 0x1e6   :  { %v339_v55 = vpop.permute.xlu1 %338  ;;  %v476_v62 = vpop.permute.xlu0 %475 }
 0x1e7   :  { %v3412_v57 = vadd.f32 %v339_v55, %v323_v54  ;;  %v481_v0 = vmul.f32 %v2973_v38, %v476_v62 }
 0x1e9   :  { %2978 = vtanh.f32 %v3412_v57 }
 0x1ea   :  { %v478_v1 = vpop.permute.xlu1 %477 }
 0x1eb   :  { %v482_v6 = vmul.f32 %v2975_v42, %v478_v1 }
 0x1ef   :  { %v2977_v58 = vpop.eup %2976 }
 0x1f0   :  { %348 = vrot.lane.b32.xlu0 %v2977_v58, %s3240_s18 }
 0x1f3   :  { %v2979_v60 = vpop.eup %2978 }
 0x1f4   :  { %350 = vrot.lane.b32.xlu1 %v2979_v60, %s3240_s18 }
 0x24f   :  { %v496_v3 = vpop.permute.xlu0 %495 }
 0x250   :  { %v501_v5 = vadd.f32 %v496_v3, %v481_v0 }
 0x252   :  { %2980 = vtanh.f32 %v501_v5 }
 0x253   :  { %v498_v7 = vpop.permute.xlu1 %497 }
 0x254   :  { %v502_v8 = vadd.f32 %v498_v7, %v482_v6 }
 0x256   :  { %2982 = vtanh.f32 %v502_v8 }
 0x25c   :  { %v2981_v9 = vpop.eup %2980 }
 0x25d   :  { %507 = vrot.lane.b32.xlu0 %v2981_v9, %s3240_s18 }
 0x260   :  { %v2983_v10 = vpop.eup %2982 }
 0x261   :  { %509 = vrot.lane.b32.xlu1 %v2983_v10, %s3240_s18 }
 0x262   :  { %v349_v12 = vpop.permute.xlu0 %348 }
 0x263   :  { %v3419_v13 = vmul.f32 %v2965_v17, %v349_v12 }
 0x265   :  { %358 = vrot.lane.b32.xlu0 %v3419_v13, %s3239_s17 }
 0x266   :  { %v351_v14 = vpop.permute.xlu1 %350 }
 0x267   :  { %v3423_v15 = vmul.f32 %v2967_v22, %v351_v14 }
 0x269   :  { %360 = vrot.lane.b32.xlu1 %v3423_v15, %s3239_s17 }
 0x2cf   :  { %v508_v16 = vpop.permute.xlu0 %507 }
 0x2d0   :  { %v3427_v18 = vmul.f32 %v2973_v38, %v508_v16 }
 0x2d2   :  { %517 = vrot.lane.b32.xlu0 %v3427_v18, %s3238_s16 }
 0x2d3   :  { %v510_v19 = vpop.permute.xlu1 %509 }
 0x2d4   :  { %v3431_v20 = vmul.f32 %v2975_v42, %v510_v19 }
 0x2d6   :  { %519 = vrot.lane.b32.xlu1 %v3431_v20, %s3238_s16 }
 0x2d7   :  { %v359_v17 = vpop.permute.xlu0 %358 }
 0x2d8   :  { %364 = vst.msk [vmem:[#allocation3] sm:$0xff] %vm228_vm2, %v359_v17 }
 0x2db   :  { %v361_v22 = vpop.permute.xlu1 %360 }
 0x2dc   :  { %365 = vst.msk [vmem:[#allocation3 + $0x8] sm:$0xff] %vm228_vm2, %v361_v22 }
 0x2df   :  { %v553_v23 = vld [vmem:[#allocation3] sm:$0xff] }
 0x2e3   :  { %v554_v25 = vld [vmem:[#allocation3 + $0x8] sm:$0xff] }
 0x2e4   :  { %v555_v28 = vpack.c.bf16 %v554_v25, %v553_v23 }
 0x2e6   :  { %2849 = vmatmul.mubr.msk.bf16.vlgmr.msra.gmra.mrb[8].mxu1 %vm228_vm2, %v555_v28 }
 0x2e7   :  { %2853 = vmatpush3.bf16.msra.mxu1 %v3328_v11  ;;  %2854 = vmatprep.mubr.msk.bf16.mxu1 %vm3235_vm3, %v3234_v2 }
 0x2e8   :  { %2864 = vmatprep.subr.bf16.mxu1 %v3234_v2 }
 0x344   :  { %v518_v29 = vpop.permute.xlu0 %517 }
 0x345   :  { %523 = vst.msk [vmem:[#allocation5] sm:$0xff] %vm228_vm2, %v518_v29 }
 0x348   :  { %v520_v31 = vpop.permute.xlu1 %519 }
 0x349   :  { %524 = vst.msk [vmem:[#allocation5 + $0x8] sm:$0xff] %vm228_vm2, %v520_v31 }
 0x34c   :  { %v698_v32 = vld [vmem:[#allocation5] sm:$0xff] }
 0x350   :  { %v699_v33 = vld [vmem:[#allocation5 + $0x8] sm:$0xff] }
 0x351   :  { %v700_v35 = vpack.c.bf16 %v699_v33, %v698_v32 }
 0x353   :  { %2855 = vmatmul.mubr.msk.bf16.vlgmr.msra.gmra.mrb[12].mxu1 %vm228_vm2, %v700_v35 }
 0x354   :  { %2865 = vmatpush3.bf16.msra.mxu1 %v3328_v11  ;;  %2866 = vmatprep.mubr.msk.bf16.mxu1 %vm3235_vm3, %v3234_v2 }
 0x355   :  { %2876 = vmatprep.subr.bf16.mxu1 %v3234_v2 }
 0x3b9   :  { %v3449_v36 = vpop.f32.mrb[8].mxu1 }
 0x3ba   :  { %v2850_v38 = vpop.f32.mrb[9].mxu1 }
 0x3bb   :  { %v596_v39 = vpop.f32.mrb[10].mxu1 }
 0x3bc   :  { %v2851_v40 = vpop.f32.mrb[11].mxu1 }
 0x3bd   :  { %v600_v40 = vadd.f32 %v3449_v36, %v3359_v21 }
 0x426   :  { %v738_v42 = vpop.f32.mrb[12].mxu1 }
 0x427   :  { %747 = vrot.lane.b32.xlu0 %v738_v42, %s3236_s0  ;;  %v2856_v43 = vpop.f32.mrb[13].mxu1  ;;  %v601_v42 = vadd.f32 %v596_v39, %v3361_v24 }
 0x428   :  { %v741_v45 = vpop.f32.mrb[14].mxu1 }
 0x429   :  { %749 = vrot.lane.b32.xlu1 %v741_v45, %s3236_s0  ;;  %v2857_v46 = vpop.f32.mrb[15].mxu1 }
 0x42b   :  { %527 = vrot.lane.b32.xlu0 %v501_v5, %s3241_s19 }
 0x42d   :  { %529 = vrot.lane.b32.xlu1 %v502_v8, %s3241_s19 }
 0x499   :  { %v748_v48 = vpop.permute.xlu0 %747 }
 0x49a   :  { %v753_v49 = vadd.f32 %v748_v48, %v3390_v59 }
 0x49b   :  { %v750_v51 = vpop.permute.xlu1 %749 }
 0x49c   :  { %2984 = vtanh.f32 %v753_v49  ;;  %v754_v54 = vadd.f32 %v750_v51, %v3395_v63  ;;  %v2679_v3 = vmul.f32 -1.442695, %v753_v49  ;;  %v2674_v49 = vmul.f32 -1.442695, %v600_v40 }
 0x49d   :  { %v528_v55 = vpop.permute.xlu0 %527  ;;  %v2675_v51 = vmul.f32 -1.442695, %v601_v42 }
 0x49e   :  { %533 = vst.msk [vmem:[#allocation6] sm:$0xff] %vm228_vm2, %v528_v55  ;;  %2986 = vtanh.f32 %v754_v54  ;;  %v2680_v5 = vmul.f32 -1.442695, %v754_v54 }
 0x49f   :  { %v530_v58 = vpop.permute.xlu1 %529  ;;  %2988 = vpow2.f32 %v2679_v3 }
 0x4a0   :  { %534 = vst.msk [vmem:[#allocation6 + $0x8] sm:$0xff] %vm228_vm2, %v530_v58  ;;  %2990 = vpow2.f32 %v2680_v5 }
 0x4a5   :  { %v755_v0 = vld [vmem:[#allocation6] sm:$0xff] }
 0x4a6   :  { %v2985_v60 = vpop.eup %2984 }
 0x4a7   :  { %783 = vrot.lane.b32.xlu0 %v2985_v60, %s3237_s4  ;;  %v756_v1 = vld [vmem:[#allocation6 + $0x8] sm:$0xff] }
 0x4a8   :  { %v2987_v62 = vpop.eup %2986 }
 0x4a9   :  { %785 = vrot.lane.b32.xlu1 %v2987_v62, %s3237_s4  ;;  %v2989_v6 = vpop.eup %2988 }
 0x4aa   :  { %v2991_v7 = vpop.eup %2990  ;;  %v763_v8 = vadd.f32 1.0, %v2989_v6 }
 0x4ab   :  { %773 = vrot.lane.b32.xlu0 %v755_v0, %s3239_s17  ;;  %v764_v9 = vadd.f32 1.0, %v2991_v7 }
 0x4ac   :  { %2992 = vrcp.f32 %v763_v8 }
 0x4ad   :  { %775 = vrot.lane.b32.xlu1 %v756_v1, %s3239_s17  ;;  %2994 = vrcp.f32 %v764_v9 }
 0x4b6   :  { %v2993_v10 = vpop.eup %2992 }
 0x4b7   :  { %v2995_v16 = vpop.eup %2994 }
 0x519   :  { %v784_v12 = vpop.permute.xlu0 %783 }
 0x51a   :  { %v789_v14 = vmul.f32 %v2993_v10, %v784_v12 }
 0x51b   :  { %v786_v19 = vpop.permute.xlu1 %785 }
 0x51c   :  { %793 = vrot.lane.b32.xlu0 %v789_v14, %s3238_s16  ;;  %v790_v17 = vmul.f32 %v2995_v16, %v786_v19 }
 0x51d   :  { %v774_v22 = vpop.permute.xlu0 %773 }
 0x51e   :  { %795 = vrot.lane.b32.xlu1 %v790_v17, %s3238_s16  ;;  %v779_v23 = vmul.f32 %v2993_v10, %v774_v22 }
 0x51f   :  { %v776_v25 = vpop.permute.xlu1 %775 }
 0x520   :  { %v780_v31 = vmul.f32 %v2995_v16, %v776_v25 }
 0x58e   :  { %v794_v28 = vpop.permute.xlu0 %793 }
 0x58f   :  { %v3465_v29 = vadd.f32 %v794_v28, %v779_v23 }
 0x590   :  { %v796_v32 = vpop.permute.xlu1 %795 }
 0x591   :  { %2996 = vtanh.f32 %v3465_v29  ;;  %v3468_v33 = vadd.f32 %v796_v32, %v780_v31 }
 0x593   :  { %2998 = vtanh.f32 %v3468_v33 }
 0x594   :  { %3000 = vtanh.f32 %v600_v40 }
 0x595   :  { %3002 = vtanh.f32 %v601_v42 }
 0x596   :  { %3004 = vpow2.f32 %v2674_v49 }
 0x597   :  { %3006 = vpow2.f32 %v2675_v51 }
 0x59b   :  { %v2997_v35 = vpop.eup %2996 }
 0x59c   :  { %805 = vrot.lane.b32.xlu0 %v2997_v35, %s3240_s18 }
 0x59d   :  { %v2999_v38 = vpop.eup %2998 }
 0x59e   :  { %807 = vrot.lane.b32.xlu1 %v2999_v38, %s3240_s18  ;;  %v3001_v36 = vpop.eup %3000 }
 0x59f   :  { %v3003_v39 = vpop.eup %3002 }
 0x5a0   :  { %v3005_v54 = vpop.eup %3004 }
 0x5a1   :  { %v3007_v55 = vpop.eup %3006  ;;  %v610_v58 = vadd.f32 1.0, %v3005_v54 }
 0x5a3   :  { %3008 = vrcp.f32 %v610_v58 }
 0x5ad   :  { %v3009_v8 = vpop.eup %3008 }
 0x60e   :  { %v806_v43 = vpop.permute.xlu0 %805 }
 0x60f   :  { %v3476_v45 = vmul.f32 %v2993_v10, %v806_v43 }
 0x610   :  { %v808_v46 = vpop.permute.xlu1 %807 }
 0x611   :  { %815 = vrot.lane.b32.xlu0 %v3476_v45, %s3238_s16  ;;  %v3480_v48 = vmul.f32 %v2995_v16, %v808_v46 }
 0x613   :  { %817 = vrot.lane.b32.xlu1 %v3480_v48, %s3238_s16 }
 0x615   :  { %368 = vrot.lane.b32.xlu0 %v3409_v52, %s3242_s20  ;;  %v611_v52 = vadd.f32 1.0, %v3007_v55 }
 0x617   :  { %370 = vrot.lane.b32.xlu1 %v3412_v57, %s3242_s20  ;;  %3010 = vrcp.f32 %v611_v52 }
 0x619   :  { %630 = vrot.lane.b32.xlu0 %v3001_v36, %s3237_s4 }
 0x61b   :  { %632 = vrot.lane.b32.xlu1 %v3003_v39, %s3237_s4 }
 0x621   :  { %v3011_v14 = vpop.eup %3010 }
 0x683   :  { %v816_v60 = vpop.permute.xlu0 %815 }
 0x684   :  { %821 = vst.msk [vmem:[#allocation5] sm:$0xff] %vm228_vm2, %v816_v60 }
 0x685   :  { %v818_v62 = vpop.permute.xlu1 %817 }
 0x686   :  { %822 = vst.msk [vmem:[#allocation5 + $0x8] sm:$0xff] %vm228_vm2, %v818_v62 }
 0x687   :  { %v369_v57 = vpop.permute.xlu0 %368 }
 0x688   :  { %374 = vst.msk [vmem:[#allocation4] sm:$0xff] %vm228_vm2, %v369_v57 }
 0x689   :  { %v371_v0 = vpop.permute.xlu1 %370 }
 0x68a   :  { %375 = vst.msk [vmem:[#allocation4 + $0x8] sm:$0xff] %vm228_vm2, %v371_v0 }
 0x68b   :  { %v996_v1 = vld [vmem:[#allocation5] sm:$0xff]  ;;  %v631_v5 = vpop.permute.xlu0 %630 }
 0x68c   :  { %v636_v9 = vmul.f32 %v3009_v8, %v631_v5 }
 0x68d   :  { %v997_v3 = vld [vmem:[#allocation5 + $0x8] sm:$0xff]  ;;  %v633_v10 = vpop.permute.xlu1 %632 }
 0x68e   :  { %v998_v7 = vpack.c.bf16 %v997_v3, %v996_v1  ;;  %v637_v16 = vmul.f32 %v3011_v14, %v633_v10 }
 0x68f   :  { %v602_v6 = vld [vmem:[#allocation4] sm:$0xff] }
 0x690   :  { %620 = vrot.lane.b32.xlu0 %v602_v6, %s3238_s16  ;;  %2867 = vmatmul.mubr.msk.bf16.vlgmr.msra.gmra.mrb[16].mxu1 %vm228_vm2, %v998_v7 }
 0x691   :  { %v603_v12 = vld [vmem:[#allocation4 + $0x8] sm:$0xff]  ;;  %2877 = vmatpush3.bf16.msra.mxu1 %v3328_v11  ;;  %2878 = vmatprep.mubr.msk.bf16.mxu1 %vm3235_vm3, %v3234_v2 }
 0x692   :  { %622 = vrot.lane.b32.xlu1 %v603_v12, %s3238_s16  ;;  %2888 = vmatprep.subr.bf16.mxu1 %v3234_v2 }
 0x694   :  { %640 = vrot.lane.b32.xlu0 %v636_v9, %s3238_s16 }
 0x696   :  { %642 = vrot.lane.b32.xlu1 %v637_v16, %s3238_s16 }
 0x702   :  { %v621_v19 = vpop.permute.xlu0 %620 }
 0x703   :  { %v626_v23 = vmul.f32 %v3009_v8, %v621_v19 }
 0x704   :  { %v623_v17 = vpop.permute.xlu1 %622 }
 0x705   :  { %v627_v28 = vmul.f32 %v3011_v14, %v623_v17 }
 0x706   :  { %v641_v22 = vpop.permute.xlu0 %640 }
 0x707   :  { %v3503_v31 = vadd.f32 %v641_v22, %v626_v23 }
 0x708   :  { %v643_v25 = vpop.permute.xlu1 %642 }
 0x709   :  { %v3505_v32 = vadd.f32 %v643_v25, %v627_v28  ;;  %3012 = vtanh.f32 %v3503_v31 }
 0x70b   :  { %3014 = vtanh.f32 %v3505_v32 }
 0x713   :  { %v3013_v43 = vpop.eup %3012 }
 0x715   :  { %v3015_v46 = vpop.eup %3014 }
 0x763   :  { %v1036_v35 = vpop.f32.mrb[16].mxu1 }
 0x764   :  { %1045 = vrot.lane.b32.xlu0 %v1036_v35, %s3236_s0  ;;  %v2868_v38 = vpop.f32.mrb[17].mxu1 }
 0x765   :  { %v1039_v40 = vpop.f32.mrb[18].mxu1 }
 0x766   :  { %1047 = vrot.lane.b32.xlu1 %v1039_v40, %s3236_s0  ;;  %v2869_v42 = vpop.f32.mrb[19].mxu1 }
 0x768   :  { %652 = vrot.lane.b32.xlu0 %v3013_v43, %s3240_s18 }
 0x76a   :  { %654 = vrot.lane.b32.xlu1 %v3015_v46, %s3240_s18 }
 0x76c   :  { %825 = vrot.lane.b32.xlu0 %v3465_v29, %s3241_s19 }
 0x76e   :  { %827 = vrot.lane.b32.xlu1 %v3468_v33, %s3241_s19 }
 0x7d6   :  { %v1046_v36 = vpop.permute.xlu0 %1045 }
 0x7d7   :  { %v1051_v39 = vadd.f32 %v1046_v36, %v3377_v44 }
 0x7d8   :  { %v1048_v49 = vpop.permute.xlu1 %1047 }
 0x7d9   :  { %3016 = vtanh.f32 %v1051_v39  ;;  %v1052_v51 = vadd.f32 %v1048_v49, %v3382_v50  ;;  %v2689_v1 = vmul.f32 -1.442695, %v1051_v39 }
 0x7da   :  { %v653_v54 = vpop.permute.xlu0 %652 }
 0x7db   :  { %v3519_v55 = vmul.f32 %v3009_v8, %v653_v54  ;;  %3018 = vtanh.f32 %v1052_v51  ;;  %v2690_v3 = vmul.f32 -1.442695, %v1052_v51 }
 0x7dc   :  { %v655_v58 = vpop.permute.xlu1 %654  ;;  %3020 = vpow2.f32 %v2689_v1 }
 0x7dd   :  { %v3521_v60 = vmul.f32 %v3011_v14, %v655_v58  ;;  %662 = vrot.lane.b32.xlu0 %v3519_v55, %s3239_s17  ;;  %3022 = vpow2.f32 %v2690_v3 }
 0x7de   :  { %v826_v29 = vpop.permute.xlu0 %825 }
 0x7df   :  { %831 = vst.msk [vmem:[#allocation6] sm:$0xff] %vm228_vm2, %v826_v29  ;;  %664 = vrot.lane.b32.xlu1 %v3521_v60, %s3239_s17 }
 0x7e0   :  { %v828_v33 = vpop.permute.xlu1 %827 }
 0x7e1   :  { %832 = vst.msk [vmem:[#allocation6 + $0x8] sm:$0xff] %vm228_vm2, %v828_v33 }
 0x7e3   :  { %v3017_v52 = vpop.eup %3016 }
 0x7e4   :  { %1081 = vrot.lane.b32.xlu0 %v3017_v52, %s3237_s4 }
 0x7e5   :  { %v3019_v62 = vpop.eup %3018 }
 0x7e6   :  { %v1053_v57 = vld [vmem:[#allocation6] sm:$0xff]  ;;  %1083 = vrot.lane.b32.xlu1 %v3019_v62, %s3237_s4  ;;  %v3021_v5 = vpop.eup %3020 }
 0x7e7   :  { %v3023_v6 = vpop.eup %3022  ;;  %v1061_v7 = vadd.f32 1.0, %v3021_v5 }
 0x7e8   :  { %1071 = vrot.lane.b32.xlu0 %v1053_v57, %s3239_s17  ;;  %v1054_v0 = vld [vmem:[#allocation6 + $0x8] sm:$0xff]  ;;  %v1062_v8 = vadd.f32 1.0, %v3023_v6 }
 0x7e9   :  { %3024 = vrcp.f32 %v1061_v7 }
 0x7ea   :  { %1073 = vrot.lane.b32.xlu1 %v1054_v0, %s3239_s17  ;;  %3026 = vrcp.f32 %v1062_v8 }
 0x7f3   :  { %v3025_v12 = vpop.eup %3024 }
 0x7f4   :  { %v3027_v19 = vpop.eup %3026 }
 0x84f   :  { %v663_v9 = vpop.permute.xlu0 %662 }
 0x850   :  { %668 = vst.msk [vmem:[#allocation3] sm:$0xff] %vm228_vm2, %v663_v9 }
 0x851   :  { %v665_v10 = vpop.permute.xlu1 %664 }
 0x852   :  { %669 = vst.msk [vmem:[#allocation3 + $0x8] sm:$0xff] %vm228_vm2, %v665_v10 }
 0x856   :  { %v1082_v14 = vpop.permute.xlu0 %1081 }
 0x857   :  { %v1087_v16 = vmul.f32 %v3025_v12, %v1082_v14  ;;  %v851_v22 = vld [vmem:[#allocation3] sm:$0xff] }
 0x858   :  { %v1084_v17 = vpop.permute.xlu1 %1083 }
 0x859   :  { %1091 = vrot.lane.b32.xlu0 %v1087_v16, %s3238_s16  ;;  %v852_v23 = vld [vmem:[#allocation3 + $0x8] sm:$0xff]  ;;  %v1088_v25 = vmul.f32 %v3027_v19, %v1084_v17 }
 0x85a   :  { %v853_v28 = vpack.c.bf16 %v852_v23, %v851_v22  ;;  %v1072_v35 = vpop.permute.xlu0 %1071 }
 0x85b   :  { %1093 = vrot.lane.b32.xlu1 %v1088_v25, %s3238_s16  ;;  %v1077_v38 = vmul.f32 %v3025_v12, %v1072_v35 }
 0x85c   :  { %2861 = vmatmul.mubr.msk.bf16.vlgmr.msra.gmra.mrb[16].mxu0 %vm228_vm2, %v853_v28  ;;  %v1074_v40 = vpop.permute.xlu1 %1073 }
 0x85d   :  { %2871 = vmatpush3.bf16.msra.mxu0 %v3285_v4  ;;  %2872 = vmatprep.mubr.msk.bf16.mxu0 %vm3235_vm3, %v3234_v2  ;;  %v1078_v46 = vmul.f32 %v3027_v19, %v1074_v40 }
 0x85e   :  { %2882 = vmatprep.subr.bf16.mxu0 %v3234_v2 }
 0x8cb   :  { %v1092_v42 = vpop.permute.xlu0 %1091 }
 0x8cc   :  { %v3542_v43 = vadd.f32 %v1092_v42, %v1077_v38 }
 0x8cd   :  { %v1094_v36 = vpop.permute.xlu1 %1093 }
 0x8ce   :  { %3028 = vtanh.f32 %v3542_v43  ;;  %v3545_v39 = vadd.f32 %v1094_v36, %v1078_v46 }
 0x8d0   :  { %3030 = vtanh.f32 %v3545_v39 }
 0x8d8   :  { %v3029_v4 = vpop.eup %3028 }
 0x8d9   :  { %1103 = vrot.lane.b32.xlu0 %v3029_v4, %s3240_s18 }
 0x8da   :  { %v3031_v49 = vpop.eup %3030 }
 0x8db   :  { %1105 = vrot.lane.b32.xlu1 %v3031_v49, %s3240_s18 }
 0x92f   :  { %v891_v51 = vpop.f32.mrb[16].mxu0 }
 0x930   :  { %v2862_v54 = vpop.f32.mrb[17].mxu0  ;;  %v898_v33 = vadd.f32 %v891_v51, %v3370_v34 }
 0x931   :  { %v894_v58 = vpop.f32.mrb[18].mxu0 }
 0x932   :  { %v2863_v29 = vpop.f32.mrb[19].mxu0  ;;  %v899_v52 = vadd.f32 %v894_v58, %v3375_v41  ;;  %3032 = vtanh.f32 %v898_v33  ;;  %v2684_v6 = vmul.f32 -1.442695, %v898_v33 }
 0x934   :  { %3034 = vtanh.f32 %v899_v52  ;;  %v2685_v7 = vmul.f32 -1.442695, %v899_v52 }
 0x935   :  { %3036 = vpow2.f32 %v2684_v6 }
 0x936   :  { %3038 = vpow2.f32 %v2685_v7 }
 0x93c   :  { %v3033_v3 = vpop.eup %3032 }
 0x93e   :  { %v3035_v5 = vpop.eup %3034 }
 0x93f   :  { %v3037_v8 = vpop.eup %3036 }
 0x940   :  { %v3039_v9 = vpop.eup %3038  ;;  %v908_v10 = vadd.f32 1.0, %v3037_v8 }
 0x942   :  { %3040 = vrcp.f32 %v908_v10 }
 0x94b   :  { %v1104_v62 = vpop.permute.xlu0 %1103 }
 0x94c   :  { %v3552_v57 = vmul.f32 %v3025_v12, %v1104_v62  ;;  %v3041_v28 = vpop.eup %3040 }
 0x94d   :  { %v1106_v0 = vpop.permute.xlu1 %1105 }
 0x94e   :  { %1113 = vrot.lane.b32.xlu0 %v3552_v57, %s3238_s16  ;;  %v3556_v1 = vmul.f32 %v3027_v19, %v1106_v0 }
 0x950   :  { %1115 = vrot.lane.b32.xlu1 %v3556_v1, %s3238_s16 }
 0x952   :  { %672 = vrot.lane.b32.xlu0 %v3503_v31, %s3242_s20  ;;  %v909_v31 = vadd.f32 1.0, %v3039_v9 }
 0x954   :  { %674 = vrot.lane.b32.xlu1 %v3505_v32, %s3242_s20  ;;  %3042 = vrcp.f32 %v909_v31 }
 0x956   :  { %928 = vrot.lane.b32.xlu0 %v3033_v3, %s3237_s4 }
 0x958   :  { %930 = vrot.lane.b32.xlu1 %v3035_v5, %s3237_s4 }
 0x95e   :  { %v3043_v42 = vpop.eup %3042 }
 0x9c0   :  { %v1114_v12 = vpop.permute.xlu0 %1113 }
 0x9c1   :  { %1119 = vst.msk [vmem:[#allocation5] sm:$0xff] %vm228_vm2, %v1114_v12 }
 0x9c2   :  { %v1116_v14 = vpop.permute.xlu1 %1115 }
 0x9c3   :  { %1120 = vst.msk [vmem:[#allocation5 + $0x8] sm:$0xff] %vm228_vm2, %v1116_v14 }
 0x9c4   :  { %v673_v32 = vpop.permute.xlu0 %672 }
 0x9c5   :  { %678 = vst.msk [vmem:[#allocation4] sm:$0xff] %vm228_vm2, %v673_v32 }
 0x9c6   :  { %v675_v16 = vpop.permute.xlu1 %674 }
 0x9c7   :  { %679 = vst.msk [vmem:[#allocation4 + $0x8] sm:$0xff] %vm228_vm2, %v675_v16 }
 0x9c8   :  { %v1294_v19 = vld [vmem:[#allocation5] sm:$0xff]  ;;  %v929_v22 = vpop.permute.xlu0 %928 }
 0x9c9   :  { %v934_v35 = vmul.f32 %v3041_v28, %v929_v22 }
 0x9ca   :  { %v1295_v17 = vld [vmem:[#allocation5 + $0x8] sm:$0xff]  ;;  %v931_v38 = vpop.permute.xlu1 %930 }
 0x9cb   :  { %v1296_v25 = vpack.c.bf16 %v1295_v17, %v1294_v19  ;;  %v935_v46 = vmul.f32 %v3043_v42, %v931_v38  ;;  %v3614_v38 = vld [vmem:[%s4114_s2] sm:$0xff]  }
 0x9cc   :  { %v900_v23 = vld [vmem:[#allocation4] sm:$0xff] }
 0x9cd   :  { %918 = vrot.lane.b32.xlu0 %v900_v23, %s3238_s16  ;;  %2879 = vmatmul.mubr.msk.bf16.vlgmr.msra.gmra.mrb[20].mxu1 %vm228_vm2, %v1296_v25 }
 0x9ce   :  { %v901_v40 = vld [vmem:[#allocation4 + $0x8] sm:$0xff]  ;;  %2889 = vmatpush3.bf16.msra.mxu1 %v3328_v11  ;;  %2890 = vmatprep.mubr.msk.bf16.mxu1 %vm3235_vm3, %v3234_v2 }
 0x9cf   :  { %920 = vrot.lane.b32.xlu1 %v901_v40, %s3238_s16  ;;  %2900 = vmatprep.subr.bf16.mxu1 %v3234_v2 }
 0x9d1   :  { %938 = vrot.lane.b32.xlu0 %v934_v35, %s3238_s16 }
 0x9d3   :  { %940 = vrot.lane.b32.xlu1 %v935_v46, %s3238_s16 }
 0xa3f   :  { %v919_v36 = vpop.permute.xlu0 %918 }
 0xa40   :  { %v924_v4 = vmul.f32 %v3041_v28, %v919_v36 }
 0xa41   :  { %v921_v49 = vpop.permute.xlu1 %920 }
 0xa42   :  { %v925_v11 = vmul.f32 %v3043_v42, %v921_v49 }
 0xa43   :  { %v939_v51 = vpop.permute.xlu0 %938 }
 0xa44   :  { %v3579_v54 = vadd.f32 %v939_v51, %v924_v4 }
 0xa45   :  { %v941_v58 = vpop.permute.xlu1 %940 }
 0xa46   :  { %3044 = vtanh.f32 %v3579_v54  ;;  %v3582_v29 = vadd.f32 %v941_v58, %v925_v11 }
 0xa48   :  { %3046 = vtanh.f32 %v3582_v29 }
 0xa50   :  { %v3045_v33 = vpop.eup %3044 }
 0xa51   :  { %950 = vrot.lane.b32.xlu0 %v3045_v33, %s3240_s18 }
 0xa52   :  { %v3047_v52 = vpop.eup %3046 }
 0xa53   :  { %952 = vrot.lane.b32.xlu1 %v3047_v52, %s3240_s18 }
 0xaa0   :  { %v1334_v62 = vpop.f32.mrb[20].mxu1 }
 0xaa1   :  { %1343 = vrot.lane.b32.xlu0 %v1334_v62, %s3236_s0  ;;  %v2880_v0 = vpop.f32.mrb[21].mxu1 }
 0xaa2   :  { %v1337_v3 = vpop.f32.mrb[22].mxu1 }
 0xaa3   :  { %1345 = vrot.lane.b32.xlu1 %v1337_v3, %s3236_s0  ;;  %v2881_v5 = vpop.f32.mrb[23].mxu1 }
 0xac3   :  { %v951_v6 = vpop.permute.xlu0 %950 }
 0xac4   :  { %v3589_v7 = vmul.f32 %v3041_v28, %v951_v6 }
 0xac5   :  { %v953_v8 = vpop.permute.xlu1 %952 }
 0xac6   :  { %960 = vrot.lane.b32.xlu0 %v3589_v7, %s3239_s17  ;;  %v3593_v9 = vmul.f32 %v3043_v42, %v953_v8 }
 0xac8   :  { %962 = vrot.lane.b32.xlu1 %v3593_v9, %s3239_s17 }
 0xaca   :  { %1123 = vrot.lane.b32.xlu0 %v3542_v43, %s3241_s19 }
 0xacc   :  { %1125 = vrot.lane.b32.xlu1 %v3545_v39, %s3241_s19 }
 0xb13   :  { %v1344_v10 = vpop.permute.xlu0 %1343 }
 0xb14   :  { %v1349_v12 = vadd.f32 %v1344_v10, %v3380_v47 }
 0xb15   :  { %v1346_v31 = vpop.permute.xlu1 %1345 }
 0xb16   :  { %3048 = vtanh.f32 %v1349_v12  ;;  %v1350_v14 = vadd.f32 %v1346_v31, %v3384_v53  ;;  %v2699_v40 = vmul.f32 -1.442695, %v1349_v12 }
 0xb18   :  { %3050 = vtanh.f32 %v1350_v14  ;;  %v2700_v42 = vmul.f32 -1.442695, %v1350_v14 }
 0xb19   :  { %3052 = vpow2.f32 %v2699_v40 }
 0xb1a   :  { %3054 = vpow2.f32 %v2700_v42 }
 0xb20   :  { %v3049_v32 = vpop.eup %3048 }
 0xb21   :  { %1379 = vrot.lane.b32.xlu0 %v3049_v32, %s3237_s4 }
 0xb22   :  { %v3051_v16 = vpop.eup %3050 }
 0xb23   :  { %1381 = vrot.lane.b32.xlu1 %v3051_v16, %s3237_s4  ;;  %v3053_v46 = vpop.eup %3052 }
 0xb24   :  { %v3055_v36 = vpop.eup %3054  ;;  %v1359_v4 = vadd.f32 1.0, %v3053_v46 }
 0xb25   :  { %v1360_v49 = vadd.f32 1.0, %v3055_v36 }
 0xb26   :  { %3056 = vrcp.f32 %v1359_v4 }
 0xb27   :  { %3058 = vrcp.f32 %v1360_v49 }
 0xb30   :  { %v3057_v51 = vpop.eup %3056 }
 0xb31   :  { %v3059_v33 = vpop.eup %3058 }
 0xb38   :  { %v961_v19 = vpop.permute.xlu0 %960 }
 0xb39   :  { %966 = vst.msk [vmem:[#allocation3] sm:$0xff] %vm228_vm2, %v961_v19 }
 0xb3a   :  { %v963_v43 = vpop.permute.xlu1 %962 }
 0xb3b   :  { %967 = vst.msk [vmem:[#allocation3 + $0x8] sm:$0xff] %vm228_vm2, %v963_v43 }
 0xb3c   :  { %v1124_v39 = vpop.permute.xlu0 %1123 }
 0xb3d   :  { %1129 = vst.msk [vmem:[#allocation6] sm:$0xff] %vm228_vm2, %v1124_v39 }
 0xb3e   :  { %v1126_v17 = vpop.permute.xlu1 %1125 }
 0xb3f   :  { %1130 = vst.msk [vmem:[#allocation6 + $0x8] sm:$0xff] %vm228_vm2, %v1126_v17 }
 0xb40   :  { %v1149_v22 = vld [vmem:[#allocation3] sm:$0xff] }
 0xb42   :  { %v1150_v23 = vld [vmem:[#allocation3 + $0x8] sm:$0xff] }
 0xb43   :  { %v1151_v28 = vpack.c.bf16 %v1150_v23, %v1149_v22 }
 0xb44   :  { %v1351_v25 = vld [vmem:[#allocation6] sm:$0xff] }
 0xb45   :  { %1369 = vrot.lane.b32.xlu0 %v1351_v25, %s3239_s17  ;;  %2873 = vmatmul.mubr.msk.bf16.vlgmr.msra.gmra.mrb[20].mxu0 %vm228_vm2, %v1151_v28 }
 0xb46   :  { %v1352_v35 = vld [vmem:[#allocation6 + $0x8] sm:$0xff]  ;;  %2883 = vmatpush3.bf16.msra.mxu0 %v3614_v38  ;;  %2884 = vmatprep.mubr.msk.bf16.mxu0 %vm3235_vm3, %v3234_v2 }
 0xb47   :  { %1371 = vrot.lane.b32.xlu1 %v1352_v35, %s3239_s17  ;;  %2894 = vmatprep.subr.bf16.mxu0 %v3234_v2 }
 0xb93   :  { %v1380_v11 = vpop.permute.xlu0 %1379 }
 0xb94   :  { %v1385_v58 = vmul.f32 %v3057_v51, %v1380_v11 }
 0xb95   :  { %v1382_v52 = vpop.permute.xlu1 %1381 }
 0xb96   :  { %1389 = vrot.lane.b32.xlu0 %v1385_v58, %s3238_s16  ;;  %v1386_v62 = vmul.f32 %v3059_v33, %v1382_v52 }
 0xb98   :  { %1391 = vrot.lane.b32.xlu1 %v1386_v62, %s3238_s16 }
 0xbb7   :  { %v1370_v0 = vpop.permute.xlu0 %1369 }
 0xbb8   :  { %v1375_v3 = vmul.f32 %v3057_v51, %v1370_v0 }
 0xbb9   :  { %v1372_v5 = vpop.permute.xlu1 %1371 }
 0xbba   :  { %v1376_v10 = vmul.f32 %v3059_v33, %v1372_v5 }
 0xc08   :  { %v1390_v6 = vpop.permute.xlu0 %1389 }
 0xc09   :  { %v3623_v8 = vadd.f32 %v1390_v6, %v1375_v3 }
 0xc0a   :  { %v1392_v12 = vpop.permute.xlu1 %1391 }
 0xc0b   :  { %3060 = vtanh.f32 %v3623_v8  ;;  %v3626_v31 = vadd.f32 %v1392_v12, %v1376_v10 }
 0xc0d   :  { %3062 = vtanh.f32 %v3626_v31 }
 0xc15   :  { %v3061_v14 = vpop.eup %3060 }
 0xc16   :  { %1401 = vrot.lane.b32.xlu0 %v3061_v14, %s3240_s18 }
 0xc17   :  { %v3063_v32 = vpop.eup %3062 }
 0xc18   :  { %v1189_v16 = vpop.f32.mrb[20].mxu0  ;;  %1403 = vrot.lane.b32.xlu1 %v3063_v32, %s3240_s18  ;;  %v3656_v32 = vld [vmem:[%s4115_s3] sm:$0xff]   ;;  %s3243_s3 = smov [#allocation7]  }
 0xc19   :  { %v2874_v19 = vpop.f32.mrb[21].mxu0  ;;  %v1196_v17 = vadd.f32 %v1189_v16, %v3367_v30  ;;  %s2633_s1 = sshll.u32 %s3243_s3, 4  ;;  %s2634_s1 = int_to_ptr.vmem [resolvable:$true] %s2633_s1 }
 0xc1a   :  { %v1192_v43 = vpop.f32.mrb[22].mxu0  ;;  %s3210_s24 = scalar_lea.vmem %s2634_s1, 2048  ;;  %p3215_p1 = scmp.lt.s32.totalorder %s2634_s1, %s2634_s1 }
 0xc1b   :  { %v2875_v39 = vpop.f32.mrb[23].mxu0  ;;  %v1197_v22 = vadd.f32 %v1192_v43, %v3372_v37  ;;  %3064 = vtanh.f32 %v1196_v17  ;;  %v2694_v46 = vmul.f32 -1.442695, %v1196_v17  ;;  %p3211_p0 = scmp.ne.s32.totalorder %s2634_s1, %s3210_s24  ;;  %p3216_p2 = scmp.lt.s32.totalorder %s3210_s24, %s3210_s24 }
 0xc1d   :  { %3066 = vtanh.f32 %v1197_v22  ;;  %v2695_v36 = vmul.f32 -1.442695, %v1197_v22  ;;  %p3217_p3 = por %p3216_p2, %p3215_p1 }
 0xc1e   :  { %3068 = vpow2.f32 %v2694_v46 }
 0xc1f   :  { %3070 = vpow2.f32 %v2695_v36  ;;  %p3218_p4 = pnand %p3217_p3, %p3211_p0 }
 0xc25   :  { %v3065_v40 = vpop.eup %3064 }
 0xc27   :  { %v3067_v42 = vpop.eup %3066 }
 0xc28   :  { %v3069_v4 = vpop.eup %3068 }
 0xc29   :  { %v3071_v49 = vpop.eup %3070 }
 0xc88   :  { %v1402_v23 = vpop.permute.xlu0 %1401 }
 0xc89   :  { %v3633_v25 = vmul.f32 %v3057_v51, %v1402_v23  ;;  %v1206_v51 = vadd.f32 1.0, %v3069_v4 }
 0xc8a   :  { %v1404_v28 = vpop.permute.xlu1 %1403 }
 0xc8b   :  { %1411 = vrot.lane.b32.xlu0 %v3633_v25, %s3238_s16  ;;  %v3637_v35 = vmul.f32 %v3059_v33, %v1404_v28  ;;  %3072 = vrcp.f32 %v1206_v51 }
 0xc8d   :  { %1413 = vrot.lane.b32.xlu1 %v3637_v35, %s3238_s16 }
 0xc8f   :  { %970 = vrot.lane.b32.xlu0 %v3579_v54, %s3242_s20  ;;  %v1207_v54 = vadd.f32 1.0, %v3071_v49 }
 0xc91   :  { %972 = vrot.lane.b32.xlu1 %v3582_v29, %s3242_s20  ;;  %3074 = vrcp.f32 %v1207_v54 }
 0xc93   :  { %1226 = vrot.lane.b32.xlu0 %v3065_v40, %s3237_s4 }
 0xc95   :  { %1228 = vrot.lane.b32.xlu1 %v3067_v42, %s3237_s4  ;;  %v3073_v6 = vpop.eup %3072 }
 0xc9b   :  { %v3075_v16 = vpop.eup %3074 }
 0xcfd   :  { %v1412_v11 = vpop.permute.xlu0 %1411 }
 0xcfe   :  { %1417 = vst.msk [vmem:[#allocation5] sm:$0xff] %vm228_vm2, %v1412_v11 }
 0xcff   :  { %v1414_v58 = vpop.permute.xlu1 %1413 }
 0xd00   :  { %1418 = vst.msk [vmem:[#allocation5 + $0x8] sm:$0xff] %vm228_vm2, %v1414_v58 }
 0xd01   :  { %v971_v29 = vpop.permute.xlu0 %970 }
 0xd02   :  { %976 = vst.msk [vmem:[#allocation4] sm:$0xff] %vm228_vm2, %v971_v29 }
 0xd03   :  { %v973_v33 = vpop.permute.xlu1 %972 }
 0xd04   :  { %977 = vst.msk [vmem:[#allocation4 + $0x8] sm:$0xff] %vm228_vm2, %v973_v33 }
 0xd05   :  { %v1590_v52 = vld [vmem:[#allocation5] sm:$0xff]  ;;  %v1227_v0 = vpop.permute.xlu0 %1226 }
 0xd06   :  { %v1232_v10 = vmul.f32 %v3073_v6, %v1227_v0 }
 0xd07   :  { %v1591_v62 = vld [vmem:[#allocation5 + $0x8] sm:$0xff]  ;;  %v1229_v12 = vpop.permute.xlu1 %1228 }
 0xd08   :  { %v1592_v5 = vpack.c.bf16 %v1591_v62, %v1590_v52  ;;  %v1233_v19 = vmul.f32 %v3075_v16, %v1229_v12 }
 0xd09   :  { %v1198_v3 = vld [vmem:[#allocation4] sm:$0xff] }
 0xd0a   :  { %1216 = vrot.lane.b32.xlu0 %v1198_v3, %s3238_s16  ;;  %2891 = vmatmul.mubr.msk.bf16.vlgmr.msra.gmra.mrb[24].mxu1 %vm228_vm2, %v1592_v5 }
 0xd0b   :  { %v1199_v14 = vld [vmem:[#allocation4 + $0x8] sm:$0xff]  ;;  %2901 = vmatpush3.bf16.msra.mxu1 %v3656_v32  ;;  %2902 = vmatprep.mubr.msk.bf16.mxu1 %vm3235_vm3, %v3234_v2 }
 0xd0c   :  { %1218 = vrot.lane.b32.xlu1 %v1199_v14, %s3238_s16  ;;  %2912 = vmatprep.subr.bf16.mxu1 %v3234_v2 }
 0xd0e   :  { %1236 = vrot.lane.b32.xlu0 %v1232_v10, %s3238_s16 }
 0xd10   :  { %1238 = vrot.lane.b32.xlu1 %v1233_v19, %s3238_s16 }
 0xd7c   :  { %v1217_v43 = vpop.permute.xlu0 %1216 }
 0xd7d   :  { %v1222_v39 = vmul.f32 %v3073_v6, %v1217_v43 }
 0xd7e   :  { %v1219_v17 = vpop.permute.xlu1 %1218 }
 0xd7f   :  { %v1223_v28 = vmul.f32 %v3075_v16, %v1219_v17 }
 0xd80   :  { %v1237_v22 = vpop.permute.xlu0 %1236 }
 0xd81   :  { %v3665_v23 = vadd.f32 %v1237_v22, %v1222_v39 }
 0xd82   :  { %v1239_v40 = vpop.permute.xlu1 %1238 }
 0xd83   :  { %3076 = vtanh.f32 %v3665_v23  ;;  %v3668_v42 = vadd.f32 %v1239_v40, %v1223_v28 }
 0xd85   :  { %3078 = vtanh.f32 %v3668_v42 }
 0xd8d   :  { %v3077_v46 = vpop.eup %3076 }
 0xd8e   :  { %1248 = vrot.lane.b32.xlu0 %v3077_v46, %s3240_s18 }
 0xd8f   :  { %v3079_v36 = vpop.eup %3078 }
 0xd90   :  { %1250 = vrot.lane.b32.xlu1 %v3079_v36, %s3240_s18 }
 0xddd   :  { %v1630_v4 = vpop.f32.mrb[24].mxu1 }
 0xdde   :  { %v2892_v49 = vpop.f32.mrb[25].mxu1 }
 0xddf   :  { %v1633_v51 = vpop.f32.mrb[26].mxu1 }
 0xde0   :  { %v2893_v11 = vpop.f32.mrb[27].mxu1 }
 0xe00   :  { %v1249_v54 = vpop.permute.xlu0 %1248 }
 0xe01   :  { %v3673_v58 = vmul.f32 %v3073_v6, %v1249_v54 }
 0xe02   :  { %v1251_v29 = vpop.permute.xlu1 %1250 }
 0xe03   :  { %1258 = vrot.lane.b32.xlu0 %v3673_v58, %s3239_s17  ;;  %v3677_v33 = vmul.f32 %v3075_v16, %v1251_v29 }
 0xe05   :  { %1260 = vrot.lane.b32.xlu1 %v3677_v33, %s3239_s17 }
 0xe07   :  { %1639 = vrot.lane.b32.xlu0 %v1630_v4, %s3236_s0 }
 0xe09   :  { %1641 = vrot.lane.b32.xlu1 %v1633_v51, %s3236_s0 }
 0xe0b   :  { %1421 = vrot.lane.b32.xlu0 %v3623_v8, %s3241_s19 }
 0xe0d   :  { %1423 = vrot.lane.b32.xlu1 %v3626_v31, %s3241_s19 }
 0xe75   :  { %v1259_v52 = vpop.permute.xlu0 %1258 }
 0xe76   :  { %1264 = vst.msk [vmem:[#allocation3] sm:$0xff] %vm228_vm2, %v1259_v52 }
 0xe77   :  { %v1261_v62 = vpop.permute.xlu1 %1260 }
 0xe78   :  { %1265 = vst.msk [vmem:[#allocation3 + $0x8] sm:$0xff] %vm228_vm2, %v1261_v62 }
 0xe79   :  { %v1640_v0 = vpop.permute.xlu0 %1639 }
 0xe7a   :  { %v1645_v3 = vadd.f32 %v1640_v0, %v3367_v30 }
 0xe7b   :  { %v1642_v5 = vpop.permute.xlu1 %1641 }
 0xe7c   :  { %3080 = vtanh.f32 %v1645_v3  ;;  %v1646_v6 = vadd.f32 %v1642_v5, %v3372_v37  ;;  %v2709_v43 = vmul.f32 -1.442695, %v1645_v3 }
 0xe7d   :  { %v1422_v10 = vpop.permute.xlu0 %1421  ;;  %v1446_v12 = vld [vmem:[#allocation3] sm:$0xff] }
 0xe7e   :  { %1427 = vst.msk [vmem:[#allocation6] sm:$0xff] %vm228_vm2, %v1422_v10  ;;  %3082 = vtanh.f32 %v1646_v6  ;;  %v2710_v39 = vmul.f32 -1.442695, %v1646_v6 }
 0xe7f   :  { %v1424_v8 = vpop.permute.xlu1 %1423  ;;  %v1447_v31 = vld [vmem:[#allocation3 + $0x8] sm:$0xff]  ;;  %3084 = vpow2.f32 %v2709_v43 }
 0xe80   :  { %1428 = vst.msk [vmem:[#allocation6 + $0x8] sm:$0xff] %vm228_vm2, %v1424_v8  ;;  %v1448_v14 = vpack.c.bf16 %v1447_v31, %v1446_v12  ;;  %3086 = vpow2.f32 %v2710_v39 }
 0xe82   :  { %2885 = vmatmul.mubr.msk.bf16.vlgmr.msra.gmra.mrb[24].mxu0 %vm228_vm2, %v1448_v14 }
 0xe83   :  { %2895 = vmatpush3.bf16.msra.mxu0 %v3614_v38  ;;  %2896 = vmatprep.mubr.msk.bf16.mxu0 %vm3235_vm3, %v3234_v2 }
 0xe84   :  { %2906 = vmatprep.subr.bf16.mxu0 %v3234_v2 }
 0xe85   :  { %v1647_v16 = vld [vmem:[#allocation6] sm:$0xff] }
 0xe86   :  { %v3081_v30 = vpop.eup %3080 }
 0xe87   :  { %1675 = vrot.lane.b32.xlu0 %v3081_v30, %s3237_s4  ;;  %v1648_v19 = vld [vmem:[#allocation6 + $0x8] sm:$0xff] }
 0xe88   :  { %v3083_v37 = vpop.eup %3082 }
 0xe89   :  { %1677 = vrot.lane.b32.xlu1 %v3083_v37, %s3237_s4  ;;  %v3085_v17 = vpop.eup %3084 }
 0xe8a   :  { %v3087_v22 = vpop.eup %3086  ;;  %v1655_v28 = vadd.f32 1.0, %v3085_v17 }
 0xe8b   :  { %1665 = vrot.lane.b32.xlu0 %v1647_v16, %s3239_s17  ;;  %v1656_v40 = vadd.f32 1.0, %v3087_v22 }
 0xe8c   :  { %3088 = vrcp.f32 %v1655_v28 }
 0xe8d   :  { %1667 = vrot.lane.b32.xlu1 %v1648_v19, %s3239_s17  ;;  %3090 = vrcp.f32 %v1656_v40 }
 0xe96   :  { %v3089_v46 = vpop.eup %3088 }
 0xe97   :  { %v3091_v49 = vpop.eup %3090 }
 0xef9   :  { %v1676_v36 = vpop.permute.xlu0 %1675 }
 0xefa   :  { %v1681_v4 = vmul.f32 %v3089_v46, %v1676_v36 }
 0xefb   :  { %v1678_v51 = vpop.permute.xlu1 %1677 }
 0xefc   :  { %1685 = vrot.lane.b32.xlu0 %v1681_v4, %s3238_s16  ;;  %v1682_v11 = vmul.f32 %v3091_v49, %v1678_v51 }
 0xefd   :  { %v1666_v0 = vpop.permute.xlu0 %1665 }
 0xefe   :  { %1687 = vrot.lane.b32.xlu1 %v1682_v11, %s3238_s16  ;;  %v1671_v3 = vmul.f32 %v3089_v46, %v1666_v0 }
 0xeff   :  { %v1668_v5 = vpop.permute.xlu1 %1667 }
 0xf00   :  { %v1672_v8 = vmul.f32 %v3091_v49, %v1668_v5 }
 0xf55   :  { %v1486_v54 = vpop.f32.mrb[24].mxu0 }
 0xf56   :  { %v2886_v29 = vpop.f32.mrb[25].mxu0  ;;  %v1493_v14 = vadd.f32 %v1486_v54, %v3380_v47 }
 0xf57   :  { %v1489_v52 = vpop.f32.mrb[26].mxu0 }
 0xf58   :  { %v2887_v62 = vpop.f32.mrb[27].mxu0  ;;  %v1494_v30 = vadd.f32 %v1489_v52, %v3384_v53  ;;  %v2704_v53 = vmul.f32 -1.442695, %v1493_v14 }
 0xf5a   :  { %v2705_v43 = vmul.f32 -1.442695, %v1494_v30 }
 0xf6e   :  { %v1686_v6 = vpop.permute.xlu0 %1685 }
 0xf6f   :  { %v3704_v10 = vadd.f32 %v1686_v6, %v1671_v3 }
 0xf70   :  { %v1688_v12 = vpop.permute.xlu1 %1687 }
 0xf71   :  { %3092 = vtanh.f32 %v3704_v10  ;;  %v3707_v31 = vadd.f32 %v1688_v12, %v1672_v8 }
 0xf73   :  { %3094 = vtanh.f32 %v3707_v31 }
 0xf74   :  { %3096 = vtanh.f32 %v1493_v14 }
 0xf75   :  { %3098 = vtanh.f32 %v1494_v30 }
 0xf76   :  { %3100 = vpow2.f32 %v2704_v53 }
 0xf77   :  { %3102 = vpow2.f32 %v2705_v43 }
 0xf7b   :  { %v3093_v37 = vpop.eup %3092 }
 0xf7c   :  { %1697 = vrot.lane.b32.xlu0 %v3093_v37, %s3240_s18 }
 0xf7d   :  { %v3095_v16 = vpop.eup %3094 }
 0xf7e   :  { %1699 = vrot.lane.b32.xlu1 %v3095_v16, %s3240_s18  ;;  %v3097_v19 = vpop.eup %3096 }
 0xf7f   :  { %v3099_v47 = vpop.eup %3098 }
 0xf80   :  { %1268 = vrot.lane.b32.xlu0 %v3665_v23, %s3242_s20  ;;  %v3101_v39 = vpop.eup %3100 }
 0xf81   :  { %v3103_v17 = vpop.eup %3102  ;;  %v1503_v22 = vadd.f32 1.0, %v3101_v39 }
 0xf82   :  { %1270 = vrot.lane.b32.xlu1 %v3668_v42, %s3242_s20  ;;  %v1504_v23 = vadd.f32 1.0, %v3103_v17 }
 0xf83   :  { %3104 = vrcp.f32 %v1503_v22 }
 0xf84   :  { %1523 = vrot.lane.b32.xlu0 %v3097_v19, %s3237_s4  ;;  %3106 = vrcp.f32 %v1504_v23 }
 0xf86   :  { %1525 = vrot.lane.b32.xlu1 %v3099_v47, %s3237_s4 }
 0xf8d   :  { %v3105_v54 = vpop.eup %3104 }
 0xfee   :  { %v1698_v28 = vpop.permute.xlu0 %1697 }
 0xfef   :  { %v3720_v40 = vmul.f32 %v3089_v46, %v1698_v28 }
 0xff0   :  { %v1700_v36 = vpop.permute.xlu1 %1699 }
 0xff1   :  { %1707 = vrot.lane.b32.xlu0 %v3720_v40, %s3238_s16  ;;  %v3724_v42 = vmul.f32 %v3091_v49, %v1700_v36  ;;  %v3107_v49 = vpop.eup %3106 }
 0xff2   :  { %v1269_v4 = vpop.permute.xlu0 %1268 }
 0xff3   :  { %1274 = vst.msk [vmem:[#allocation4] sm:$0xff] %vm228_vm2, %v1269_v4  ;;  %1709 = vrot.lane.b32.xlu1 %v3724_v42, %s3238_s16 }
 0xff4   :  { %v1271_v51 = vpop.permute.xlu1 %1270 }
 0xff5   :  { %1275 = vst.msk [vmem:[#allocation4 + $0x8] sm:$0xff] %vm228_vm2, %v1271_v51 }
 0xff6   :  { %v1524_v46 = vpop.permute.xlu0 %1523 }
 0xff7   :  { %v1529_v29 = vmul.f32 %v3105_v54, %v1524_v46 }
 0xff8   :  { %v1526_v52 = vpop.permute.xlu1 %1525 }
 0xff9   :  { %v1530_v0 = vmul.f32 %v3107_v49, %v1526_v52 }
 0xffa   :  { %v1495_v11 = vld [vmem:[#allocation4] sm:$0xff] }
 0xffb   :  { %1513 = vrot.lane.b32.xlu0 %v1495_v11, %s3238_s16 }
 0xffc   :  { %v1496_v62 = vld [vmem:[#allocation4 + $0x8] sm:$0xff] }
 0xffd   :  { %1515 = vrot.lane.b32.xlu1 %v1496_v62, %s3238_s16 }
 0xfff   :  { %1533 = vrot.lane.b32.xlu0 %v1529_v29, %s3238_s16 }
0x1001   :  { %1535 = vrot.lane.b32.xlu1 %v1530_v0, %s3238_s16 }
0x1063   :  { %v1708_v3 = vpop.permute.xlu0 %1707 }
0x1064   :  { %1713 = vst.msk [vmem:[#allocation5] sm:$0xff] %vm228_vm2, %v1708_v3 }
0x1065   :  { %v1710_v5 = vpop.permute.xlu1 %1709 }
0x1066   :  { %1714 = vst.msk [vmem:[#allocation5 + $0x8] sm:$0xff] %vm228_vm2, %v1710_v5 }
0x106b   :  { %v1886_v8 = vld [vmem:[#allocation5] sm:$0xff] }
0x106d   :  { %v1514_v6 = vpop.permute.xlu0 %1513  ;;  %v1887_v12 = vld [vmem:[#allocation5 + $0x8] sm:$0xff] }
0x106e   :  { %v1888_v14 = vpack.c.bf16 %v1887_v12, %v1886_v8  ;;  %v1519_v30 = vmul.f32 %v3105_v54, %v1514_v6 }
0x106f   :  { %v1516_v37 = vpop.permute.xlu1 %1515 }
0x1070   :  { %2903 = vmatmul.mubr.msk.bf16.vlgmr.msra.gmra.mrb[28].mxu1 %vm228_vm2, %v1888_v14  ;;  %v1520_v47 = vmul.f32 %v3107_v49, %v1516_v37 }
0x1071   :  { %v1534_v16 = vpop.permute.xlu0 %1533  ;;  %2913 = vmatpush3.bf16.msra.mxu1 %v3656_v32  ;;  %2914 = vmatprep.mubr.msk.bf16.mxu1 %vm3235_vm3, %v3234_v2 }
0x1072   :  { %v3737_v19 = vadd.f32 %v1534_v16, %v1519_v30  ;;  %2924 = vmatprep.subr.bf16.mxu1 %v3234_v2 }
0x1073   :  { %v1536_v53 = vpop.permute.xlu1 %1535 }
0x1074   :  { %3108 = vtanh.f32 %v3737_v19  ;;  %v3744_v43 = vadd.f32 %v1536_v53, %v1520_v47 }
0x1076   :  { %3110 = vtanh.f32 %v3744_v43 }
0x107e   :  { %v3109_v39 = vpop.eup %3108 }
0x107f   :  { %1545 = vrot.lane.b32.xlu0 %v3109_v39, %s3240_s18 }
0x1080   :  { %v3111_v17 = vpop.eup %3110 }
0x1081   :  { %1547 = vrot.lane.b32.xlu1 %v3111_v17, %s3240_s18 }
0x10f1   :  { %v1546_v22 = vpop.permute.xlu0 %1545 }
0x10f2   :  { %v3749_v28 = vmul.f32 %v3105_v54, %v1546_v22 }
0x10f3   :  { %v1548_v23 = vpop.permute.xlu1 %1547 }
0x10f4   :  { %1555 = vrot.lane.b32.xlu0 %v3749_v28, %s3239_s17  ;;  %v3753_v36 = vmul.f32 %v3107_v49, %v1548_v23 }
0x10f6   :  { %1557 = vrot.lane.b32.xlu1 %v3753_v36, %s3239_s17 }
0x1143   :  { %v1926_v4 = vpop.f32.mrb[28].mxu1 }
0x1144   :  { %1935 = vrot.lane.b32.xlu0 %v1926_v4, %s3236_s0  ;;  %v2904_v51 = vpop.f32.mrb[29].mxu1 }
0x1145   :  { %v1929_v46 = vpop.f32.mrb[30].mxu1 }
0x1146   :  { %1937 = vrot.lane.b32.xlu1 %v1929_v46, %s3236_s0  ;;  %v2905_v11 = vpop.f32.mrb[31].mxu1 }
0x1148   :  { %1717 = vrot.lane.b32.xlu0 %v3704_v10, %s3241_s19 }
0x114a   :  { %1719 = vrot.lane.b32.xlu1 %v3707_v31, %s3241_s19 }
0x1166   :  { %v1556_v54 = vpop.permute.xlu0 %1555 }
0x1167   :  { %1561 = vst.msk [vmem:[#allocation3] sm:$0xff] %vm228_vm2, %v1556_v54 }
0x1168   :  { %v1558_v29 = vpop.permute.xlu1 %1557 }
0x1169   :  { %1562 = vst.msk [vmem:[#allocation3 + $0x8] sm:$0xff] %vm228_vm2, %v1558_v29 }
0x116e   :  { %v1742_v52 = vld [vmem:[#allocation3] sm:$0xff] }
0x1170   :  { %v1743_v62 = vld [vmem:[#allocation3 + $0x8] sm:$0xff] }
0x1171   :  { %v1744_v49 = vpack.c.bf16 %v1743_v62, %v1742_v52 }
0x1173   :  { %2897 = vmatmul.mubr.msk.bf16.vlgmr.msra.gmra.mrb[28].mxu0 %vm228_vm2, %v1744_v49 }
0x1174   :  { %2907 = vmatpush3.bf16.msra.mxu0 %v3614_v38  ;;  %2908 = vmatprep.mubr.msk.bf16.mxu0 %vm3235_vm3, %v3234_v2 }
0x1175   :  { %2918 = vmatprep.subr.bf16.mxu0 %v3234_v2 }
0x11b6   :  { %v1936_v10 = vpop.permute.xlu0 %1935 }
0x11b7   :  { %v1941_v31 = vadd.f32 %v1936_v10, %v3370_v34 }
0x11b8   :  { %v1938_v0 = vpop.permute.xlu1 %1937 }
0x11b9   :  { %3112 = vtanh.f32 %v1941_v31  ;;  %v1942_v3 = vadd.f32 %v1938_v0, %v3375_v41  ;;  %v2719_v41 = vmul.f32 -1.442695, %v1941_v31 }
0x11ba   :  { %v1718_v5 = vpop.permute.xlu0 %1717 }
0x11bb   :  { %1723 = vst.msk [vmem:[#allocation6] sm:$0xff] %vm228_vm2, %v1718_v5  ;;  %3114 = vtanh.f32 %v1942_v3  ;;  %v2720_v30 = vmul.f32 -1.442695, %v1942_v3 }
0x11bc   :  { %v1720_v6 = vpop.permute.xlu1 %1719  ;;  %3116 = vpow2.f32 %v2719_v41 }
0x11bd   :  { %1724 = vst.msk [vmem:[#allocation6 + $0x8] sm:$0xff] %vm228_vm2, %v1720_v6  ;;  %3118 = vpow2.f32 %v2720_v30 }
0x11c2   :  { %v1943_v14 = vld [vmem:[#allocation6] sm:$0xff] }
0x11c3   :  { %v3113_v8 = vpop.eup %3112 }
0x11c4   :  { %1971 = vrot.lane.b32.xlu0 %v3113_v8, %s3237_s4  ;;  %v1944_v34 = vld [vmem:[#allocation6 + $0x8] sm:$0xff] }
0x11c5   :  { %v3115_v12 = vpop.eup %3114 }
0x11c6   :  { %1973 = vrot.lane.b32.xlu1 %v3115_v12, %s3237_s4  ;;  %v3117_v37 = vpop.eup %3116 }
0x11c7   :  { %v3119_v16 = vpop.eup %3118  ;;  %v1951_v47 = vadd.f32 1.0, %v3117_v37 }
0x11c8   :  { %1961 = vrot.lane.b32.xlu0 %v1943_v14, %s3239_s17  ;;  %v1952_v53 = vadd.f32 1.0, %v3119_v16 }
0x11c9   :  { %3120 = vrcp.f32 %v1951_v47 }
0x11ca   :  { %1963 = vrot.lane.b32.xlu1 %v1944_v34, %s3239_s17  ;;  %3122 = vrcp.f32 %v1952_v53 }
0x11d3   :  { %v3778_v39 = vpop.eup %3120 }
0x11d4   :  { %v3781_v23 = vpop.eup %3122 }
0x1236   :  { %v1972_v17 = vpop.permute.xlu0 %1971 }
0x1237   :  { %v1977_v22 = vmul.f32 %v3778_v39, %v1972_v17 }
0x1238   :  { %v1974_v4 = vpop.permute.xlu1 %1973 }
0x1239   :  { %1981 = vrot.lane.b32.xlu0 %v1977_v22, %s3238_s16  ;;  %v1978_v51 = vmul.f32 %v3781_v23, %v1974_v4 }
0x123b   :  { %1983 = vrot.lane.b32.xlu1 %v1978_v51, %s3238_s16 }
0x123c   :  { %v1964_v3 = vpop.permute.xlu1 %1963 }
0x123d   :  { %1565 = vrot.lane.b32.xlu0 %v3737_v19, %s3242_s20  ;;  %v1962_v19 = vpop.permute.xlu0 %1961 }
0x123f   :  { %1567 = vrot.lane.b32.xlu1 %v3744_v43, %s3242_s20  ;;  %v1967_v43 = vmul.f32 %v3778_v39, %v1962_v19 }
0x1246   :  { %v1782_v46 = vpop.f32.mrb[28].mxu0 }
0x1247   :  { %v1789_v11 = vadd.f32 %v1782_v46, %v3377_v44  ;;  %v2898_v54 = vpop.f32.mrb[29].mxu0 }
0x1248   :  { %v1785_v29 = vpop.f32.mrb[30].mxu0 }
0x1249   :  { %3124 = vtanh.f32 %v1789_v11  ;;  %v1790_v52 = vadd.f32 %v1785_v29, %v3382_v50  ;;  %v2899_v62 = vpop.f32.mrb[31].mxu0  ;;  %v2714_v31 = vmul.f32 -1.442695, %v1789_v11  ;;  %v1968_v50 = vmul.f32 %v3781_v23, %v1964_v3 }
0x124b   :  { %3126 = vtanh.f32 %v1790_v52  ;;  %v2715_v0 = vmul.f32 -1.442695, %v1790_v52 }
0x124c   :  { %3128 = vpow2.f32 %v2714_v31 }
0x124d   :  { %3130 = vpow2.f32 %v2715_v0 }
0x1253   :  { %v3125_v49 = vpop.eup %3124 }
0x1254   :  { %1819 = vrot.lane.b32.xlu0 %v3125_v49, %s3237_s4 }
0x1255   :  { %v3127_v10 = vpop.eup %3126 }
0x1256   :  { %1821 = vrot.lane.b32.xlu1 %v3127_v10, %s3237_s4  ;;  %v3129_v34 = vpop.eup %3128 }
0x1257   :  { %v3131_v41 = vpop.eup %3130  ;;  %v1799_v37 = vadd.f32 1.0, %v3129_v34 }
0x1258   :  { %v1800_v47 = vadd.f32 1.0, %v3131_v41 }
0x12ab   :  { %v1982_v44 = vpop.permute.xlu0 %1981 }
0x12ac   :  { %v3795_v5 = vadd.f32 %v1982_v44, %v1967_v43 }
0x12ad   :  { %v1984_v6 = vpop.permute.xlu1 %1983 }
0x12ae   :  { %3132 = vtanh.f32 %v3795_v5  ;;  %v3799_v8 = vadd.f32 %v1984_v6, %v1968_v50 }
0x12af   :  { %v1566_v12 = vpop.permute.xlu0 %1565 }
0x12b0   :  { %1571 = vst.msk [vmem:[#allocation4] sm:$0xff] %vm228_vm2, %v1566_v12  ;;  %3134 = vtanh.f32 %v3799_v8 }
0x12b1   :  { %v1568_v14 = vpop.permute.xlu1 %1567  ;;  %3136 = vrcp.f32 %v1799_v37 }
0x12b2   :  { %1572 = vst.msk [vmem:[#allocation4 + $0x8] sm:$0xff] %vm228_vm2, %v1568_v14  ;;  %3138 = vrcp.f32 %v1800_v47 }
0x12b7   :  { %v1791_v53 = vld [vmem:[#allocation4] sm:$0xff] }
0x12b8   :  { %v3133_v30 = vpop.eup %3132 }
0x12b9   :  { %1993 = vrot.lane.b32.xlu0 %v3133_v30, %s3240_s18  ;;  %v1792_v17 = vld [vmem:[#allocation4 + $0x8] sm:$0xff] }
0x12ba   :  { %v3135_v16 = vpop.eup %3134 }
0x12bb   :  { %1995 = vrot.lane.b32.xlu1 %v3135_v16, %s3240_s18  ;;  %v3137_v22 = vpop.eup %3136 }
0x12bc   :  { %v3139_v46 = vpop.eup %3138 }
0x12bd   :  { %1809 = vrot.lane.b32.xlu0 %v1791_v53, %s3238_s16 }
0x12bf   :  { %1811 = vrot.lane.b32.xlu1 %v1792_v17, %s3238_s16 }
0x12c6   :  { %v1820_v4 = vpop.permute.xlu0 %1819 }
0x12c7   :  { %v1825_v51 = vmul.f32 %v3137_v22, %v1820_v4 }
0x12c8   :  { %v1822_v11 = vpop.permute.xlu1 %1821 }
0x12c9   :  { %1829 = vrot.lane.b32.xlu0 %v1825_v51, %s3238_s16  ;;  %v1826_v54 = vmul.f32 %v3139_v46, %v1822_v11 }
0x12cb   :  { %1831 = vrot.lane.b32.xlu1 %v1826_v54, %s3238_s16 }
0x132b   :  { %v1994_v29 = vpop.permute.xlu0 %1993 }
0x132c   :  { %v3811_v52 = vmul.f32 %v3778_v39, %v1994_v29 }
0x132d   :  { %v1996_v62 = vpop.permute.xlu1 %1995 }
0x132e   :  { %2003 = vrot.lane.b32.xlu0 %v3811_v52, %s3238_s16  ;;  %v3816_v49 = vmul.f32 %v3781_v23, %v1996_v62 }
0x132f   :  { %v1810_v10 = vpop.permute.xlu0 %1809 }
0x1330   :  { %2005 = vrot.lane.b32.xlu1 %v3816_v49, %s3238_s16  ;;  %v1815_v19 = vmul.f32 %v3137_v22, %v1810_v10 }
0x1331   :  { %v1812_v31 = vpop.permute.xlu1 %1811 }
0x1332   :  { %v1816_v3 = vmul.f32 %v3139_v46, %v1812_v31 }
0x133b   :  { %v1830_v0 = vpop.permute.xlu0 %1829 }
0x133c   :  { %v1835_v43 = vadd.f32 %v1830_v0, %v1815_v19 }
0x133d   :  { %v1832_v44 = vpop.permute.xlu1 %1831 }
0x133e   :  { %3140 = vtanh.f32 %v1835_v43  ;;  %v1836_v39 = vadd.f32 %v1832_v44, %v1816_v3 }
0x1340   :  { %3142 = vtanh.f32 %v1836_v39 }
0x1348   :  { %v3141_v50 = vpop.eup %3140 }
0x1349   :  { %1841 = vrot.lane.b32.xlu0 %v3141_v50, %s3240_s18 }
0x134a   :  { %v3143_v6 = vpop.eup %3142 }
0x134b   :  { %1843 = vrot.lane.b32.xlu1 %v3143_v6, %s3240_s18 }
0x13a0   :  { %v2004_v23 = vpop.permute.xlu0 %2003 }
0x13a1   :  { %2009 = vst.msk [vmem:[#allocation5] sm:$0xff] %vm228_vm2, %v2004_v23 }
0x13a2   :  { %v2006_v12 = vpop.permute.xlu1 %2005 }
0x13a3   :  { %2010 = vst.msk [vmem:[#allocation5 + $0x8] sm:$0xff] %vm228_vm2, %v2006_v12 }
0x13a8   :  { %v2182_v14 = vld [vmem:[#allocation5] sm:$0xff] }
0x13aa   :  { %v2183_v34 = vld [vmem:[#allocation5 + $0x8] sm:$0xff] }
0x13ab   :  { %v2184_v41 = vpack.c.bf16 %v2183_v34, %v2182_v14 }
0x13ad   :  { %2915 = vmatmul.mubr.msk.bf16.vlgmr.msra.gmra.mrb[32].mxu1 %vm228_vm2, %v2184_v41 }
0x13ae   :  { %2925 = vmatpush3.bf16.msra.mxu1 %v3656_v32  ;;  %2926 = vmatprep.mubr.msk.bf16.mxu1 %vm3235_vm3, %v3234_v2 }
0x13bb   :  { %v1842_v30 = vpop.permute.xlu0 %1841 }
0x13bc   :  { %v3828_v37 = vmul.f32 %v3137_v22, %v1842_v30 }
0x13bd   :  { %v1844_v16 = vpop.permute.xlu1 %1843 }
0x13be   :  { %1851 = vrot.lane.b32.xlu0 %v3828_v37, %s3239_s17  ;;  %v3832_v47 = vmul.f32 %v3139_v46, %v1844_v16 }
0x13c0   :  { %1853 = vrot.lane.b32.xlu1 %v3832_v47, %s3239_s17 }
0x1430   :  { %v1852_v53 = vpop.permute.xlu0 %1851 }
0x1431   :  { %1857 = vst.msk [vmem:[#allocation3] sm:$0xff] %vm228_vm2, %v1852_v53 }
0x1432   :  { %v1854_v17 = vpop.permute.xlu1 %1853 }
0x1433   :  { %1858 = vst.msk [vmem:[#allocation3 + $0x8] sm:$0xff] %vm228_vm2, %v1854_v17 }
0x1438   :  { %v2038_v32 = vld [vmem:[#allocation3] sm:$0xff] }
0x143a   :  { %v2039_v4 = vld [vmem:[#allocation3 + $0x8] sm:$0xff] }
0x143b   :  { %v2040_v51 = vpack.c.bf16 %v2039_v4, %v2038_v32 }
0x143d   :  { %2909 = vmatmul.mubr.msk.bf16.vlgmr.msra.gmra.mrb[32].mxu0 %vm228_vm2, %v2040_v51 }
0x143e   :  { %2919 = vmatpush3.bf16.msra.mxu0 %v3614_v38  ;;  %2920 = vmatprep.mubr.msk.bf16.mxu0 %vm3235_vm3, %v3234_v2 }
0x1480   :  { %v2222_v22 = vpop.f32.mrb[32].mxu1 }
0x1481   :  { %2231 = vrot.lane.b32.xlu0 %v2222_v22, %s3236_s0  ;;  %v2916_v46 = vpop.f32.mrb[33].mxu1 }
0x1482   :  { %v2225_v11 = vpop.f32.mrb[34].mxu1 }
0x1483   :  { %2233 = vrot.lane.b32.xlu1 %v2225_v11, %s3236_s0  ;;  %v2917_v54 = vpop.f32.mrb[35].mxu1 }
0x1485   :  { %2013 = vrot.lane.b32.xlu0 %v3795_v5, %s3241_s19 }
0x1487   :  { %2015 = vrot.lane.b32.xlu1 %v3799_v8, %s3241_s19 }
0x14f3   :  { %v2232_v29 = vpop.permute.xlu0 %2231 }
0x14f4   :  { %v2237_v38 = vadd.f32 %v2232_v29, %v3359_v21 }
0x14f5   :  { %v2234_v62 = vpop.permute.xlu1 %2233 }
0x14f6   :  { %3144 = vtanh.f32 %v2237_v38  ;;  %v2238_v2 = vadd.f32 %v2234_v62, %v3361_v24 }
0x14f7   :  { %v2014_v10 = vpop.permute.xlu0 %2013 }
0x14f8   :  { %2019 = vst.msk [vmem:[#allocation6] sm:$0xff] %vm228_vm2, %v2014_v10  ;;  %3146 = vtanh.f32 %v2238_v2 }
0x14f9   :  { %v2016_v19 = vpop.permute.xlu1 %2015 }
0x14fa   :  { %2020 = vst.msk [vmem:[#allocation6 + $0x8] sm:$0xff] %vm228_vm2, %v2016_v19 }
0x14ff   :  { %v2239_v23 = vld [vmem:[#allocation6] sm:$0xff] }
0x1500   :  { %v3145_v31 = vpop.eup %3144 }
0x1501   :  { %2267 = vrot.lane.b32.xlu0 %v3145_v31, %s3237_s4 }
0x1502   :  { %v3147_v5 = vpop.eup %3146 }
0x1503   :  { %2269 = vrot.lane.b32.xlu1 %v3147_v5, %s3237_s4 }
0x1505   :  { %1861 = vrot.lane.b32.xlu0 %v1835_v43, %s3242_s20  ;;  %v2240_v43 = vld [vmem:[#allocation6 + $0x8] sm:$0xff] }
0x1507   :  { %1863 = vrot.lane.b32.xlu1 %v1836_v39, %s3242_s20  ;;  %v2730_v39 = vmul.f32 -1.442695, %v2238_v2 }
0x1510   :  { %v2078_v21 = vpop.f32.mrb[32].mxu0 }
0x1511   :  { %v2085_v24 = vadd.f32 %v2078_v21, %v3390_v59  ;;  %v2910_v8 = vpop.f32.mrb[33].mxu0  ;;  %v2729_v59 = vmul.f32 -1.442695, %v2237_v38 }
0x1512   :  { %v2081_v0 = vpop.f32.mrb[34].mxu0 }
0x1513   :  { %3148 = vtanh.f32 %v2085_v24  ;;  %v2086_v3 = vadd.f32 %v2081_v0, %v3395_v63  ;;  %v2911_v44 = vpop.f32.mrb[35].mxu0  ;;  %v2724_v41 = vmul.f32 -1.442695, %v2085_v24 }
0x1515   :  { %3150 = vtanh.f32 %v2086_v3  ;;  %v2725_v53 = vmul.f32 -1.442695, %v2086_v3 }
0x1516   :  { %3152 = vpow2.f32 %v2729_v59 }
0x1517   :  { %3154 = vpow2.f32 %v2730_v39 }
0x151d   :  { %v3149_v50 = vpop.eup %3148 }
0x151e   :  { %2115 = vrot.lane.b32.xlu0 %v3149_v50, %s3237_s4 }
0x151f   :  { %v3151_v6 = vpop.eup %3150 }
0x1520   :  { %2117 = vrot.lane.b32.xlu1 %v3151_v6, %s3237_s4  ;;  %v3153_v12 = vpop.eup %3152 }
0x1521   :  { %v3155_v63 = vpop.eup %3154  ;;  %v2247_v14 = vadd.f32 1.0, %v3153_v12 }
0x1522   :  { %2257 = vrot.lane.b32.xlu0 %v2239_v23, %s3239_s17  ;;  %v2248_v34 = vadd.f32 1.0, %v3155_v63 }
0x1523   :  { %3156 = vrcp.f32 %v2247_v14 }
0x1524   :  { %2259 = vrot.lane.b32.xlu1 %v2240_v43, %s3239_s17  ;;  %3158 = vrcp.f32 %v2248_v34 }
0x1525   :  { %3160 = vpow2.f32 %v2724_v41 }
0x1526   :  { %3162 = vpow2.f32 %v2725_v53 }
0x152d   :  { %v3157_v30 = vpop.eup %3156 }
0x152e   :  { %v3159_v32 = vpop.eup %3158 }
0x152f   :  { %v3161_v11 = vpop.eup %3160 }
0x1530   :  { %v3163_v29 = vpop.eup %3162  ;;  %v2095_v38 = vadd.f32 1.0, %v3161_v11 }
0x1531   :  { %v2096_v2 = vadd.f32 1.0, %v3163_v29 }
0x1532   :  { %3164 = vrcp.f32 %v2095_v38 }
0x1533   :  { %3166 = vrcp.f32 %v2096_v2 }
0x153c   :  { %v3165_v10 = vpop.eup %3164 }
0x153d   :  { %v3167_v5 = vpop.eup %3166 }
0x1573   :  { %v2268_v16 = vpop.permute.xlu0 %2267 }
0x1574   :  { %v2273_v17 = vmul.f32 %v3157_v30, %v2268_v16 }
0x1575   :  { %v2270_v4 = vpop.permute.xlu1 %2269 }
0x1576   :  { %2277 = vrot.lane.b32.xlu0 %v2273_v17, %s3238_s16  ;;  %v2274_v51 = vmul.f32 %v3159_v32, %v2270_v4 }
0x1577   :  { %v1862_v22 = vpop.permute.xlu0 %1861 }
0x1578   :  { %1867 = vst.msk [vmem:[#allocation4] sm:$0xff] %vm228_vm2, %v1862_v22  ;;  %2279 = vrot.lane.b32.xlu1 %v2274_v51, %s3238_s16 }
0x1579   :  { %v1864_v46 = vpop.permute.xlu1 %1863 }
0x157a   :  { %1868 = vst.msk [vmem:[#allocation4 + $0x8] sm:$0xff] %vm228_vm2, %v1864_v46 }
0x157f   :  { %v2087_v54 = vld [vmem:[#allocation4] sm:$0xff] }
0x1580   :  { %2105 = vrot.lane.b32.xlu0 %v2087_v54, %s3238_s16 }
0x1581   :  { %v2088_v62 = vld [vmem:[#allocation4 + $0x8] sm:$0xff] }
0x1582   :  { %2107 = vrot.lane.b32.xlu1 %v2088_v62, %s3238_s16 }
0x1590   :  { %v2116_v19 = vpop.permute.xlu0 %2115 }
0x1591   :  { %v2121_v31 = vmul.f32 %v3165_v10, %v2116_v19 }
0x1592   :  { %v2118_v21 = vpop.permute.xlu1 %2117 }
0x1593   :  { %2125 = vrot.lane.b32.xlu0 %v2121_v31, %s3238_s16  ;;  %v2122_v24 = vmul.f32 %v3167_v5, %v2118_v21 }
0x1594   :  { %v2258_v8 = vpop.permute.xlu0 %2257 }
0x1595   :  { %2127 = vrot.lane.b32.xlu1 %v2122_v24, %s3238_s16  ;;  %v2263_v0 = vmul.f32 %v3157_v30, %v2258_v8 }
0x1596   :  { %v2260_v3 = vpop.permute.xlu1 %2259 }
0x1597   :  { %v2264_v6 = vmul.f32 %v3159_v32, %v2260_v3 }
0x15e8   :  { %v2278_v44 = vpop.permute.xlu0 %2277 }
0x15e9   :  { %v2283_v50 = vadd.f32 %v2278_v44, %v2263_v0 }
0x15ea   :  { %v2280_v23 = vpop.permute.xlu1 %2279 }
0x15eb   :  { %3168 = vtanh.f32 %v2283_v50  ;;  %v2284_v43 = vadd.f32 %v2280_v23, %v2264_v6 }
0x15ed   :  { %3170 = vtanh.f32 %v2284_v43 }
0x15f2   :  { %v2106_v12 = vpop.permute.xlu0 %2105 }
0x15f3   :  { %v2111_v63 = vmul.f32 %v3165_v10, %v2106_v12 }
0x15f4   :  { %v2108_v14 = vpop.permute.xlu1 %2107 }
0x15f5   :  { %v3169_v59 = vpop.eup %3168  ;;  %v2112_v16 = vmul.f32 %v3167_v5, %v2108_v14 }
0x15f6   :  { %2289 = vrot.lane.b32.xlu0 %v3169_v59, %s3240_s18 }
0x15f7   :  { %v3171_v39 = vpop.eup %3170 }
0x15f8   :  { %2291 = vrot.lane.b32.xlu1 %v3171_v39, %s3240_s18 }
0x1605   :  { %v2126_v34 = vpop.permute.xlu0 %2125 }
0x1606   :  { %v2131_v41 = vadd.f32 %v2126_v34, %v2111_v63 }
0x1607   :  { %v2128_v53 = vpop.permute.xlu1 %2127 }
0x1608   :  { %3172 = vtanh.f32 %v2131_v41  ;;  %v2132_v17 = vadd.f32 %v2128_v53, %v2112_v16 }
0x160a   :  { %3174 = vtanh.f32 %v2132_v17 }
0x1612   :  { %v3173_v4 = vpop.eup %3172 }
0x1613   :  { %2137 = vrot.lane.b32.xlu0 %v3173_v4, %s3240_s18 }
0x1614   :  { %v3175_v51 = vpop.eup %3174 }
0x1615   :  { %2139 = vrot.lane.b32.xlu1 %v3175_v51, %s3240_s18 }
0x1668   :  { %v2290_v22 = vpop.permute.xlu0 %2289 }
0x1669   :  { %v3874_v46 = vmul.f32 %v3157_v30, %v2290_v22 }
0x166a   :  { %v2292_v11 = vpop.permute.xlu1 %2291 }
0x166b   :  { %2299 = vrot.lane.b32.xlu0 %v3874_v46, %s3238_s16  ;;  %v3878_v54 = vmul.f32 %v3159_v32, %v2292_v11 }
0x166d   :  { %2301 = vrot.lane.b32.xlu1 %v3878_v54, %s3238_s16 }
0x1685   :  { %v2138_v29 = vpop.permute.xlu0 %2137 }
0x1686   :  { %v3882_v38 = vmul.f32 %v3165_v10, %v2138_v29 }
0x1687   :  { %v2140_v62 = vpop.permute.xlu1 %2139 }
0x1688   :  { %2147 = vrot.lane.b32.xlu0 %v3882_v38, %s3239_s17  ;;  %v3886_v2 = vmul.f32 %v3167_v5, %v2140_v62 }
0x168a   :  { %2149 = vrot.lane.b32.xlu1 %v3886_v2, %s3239_s17 }
0x16dd   :  { %v2300_v30 = vpop.permute.xlu0 %2299 }
0x16de   :  { %2305 = vst.msk [vmem:[#allocation5] sm:$0xff] %vm228_vm2, %v2300_v30 }
0x16df   :  { %v2302_v32 = vpop.permute.xlu1 %2301 }
0x16e0   :  { %2306 = vst.msk [vmem:[#allocation5 + $0x8] sm:$0xff] %vm228_vm2, %v2302_v32 }
0x16e5   :  { %v2478_v19 = vld [vmem:[#allocation5] sm:$0xff] }
0x16e7   :  { %v2479_v31 = vld [vmem:[#allocation5 + $0x8] sm:$0xff] }
0x16e8   :  { %v2480_v21 = vpack.c.bf16 %v2479_v31, %v2478_v19 }
0x16ea   :  { %2927 = vmatmul.mubr.msk.bf16.vlgmr.msra.gmra.mrb[36].mxu1 %vm228_vm2, %v2480_v21 }
0x16fa   :  { %v2148_v10 = vpop.permute.xlu0 %2147 }
0x16fb   :  { %2153 = vst.msk [vmem:[#allocation3] sm:$0xff] %vm228_vm2, %v2148_v10 }
0x16fc   :  { %v2150_v24 = vpop.permute.xlu1 %2149 }
0x16fd   :  { %2154 = vst.msk [vmem:[#allocation3 + $0x8] sm:$0xff] %vm228_vm2, %v2150_v24 }
0x1702   :  { %v2334_v5 = vld [vmem:[#allocation3] sm:$0xff] }
0x1704   :  { %v2335_v8 = vld [vmem:[#allocation3 + $0x8] sm:$0xff] }
0x1705   :  { %v2336_v0 = vpack.c.bf16 %v2335_v8, %v2334_v5 }
0x1707   :  { %2921 = vmatmul.mubr.msk.bf16.vlgmr.msra.gmra.mrb[36].mxu0 %vm228_vm2, %v2336_v0 }
0x17bd   :  { %v2518_v3 = vpop.f32.mrb[36].mxu1 }
0x17be   :  { %2527 = vrot.lane.b32.xlu0 %v2518_v3, %s3236_s0  ;;  %v2928_v44 = vpop.f32.mrb[37].mxu1 }
0x17bf   :  { %v2521_v6 = vpop.f32.mrb[38].mxu1 }
0x17c0   :  { %2529 = vrot.lane.b32.xlu1 %v2521_v6, %s3236_s0  ;;  %v2929_v23 = vpop.f32.mrb[39].mxu1 }
0x17c2   :  { %2157 = vrot.lane.b32.xlu0 %v2131_v41, %s3242_s20 }
0x17c4   :  { %2159 = vrot.lane.b32.xlu1 %v2132_v17, %s3242_s20 }
0x17c6   :  { %2309 = vrot.lane.b32.xlu0 %v2283_v50, %s3241_s19 }
0x17c8   :  { %2311 = vrot.lane.b32.xlu1 %v2284_v43, %s3241_s19 }
0x17da   :  { %v2374_v59 = vpop.f32.mrb[36].mxu0 }
0x17db   :  { %v2381_v39 = vadd.f32 %v2374_v59, %v3388_v56  ;;  %v2922_v12 = vpop.f32.mrb[37].mxu0 }
0x17dc   :  { %v2377_v63 = vpop.f32.mrb[38].mxu0 }
0x17dd   :  { %3176 = vtanh.f32 %v2381_v39  ;;  %v2382_v14 = vadd.f32 %v2377_v63, %v3393_v61  ;;  %v2923_v34 = vpop.f32.mrb[39].mxu0  ;;  %v2734_v22 = vmul.f32 -1.442695, %v2381_v39 }
0x17df   :  { %3178 = vtanh.f32 %v2382_v14 }
0x17e7   :  { %v3177_v16 = vpop.eup %3176 }
0x17e8   :  { %2411 = vrot.lane.b32.xlu0 %v3177_v16, %s3237_s4 }
0x17e9   :  { %v3179_v41 = vpop.eup %3178 }
0x17ea   :  { %2413 = vrot.lane.b32.xlu1 %v3179_v41, %s3237_s4 }
0x1830   :  { %v2528_v53 = vpop.permute.xlu0 %2527 }
0x1831   :  { %v2533_v50 = vadd.f32 %v2528_v53, %v3363_v26  ;;  %v2735_v26 = vmul.f32 -1.442695, %v2382_v14 }
0x1832   :  { %v2530_v43 = vpop.permute.xlu1 %2529 }
0x1833   :  { %3180 = vtanh.f32 %v2533_v50  ;;  %v2534_v56 = vadd.f32 %v2530_v43, %v3365_v27  ;;  %v2739_v6 = vmul.f32 -1.442695, %v2533_v50 }
0x1834   :  { %v2158_v17 = vpop.permute.xlu0 %2157 }
0x1835   :  { %2163 = vst.msk [vmem:[#allocation4] sm:$0xff] %vm228_vm2, %v2158_v17  ;;  %3182 = vtanh.f32 %v2534_v56  ;;  %v2740_v23 = vmul.f32 -1.442695, %v2534_v56 }
0x1836   :  { %v2160_v61 = vpop.permute.xlu1 %2159  ;;  %3184 = vpow2.f32 %v2734_v22 }
0x1837   :  { %2164 = vst.msk [vmem:[#allocation4 + $0x8] sm:$0xff] %vm228_vm2, %v2160_v61  ;;  %3186 = vpow2.f32 %v2735_v26 }
0x1838   :  { %v2310_v4 = vpop.permute.xlu0 %2309 }
0x1839   :  { %2315 = vst.msk [vmem:[#allocation6] sm:$0xff] %vm228_vm2, %v2310_v4 }
0x183a   :  { %v2312_v51 = vpop.permute.xlu1 %2311 }
0x183b   :  { %2316 = vst.msk [vmem:[#allocation6 + $0x8] sm:$0xff] %vm228_vm2, %v2312_v51 }
0x183c   :  { %v2383_v29 = vld [vmem:[#allocation4] sm:$0xff] }
0x183d   :  { %v3181_v11 = vpop.eup %3180 }
0x183e   :  { %2563 = vrot.lane.b32.xlu0 %v3181_v11, %s3237_s4  ;;  %v2384_v62 = vld [vmem:[#allocation4 + $0x8] sm:$0xff] }
0x183f   :  { %v3183_v27 = vpop.eup %3182 }
0x1840   :  { %2565 = vrot.lane.b32.xlu1 %v3183_v27, %s3237_s4  ;;  %v2535_v30 = vld [vmem:[#allocation6] sm:$0xff]  ;;  %v3185_v19 = vpop.eup %3184 }
0x1841   :  { %v3187_v31 = vpop.eup %3186  ;;  %v2391_v21 = vadd.f32 1.0, %v3185_v19  ;;  %v2745_v19 = vpack.c.bf16 %v3427_v18, %v3427_v18  ;;  %v2749_v18 = vpack.c.bf16 %v3476_v45, %v3476_v45 }
0x1842   :  { %2401 = vrot.lane.b32.xlu0 %v2383_v29, %s3238_s16  ;;  %v2536_v32 = vld [vmem:[#allocation6 + $0x8] sm:$0xff]  ;;  %v2392_v10 = vadd.f32 1.0, %v3187_v31  ;;  %v2746_v31 = vpack.c.bf16 %v3431_v20, %v3431_v20  ;;  %v2750_v20 = vpack.c.bf16 %v3480_v48, %v3480_v48 }
0x1843   :  { %3188 = vrcp.f32 %v2391_v21 }
0x1844   :  { %2403 = vrot.lane.b32.xlu1 %v2384_v62, %s3238_s16  ;;  %3190 = vrcp.f32 %v2392_v10 }
0x1845   :  { %3192 = vpow2.f32 %v2739_v6  ;;  %v2753_v6 = vpack.c.bf16 %v3552_v57, %v3552_v57  ;;  %v2757_v57 = vpack.c.bf16 %v3633_v25, %v3633_v25  ;;  %v2761_v25 = vpack.c.bf16 %v3720_v40, %v3720_v40 }
0x1846   :  { %2553 = vrot.lane.b32.xlu0 %v2535_v30, %s3239_s17  ;;  %3194 = vpow2.f32 %v2740_v23  ;;  %v2743_v30 = vpack.c.bf16 %v3419_v13, %v3419_v13  ;;  %v2747_v13 = vpack.c.bf16 %v3519_v55, %v3519_v55  ;;  %v2754_v23 = vpack.c.bf16 %v3556_v1, %v3556_v1 }
0x1847   :  { %v2758_v1 = vpack.c.bf16 %v3637_v35, %v3637_v35  ;;  %v2762_v35 = vpack.c.bf16 %v3724_v42, %v3724_v42  ;;  %v2765_v40 = vpack.c.bf16 %v3811_v52, %v3811_v52 }
0x1848   :  { %2555 = vrot.lane.b32.xlu1 %v2536_v32, %s3239_s17  ;;  %v2744_v32 = vpack.c.bf16 %v3423_v15, %v3423_v15  ;;  %v2748_v15 = vpack.c.bf16 %v3521_v60, %v3521_v60 }
0x184d   :  { %v3918_v24 = vpop.eup %3188 }
0x184e   :  { %v3921_v0 = vpop.eup %3190 }
0x184f   :  { %v3193_v59 = vpop.eup %3192 }
0x1850   :  { %v3195_v39 = vpop.eup %3194  ;;  %v2543_v12 = vadd.f32 1.0, %v3193_v59 }
0x1851   :  { %v2544_v63 = vadd.f32 1.0, %v3195_v39 }
0x1852   :  { %3196 = vrcp.f32 %v2543_v12  ;;  %v2767_v12 = vpack.c.bf16 %v3882_v38, %v3882_v38 }
0x1853   :  { %3198 = vrcp.f32 %v2544_v63  ;;  %v2768_v63 = vpack.c.bf16 %v3886_v2, %v3886_v2 }
0x185a   :  { %v2412_v5 = vpop.permute.xlu0 %2411 }
0x185b   :  { %v2417_v8 = vmul.f32 %v3918_v24, %v2412_v5 }
0x185c   :  { %v2414_v3 = vpop.permute.xlu1 %2413  ;;  %v3926_v14 = vpop.eup %3196 }
0x185d   :  { %2421 = vrot.lane.b32.xlu0 %v2417_v8, %s3238_s16  ;;  %v2418_v44 = vmul.f32 %v3921_v0, %v2414_v3  ;;  %v3929_v41 = vpop.eup %3198  ;;  %v2751_v3 = vpack.c.bf16 %v3589_v7, %v3589_v7  ;;  %v2755_v7 = vpack.c.bf16 %v3673_v58, %v3673_v58  ;;  %v2759_v58 = vpack.c.bf16 %v3749_v28, %v3749_v28 }
0x185e   :  { %v2763_v28 = vpack.c.bf16 %v3828_v37, %v3828_v37  ;;  %v2766_v37 = vpack.c.bf16 %v3816_v49, %v3816_v49  ;;  %v2769_v49 = vpack.c.bf16 %v3874_v46, %v3874_v46 }
0x185f   :  { %2423 = vrot.lane.b32.xlu1 %v2418_v44, %s3238_s16  ;;  %v2752_v44 = vpack.c.bf16 %v3593_v9, %v3593_v9  ;;  %v2756_v9 = vpack.c.bf16 %v3677_v33, %v3677_v33  ;;  %v2760_v33 = vpack.c.bf16 %v3753_v36, %v3753_v36  ;;  %v2764_v36 = vpack.c.bf16 %v3832_v47, %v3832_v47 }
0x18b0   :  { %v2564_v34 = vpop.permute.xlu0 %2563 }
0x18b1   :  { %v2569_v16 = vmul.f32 %v3926_v14, %v2564_v34 }
0x18b2   :  { %v2566_v53 = vpop.permute.xlu1 %2565 }
0x18b3   :  { %2573 = vrot.lane.b32.xlu0 %v2569_v16, %s3238_s16  ;;  %v2570_v50 = vmul.f32 %v3929_v41, %v2566_v53  ;;  %v2770_v53 = vpack.c.bf16 %v3878_v54, %v3878_v54 }
0x18b4   :  { %v2402_v43 = vpop.permute.xlu0 %2401 }
0x18b5   :  { %2575 = vrot.lane.b32.xlu1 %v2570_v50, %s3238_s16  ;;  %v2407_v61 = vmul.f32 %v3918_v24, %v2402_v43 }
0x18b6   :  { %v2404_v56 = vpop.permute.xlu1 %2403 }
0x18b7   :  { %v2408_v11 = vmul.f32 %v3921_v0, %v2404_v56 }
0x18b8   :  { %v2554_v17 = vpop.permute.xlu0 %2553 }
0x18b9   :  { %v2559_v55 = vmul.f32 %v3926_v14, %v2554_v17 }
0x18ba   :  { %v2556_v4 = vpop.permute.xlu1 %2555 }
0x18bb   :  { %v2560_v5 = vmul.f32 %v3929_v41, %v2556_v4 }
0x18cf   :  { %v2422_v51 = vpop.permute.xlu0 %2421 }
0x18d0   :  { %v3935_v22 = vadd.f32 %v2422_v51, %v2407_v61 }
0x18d1   :  { %v2424_v26 = vpop.permute.xlu1 %2423 }
0x18d2   :  { %3200 = vtanh.f32 %v3935_v22  ;;  %v3939_v27 = vadd.f32 %v2424_v26, %v2408_v11 }
0x18d4   :  { %3202 = vtanh.f32 %v3939_v27 }
0x18dc   :  { %v3201_v29 = vpop.eup %3200 }
0x18dd   :  { %2433 = vrot.lane.b32.xlu0 %v3201_v29, %s3240_s18 }
0x18de   :  { %v3203_v62 = vpop.eup %3202 }
0x18df   :  { %2435 = vrot.lane.b32.xlu1 %v3203_v62, %s3240_s18 }
0x18e1   :  { %382 = vrot.lane.b32.xlu0 %v2743_v30, %s3239_s17 }
0x18e3   :  { %384 = vrot.lane.b32.xlu1 %v2744_v32, %s3239_s17 }
0x18e5   :  { %541 = vrot.lane.b32.xlu0 %v2745_v19, %s3238_s16 }
0x18e7   :  { %543 = vrot.lane.b32.xlu1 %v2746_v31, %s3238_s16 }
0x18e9   :  { %686 = vrot.lane.b32.xlu0 %v2747_v13, %s3239_s17 }
0x18eb   :  { %688 = vrot.lane.b32.xlu1 %v2748_v15, %s3239_s17 }
0x18ed   :  { %839 = vrot.lane.b32.xlu0 %v2749_v18, %s3238_s16 }
0x18ef   :  { %841 = vrot.lane.b32.xlu1 %v2750_v20, %s3238_s16 }
0x1925   :  { %v2574_v21 = vpop.permute.xlu0 %2573 }
0x1926   :  { %v3969_v10 = vadd.f32 %v2574_v21, %v2559_v55 }
0x1927   :  { %v2576_v60 = vpop.permute.xlu1 %2575 }
0x1928   :  { %3204 = vtanh.f32 %v3969_v10  ;;  %v3973_v45 = vadd.f32 %v2576_v60, %v2560_v5 }
0x192a   :  { %3206 = vtanh.f32 %v3973_v45 }
0x1932   :  { %v3205_v8 = vpop.eup %3204 }
0x1933   :  { %2585 = vrot.lane.b32.xlu0 %v3205_v8, %s3240_s18 }
0x1934   :  { %v3207_v48 = vpop.eup %3206 }
0x1935   :  { %2587 = vrot.lane.b32.xlu1 %v3207_v48, %s3240_s18 }
0x1937   :  { %984 = vrot.lane.b32.xlu0 %v2751_v3, %s3239_s17 }
0x1939   :  { %986 = vrot.lane.b32.xlu1 %v2752_v44, %s3239_s17 }
0x193b   :  { %1137 = vrot.lane.b32.xlu0 %v2753_v6, %s3238_s16 }
0x193d   :  { %1139 = vrot.lane.b32.xlu1 %v2754_v23, %s3238_s16 }
0x193f   :  { %1282 = vrot.lane.b32.xlu0 %v2755_v7, %s3239_s17 }
0x1941   :  { %1284 = vrot.lane.b32.xlu1 %v2756_v9, %s3239_s17 }
0x1943   :  { %1435 = vrot.lane.b32.xlu0 %v2757_v57, %s3238_s16 }
0x1945   :  { %1437 = vrot.lane.b32.xlu1 %v2758_v1, %s3238_s16 }
0x1947   :  { %1579 = vrot.lane.b32.xlu0 %v2759_v58, %s3239_s17 }
0x1949   :  { %1581 = vrot.lane.b32.xlu1 %v2760_v33, %s3239_s17 }
0x194b   :  { %1731 = vrot.lane.b32.xlu0 %v2761_v25, %s3238_s16 }
0x194d   :  { %1733 = vrot.lane.b32.xlu1 %v2762_v35, %s3238_s16 }
0x194f   :  { %1875 = vrot.lane.b32.xlu0 %v2763_v28, %s3239_s17  ;;  %v2434_v59 = vpop.permute.xlu0 %2433 }
0x1950   :  { %v2439_v34 = vmul.f32 %v3918_v24, %v2434_v59 }
0x1951   :  { %1877 = vrot.lane.b32.xlu1 %v2764_v36, %s3239_s17  ;;  %v2436_v39 = vpop.permute.xlu1 %2435 }
0x1952   :  { %v2440_v2 = vmul.f32 %v3921_v0, %v2436_v39  ;;  %v2771_v50 = vpack.c.bf16 %v2439_v34, %v2439_v34 }
0x1953   :  { %2027 = vrot.lane.b32.xlu0 %v2765_v40, %s3238_s16  ;;  %v383_v42 = vpop.permute.xlu0 %382 }
0x1954   :  { %389 = vst.msk [vmem:[#allocation7] sm:$0xf] %vm388_vm4, %v383_v42  ;;  %v2772_v43 = vpack.c.bf16 %v2440_v2, %v2440_v2 }
0x1955   :  { %2029 = vrot.lane.b32.xlu1 %v2766_v37, %s3238_s16  ;;  %v385_v47 = vpop.permute.xlu1 %384 }
0x1956   :  { %390 = vst.msk [vmem:[#allocation7 + $0x4] sm:$0xf] %vm388_vm4, %v385_v47 }
0x1957   :  { %2171 = vrot.lane.b32.xlu0 %v2767_v12, %s3239_s17  ;;  %v542_v52 = vpop.permute.xlu0 %541 }
0x1958   :  { %548 = vst.msk [vmem:[#allocation7 + $0x78] sm:$0xf] %vm388_vm4, %v542_v52 }
0x1959   :  { %2173 = vrot.lane.b32.xlu1 %v2768_v63, %s3239_s17  ;;  %v544_v38 = vpop.permute.xlu1 %543 }
0x195a   :  { %549 = vst.msk [vmem:[#allocation7 + $0x7c] sm:$0xf] %vm388_vm4, %v544_v38 }
0x195b   :  { %2323 = vrot.lane.b32.xlu0 %v2769_v49, %s3238_s16  ;;  %v687_v16 = vpop.permute.xlu0 %686 }
0x195c   :  { %693 = vst.msk [vmem:[#allocation7 + $0x8] sm:$0xf] %vm388_vm4, %v687_v16 }
0x195d   :  { %2325 = vrot.lane.b32.xlu1 %v2770_v53, %s3238_s16  ;;  %v689_v46 = vpop.permute.xlu1 %688 }
0x195e   :  { %694 = vst.msk [vmem:[#allocation7 + $0xc] sm:$0xf] %vm388_vm4, %v689_v46 }
0x195f   :  { %2467 = vrot.lane.b32.xlu0 %v2771_v50, %s3239_s17  ;;  %v840_v24 = vpop.permute.xlu0 %839 }
0x1960   :  { %846 = vst.msk [vmem:[#allocation7 + $0x70] sm:$0xf] %vm388_vm4, %v840_v24 }
0x1961   :  { %2469 = vrot.lane.b32.xlu1 %v2772_v43, %s3239_s17  ;;  %v842_v56 = vpop.permute.xlu1 %841 }
0x1962   :  { %847 = vst.msk [vmem:[#allocation7 + $0x74] sm:$0xf] %vm388_vm4, %v842_v56 }
0x1963   :  { %2443 = vrot.lane.b32.xlu0 %v2439_v34, %s3239_s17 }
0x1965   :  { %2445 = vrot.lane.b32.xlu1 %v2440_v2, %s3239_s17 }
0x1967   :  { %2453 = vrot.lane.b32.xlu0 %v3935_v22, %s3242_s20 }
0x1969   :  { %2455 = vrot.lane.b32.xlu1 %v3939_v27, %s3242_s20 }
0x19a5   :  { %v2586_v54 = vpop.permute.xlu0 %2585 }
0x19a6   :  { %v2591_v0 = vmul.f32 %v3926_v14, %v2586_v54 }
0x19a7   :  { %v2588_v17 = vpop.permute.xlu1 %2587 }
0x19a8   :  { %2595 = vrot.lane.b32.xlu0 %v2591_v0, %s3238_s16  ;;  %v2592_v61 = vmul.f32 %v3929_v41, %v2588_v17  ;;  %v2773_v51 = vpack.c.bf16 %v2591_v0, %v2591_v0 }
0x19a9   :  { %v985_v4 = vpop.permute.xlu0 %984 }
0x19aa   :  { %991 = vst.msk [vmem:[#allocation7 + $0x10] sm:$0xf] %vm388_vm4, %v985_v4  ;;  %2597 = vrot.lane.b32.xlu1 %v2592_v61, %s3238_s16  ;;  %v2774_v22 = vpack.c.bf16 %v2592_v61, %v2592_v61 }
0x19ab   :  { %v987_v11 = vpop.permute.xlu1 %986 }
0x19ac   :  { %2619 = vrot.lane.b32.xlu0 %v2773_v51, %s3238_s16  ;;  %992 = vst.msk [vmem:[#allocation7 + $0x14] sm:$0xf] %vm388_vm4, %v987_v11 }
0x19ad   :  { %v1138_v26 = vpop.permute.xlu0 %1137 }
0x19ae   :  { %1144 = vst.msk [vmem:[#allocation7 + $0x68] sm:$0xf] %vm388_vm4, %v1138_v26  ;;  %2621 = vrot.lane.b32.xlu1 %v2774_v22, %s3238_s16 }
0x19af   :  { %v1140_v14 = vpop.permute.xlu1 %1139 }
0x19b0   :  { %2605 = vrot.lane.b32.xlu0 %v3969_v10, %s3241_s19  ;;  %1145 = vst.msk [vmem:[#allocation7 + $0x6c] sm:$0xf] %vm388_vm4, %v1140_v14 }
0x19b1   :  { %v1283_v41 = vpop.permute.xlu0 %1282 }
0x19b2   :  { %1289 = vst.msk [vmem:[#allocation7 + $0x18] sm:$0xf] %vm388_vm4, %v1283_v41  ;;  %2607 = vrot.lane.b32.xlu1 %v3973_v45, %s3241_s19 }
0x19b3   :  { %v1285_v27 = vpop.permute.xlu1 %1284 }
0x19b4   :  { %1290 = vst.msk [vmem:[#allocation7 + $0x1c] sm:$0xf] %vm388_vm4, %v1285_v27 }
0x19b5   :  { %v1436_v29 = vpop.permute.xlu0 %1435 }
0x19b6   :  { %1442 = vst.msk [vmem:[#allocation7 + $0x60] sm:$0xf] %vm388_vm4, %v1436_v29 }
0x19b7   :  { %v1438_v62 = vpop.permute.xlu1 %1437 }
0x19b8   :  { %1443 = vst.msk [vmem:[#allocation7 + $0x64] sm:$0xf] %vm388_vm4, %v1438_v62 }
0x19b9   :  { %v1580_v30 = vpop.permute.xlu0 %1579 }
0x19ba   :  { %1586 = vst.msk [vmem:[#allocation7 + $0x20] sm:$0xf] %vm388_vm4, %v1580_v30 }
0x19bb   :  { %v1582_v32 = vpop.permute.xlu1 %1581 }
0x19bc   :  { %1587 = vst.msk [vmem:[#allocation7 + $0x24] sm:$0xf] %vm388_vm4, %v1582_v32 }
0x19bd   :  { %v1732_v19 = vpop.permute.xlu0 %1731 }
0x19be   :  { %1738 = vst.msk [vmem:[#allocation7 + $0x58] sm:$0xf] %vm388_vm4, %v1732_v19 }
0x19bf   :  { %v1734_v31 = vpop.permute.xlu1 %1733 }
0x19c0   :  { %1739 = vst.msk [vmem:[#allocation7 + $0x5c] sm:$0xf] %vm388_vm4, %v1734_v31 }
0x19c1   :  { %v1876_v13 = vpop.permute.xlu0 %1875 }
0x19c2   :  { %1882 = vst.msk [vmem:[#allocation7 + $0x28] sm:$0xf] %vm388_vm4, %v1876_v13 }
0x19c3   :  { %v1878_v15 = vpop.permute.xlu1 %1877 }
0x19c4   :  { %1883 = vst.msk [vmem:[#allocation7 + $0x2c] sm:$0xf] %vm388_vm4, %v1878_v15 }
0x19c5   :  { %v2028_v18 = vpop.permute.xlu0 %2027 }
0x19c6   :  { %2034 = vst.msk [vmem:[#allocation7 + $0x50] sm:$0xf] %vm388_vm4, %v2028_v18 }
0x19c7   :  { %v2030_v20 = vpop.permute.xlu1 %2029 }
0x19c8   :  { %2035 = vst.msk [vmem:[#allocation7 + $0x54] sm:$0xf] %vm388_vm4, %v2030_v20 }
0x19c9   :  { %v2172_v55 = vpop.permute.xlu0 %2171 }
0x19ca   :  { %2178 = vst.msk [vmem:[#allocation7 + $0x30] sm:$0xf] %vm388_vm4, %v2172_v55 }
0x19cb   :  { %v2174_v21 = vpop.permute.xlu1 %2173 }
0x19cc   :  { %2179 = vst.msk [vmem:[#allocation7 + $0x34] sm:$0xf] %vm388_vm4, %v2174_v21 }
0x19cd   :  { %v2324_v10 = vpop.permute.xlu0 %2323 }
0x19ce   :  { %2330 = vst.msk [vmem:[#allocation7 + $0x48] sm:$0xf] %vm388_vm4, %v2324_v10 }
0x19cf   :  { %v2326_v5 = vpop.permute.xlu1 %2325 }
0x19d0   :  { %2331 = vst.msk [vmem:[#allocation7 + $0x4c] sm:$0xf] %vm388_vm4, %v2326_v5 }
0x19d1   :  { %v2468_v60 = vpop.permute.xlu0 %2467 }
0x19d2   :  { %2474 = vst.msk [vmem:[#allocation7 + $0x38] sm:$0xf] %vm388_vm4, %v2468_v60 }
0x19d3   :  { %v2470_v45 = vpop.permute.xlu1 %2469 }
0x19d4   :  { %2475 = vst.msk [vmem:[#allocation7 + $0x3c] sm:$0xf] %vm388_vm4, %v2470_v45 }
0x19d5   :  { %v2444_v8 = vpop.permute.xlu0 %2443 }
0x19d6   :  { %2449 = vst.msk [vmem:[#allocation3] sm:$0xff] %vm228_vm2, %v2444_v8 }
0x19d7   :  { %v2446_v48 = vpop.permute.xlu1 %2445 }
0x19d8   :  { %2450 = vst.msk [vmem:[#allocation3 + $0x8] sm:$0xff] %vm228_vm2, %v2446_v48 }
0x19d9   :  { %v2454_v3 = vpop.permute.xlu0 %2453 }
0x19da   :  { %2459 = vst.msk [vmem:[#allocation4] sm:$0xff] %vm228_vm2, %v2454_v3 }
0x19db   :  { %v2456_v44 = vpop.permute.xlu1 %2455 }
0x19dc   :  { %2460 = vst.msk [vmem:[#allocation4 + $0x8] sm:$0xff] %vm228_vm2, %v2456_v44 }
0x1a1a   :  { %v2596_v6 = vpop.permute.xlu0 %2595 }
0x1a1b   :  { %2601 = vst.msk [vmem:[#allocation5] sm:$0xff] %vm228_vm2, %v2596_v6 }
0x1a1c   :  { %v2598_v23 = vpop.permute.xlu1 %2597 }
0x1a1d   :  { %2602 = vst.msk [vmem:[#allocation5 + $0x8] sm:$0xff] %vm228_vm2, %v2598_v23 }
0x1a1e   :  { %v2620_v7 = vpop.permute.xlu0 %2619 }
0x1a1f   :  { %2626 = vst.msk [vmem:[#allocation7 + $0x40] sm:$0xf] %vm388_vm4, %v2620_v7 }
0x1a20   :  { %v2622_v9 = vpop.permute.xlu1 %2621 }
0x1a21   :  { %2627 = vst.msk [vmem:[#allocation7 + $0x44] sm:$0xf] %vm388_vm4, %v2622_v9 }
0x1a22   :  { %v2606_v57 = vpop.permute.xlu0 %2605 }
0x1a23   :  { %2611 = vst.msk [vmem:[#allocation6] sm:$0xff] %vm228_vm2, %v2606_v57 }
0x1a24   :  { %3221 = shalt.err (!%p3218_p4)
}
0x1a25   :  { %s3222_s27 = scalar_lea.hbm %s4117_s5, 2048 }
0x1a26   :  { %p3223_p5 = scmp.ne.s32.totalorder %s4117_s5, %s3222_s27  ;;  %p3226_p6 = scmp.lt.u32.totalorder %s3222_s27, %s4117_s5 }
0x1a28   :  { %p3228_p7 = pnand %p3226_p6, %p3223_p5 }
0x1a2a   :  { %3231 = shalt.err (!%p3228_p7)
}
0x1a2b   :  { %s3244_s7 = smov 4   ;;  %v2608_v1 = vpop.permute.xlu1 %2607 }
0x1a2c   :  { %2639 = dma.vmem_to_hbm [thread:$0]  %s2634_s1, 2048, %s4117_s5, [#allocation8], %s3236_s0, %s3236_s0, %s3244_s7   ;;  %2612 = vst.msk [vmem:[#allocation6 + $0x8] sm:$0xff] %vm228_vm2, %v2608_v1 }
0x1a2d   :  { %3232 = dma.done.wait [#allocation8], 2048  }
0x1a2e   :  { %3233 = vsyncadd [#allocation8], 4294965248 }
0x1a2f   :  { %2643 = vsyncpa [#allocation8], 1 }

</bundles_post_ra>
